<compile_context>
chip_gen: v7x
topology: tpu7x:2x2x1
jax: 0.10.0
libtpu: 0.0.40
codegen_flags: <defaults>
</compile_context>

<pallas_src>
import math

import jax
import jax.numpy as jnp
from jax import lax
from jax.experimental import pallas as pl
from jax.experimental.pallas import tpu as pltpu

# ---- model hyper-parameters (args.*) --------------------------------------
HIDDEN = 32        # args.hidden_dim
FEATURE = 8        # args.feature_dim
NUM_LAYERS = 2     # args.num_layers
MAX_SEQ_LEN = 8    # args.max_seq_len
BATCH = 8          # args.batch_size (8 fills the vreg sublanes)
EPS = 1e-5         # torch.nn.LayerNorm default eps (elementwise_affine=False)


def _layer_norm(x):
    """LayerNorm over last dim, no affine (torch.nn.LayerNorm(..., elementwise_affine=False))."""
    mu = jnp.mean(x, axis=-1, keepdims=True)
    var = jnp.mean((x - mu) ** 2, axis=-1, keepdims=True)
    return (x - mu) * lax.rsqrt(var + EPS)


# ---------------------------------------------------------------------------
# Pallas kernel
# ---------------------------------------------------------------------------
def recovery_kernel(t_ref,                    # SMEM (B,) int32 — temporal info, only T[0] used
                    hseq_ref,                 # VMEM (S*B, E)  latent sequence (time-major, flat)
                    hinit_ref,                # VMEM (B, HIDDEN) initial hidden state
                    wx_ref, bx_ref,           # (L, HIDDEN, 3H), (L, 1, 3H)  [i2h | h_hat_W]
                    wh_ref, bh_ref,           # (L, HIDDEN, 3H), (L, 1, 3H)  [h2h | h_hat_U]
                    wlin_ref, blin_ref,       # (HIDDEN, F), (1, F)
                    out_ref):                 # VMEM (S*B, F)
    SB, E = hseq_ref.shape
    B, hid = hinit_ref.shape
    S = SB // B
    L = wx_ref.shape[0]
    g2 = 2 * hid
    t0 = t_ref[0]

    # Hoist every loop-invariant load out of the time loop.
    wx = [wx_ref[l] for l in range(L)]
    bx = [bx_ref[l] for l in range(L)]
    wh = [wh_ref[l] for l in range(L)]
    bh = [bh_ref[l] for l in range(L)]
    wlin = wlin_ref[...]
    blin = blin_ref[...]
    h0 = hinit_ref[...]

    # ---- Layer-0 x-path for ALL timesteps, off the recurrence critical path:
    # one (S*B, E) @ (E, 3H) matmul + two batched LayerNorms.
    pre_x0 = jnp.dot(hseq_ref[...], wx[0], preferred_element_type=jnp.float32) + bx[0]
    lnx0_g = _layer_norm(pre_x0[:, :g2])      # (S*B, 2H)
    lnx0_c = _layer_norm(pre_x0[:, g2:])      # (S*B, H)

    # h_init is shared by every layer at t == 0 (matches the PyTorch forward).
    hstate = [h0] * L
    h_last = []

    for t in range(S):                        # static unroll — MAX_SEQ_LEN is small
        # h-path pre-activations of all layers depend only on the t-1 state:
        # compute them up front (they overlap) and LayerNorm them as one block.
        pre_h = [jnp.dot(hstate[l], wh[l], preferred_element_type=jnp.float32) + bh[l]
                 for l in range(L)]
        stacked = jnp.concatenate(pre_h, axis=0)          # (L*B, 3H)
        lnh_g = _layer_norm(stacked[:, :g2])              # rows l*B:(l+1)*B = layer l
        lnh_c = _layer_norm(stacked[:, g2:])

        # Layer 0 uses the precomputed x-path LN for timestep t (static slice).
        lnx_g = lnx0_g[t * B:(t + 1) * B]
        lnx_c = lnx0_c[t * B:(t + 1) * B]
        x = None
        for l in range(L):
            if l > 0:
                # x-path of deeper layers depends on the layer below at time t
                # (inherently on the critical path).
                pre_x = jnp.dot(x, wx[l], preferred_element_type=jnp.float32) + bx[l]
                lnx_g = _layer_norm(pre_x[:, :g2])
                lnx_c = _layer_norm(pre_x[:, g2:])

            h_prev = hstate[l]
            gates = jax.nn.sigmoid(lnx_g + lnh_g[l * B:(l + 1) * B])   # (B, 2H)
            z_t = gates[:, :hid]
            r_t = gates[:, hid:]
            h_hat = jnp.tanh(lnx_c + r_t * lnh_c[l * B:(l + 1) * B])
            h_new = (1.0 - z_t) * h_prev + z_t * h_hat
            hstate[l] = h_new                 # this layer's state for t+1
            x = h_new                         # input to the next layer

        h_last.append(hstate[L - 1])

    # ---- rec_linear + rec_sigmoid on ALL timesteps at once, after the loop.
    h_all = jnp.concatenate(h_last, axis=0)               # (S*B, H)
    y = jax.nn.sigmoid(
        jnp.dot(h_all, wlin, preferred_element_type=jnp.float32) + blin)
    rows = lax.broadcasted_iota(jnp.int32, (SB, y.shape[-1]), 0)
    # rows are ordered t*B + b, so "t < T[0]" == "row < T[0]*B"; zero-fill the rest.
    out_ref[...] = jnp.where(rows < t0 * B, y, 0.0).astype(out_ref.dtype)


# ---------------------------------------------------------------------------
# Wrapper (layout transposes + weight fusion + pallas_call plumbing)
# ---------------------------------------------------------------------------
def recovery_forward(H, T, params, h_init):
    """H: (B, S, E) float32, T: (B,) int32.  Returns X_tilde: (B, S, F).
    Timesteps t >= T[0] are zero-filled (PyTorch module returns only T[0] steps)."""
    B, S, E = H.shape
    H_flat = jnp.transpose(H, (1, 0, 2)).reshape(S * B, E)   # time-major, flat

    # Pre-fuse the per-layer gate weights/biases (done once, outside the kernel).
    wx = jnp.concatenate([params["wi2h"], params["whw"]], axis=-1)   # (L, H, 3H)
    bx = jnp.concatenate([params["bi2h"], params["bhw"]], axis=-1)   # (L, 1, 3H)
    wh = jnp.concatenate([params["wh2h"], params["whu"]], axis=-1)   # (L, H, 3H)
    bh = jnp.concatenate([params["bh2h"], params["bhu"]], axis=-1)   # (L, 1, 3H)

    kernel_fn = pl.pallas_call(
        recovery_kernel,
        out_shape=jax.ShapeDtypeStruct((S * B, FEATURE), jnp.float32),
        in_specs=[pl.BlockSpec(memory_space=pltpu.MemorySpace.SMEM)]
        + [pl.BlockSpec(memory_space=pltpu.MemorySpace.VMEM)] * 8,
        out_specs=pl.BlockSpec(memory_space=pltpu.MemorySpace.VMEM),
    )
    out_flat = kernel_fn(T, H_flat, h_init, wx, bx, wh, bh,
                         params["wlin"], params["blin"])
    return jnp.transpose(out_flat.reshape(S, B, FEATURE), (1, 0, 2))  # (B, S, F)


# ---------------------------------------------------------------------------
# Deterministic parameter init (mirrors shapes/init style of the PyTorch module)
# ---------------------------------------------------------------------------
def init_params(key):
    # LayerNormGRUCell.reset_parameters: uniform(-std, std), std = 1/sqrt(hidden)
    std = 1.0 / math.sqrt(HIDDEN)
    ks = jax.random.split(key, 10)

    def u(k, shape, bound):
        return jax.random.uniform(k, shape, jnp.float32, minval=-bound, maxval=bound)

    params = {
        "wi2h": u(ks[0], (NUM_LAYERS, HIDDEN, 2 * HIDDEN), std),
        "bi2h": u(ks[1], (NUM_LAYERS, 1, 2 * HIDDEN), std),
        "wh2h": u(ks[2], (NUM_LAYERS, HIDDEN, 2 * HIDDEN), std),
        "bh2h": u(ks[3], (NUM_LAYERS, 1, 2 * HIDDEN), std),
        "whw": u(ks[4], (NUM_LAYERS, HIDDEN, HIDDEN), std),
        "bhw": u(ks[5], (NUM_LAYERS, 1, HIDDEN), std),
        "whu": u(ks[6], (NUM_LAYERS, HIDDEN, HIDDEN), std),
        "bhu": u(ks[7], (NUM_LAYERS, 1, HIDDEN), std),
        # rec_linear: xavier_uniform weight, zero bias
        "wlin": u(ks[8], (HIDDEN, FEATURE), math.sqrt(6.0 / (HIDDEN + FEATURE))),
        "blin": jnp.zeros((1, FEATURE), jnp.float32),
    }
    return params


# ---------------------------------------------------------------------------
# Pure-JAX reference (original unfused math) for correctness checking
# ---------------------------------------------------------------------------
def reference_forward(H, T, params, h_init):
    B, S, _ = H.shape
    t0 = int(T[0])
    hstate = [h_init for _ in range(NUM_LAYERS)]
    outs = []
    for t in range(t0):
        x = H[:, t, :]
        new_state = []
        for l in range(NUM_LAYERS):
            h_prev = hstate[l]
            i2h = _layer_norm(x @ params["wi2h"][l] + params["bi2h"][l])
            h2h = _layer_norm(h_prev @ params["wh2h"][l] + params["bh2h"][l])
            gates = jax.nn.sigmoid(i2h + h2h)
            z_t, r_t = gates[:, :HIDDEN], gates[:, HIDDEN:]
            hh1 = _layer_norm(x @ params["whw"][l] + params["bhw"][l])
            hh2 = _layer_norm(h_prev @ params["whu"][l] + params["bhu"][l])
            h_hat = jnp.tanh(hh1 + r_t * hh2)
            h_new = (1.0 - z_t) * h_prev + z_t * h_hat
            new_state.append(h_new)
            x = h_new
        hstate = new_state
        outs.append(jax.nn.sigmoid(x @ params["wlin"] + params["blin"]))
    out = jnp.stack(outs, axis=1)                         # (B, t0, F)
    if t0 < S:
        out = jnp.concatenate(
            [out, jnp.zeros((B, S - t0, FEATURE), jnp.float32)], axis=1)
    return out


# ---------------------------------------------------------------------------
if __name__ == "__main__":
    key = jax.random.PRNGKey(0)
    k_h, k_init, k_params = jax.random.split(key, 3)

    # latent representation H: (B, S, E) with E == hidden_dim (encoder output)
    H = jax.random.normal(k_h, (BATCH, MAX_SEQ_LEN, HIDDEN), jnp.float32)
    # temporal info T: uniform valid length (only T[0] is used, as in the module);
    # use T[0] < max_seq_len to exercise the zero-fill gating.
    T = jnp.full((BATCH,), 6, dtype=jnp.int32)

    # TODO(synk): the PyTorch forward draws a fresh xavier_uniform h_init on CUDA every
    # call; here a deterministic xavier-style h_init is generated once and passed in.
    xav_bound = math.sqrt(6.0 / (BATCH + HIDDEN))
    h_init = jax.random.uniform(k_init, (BATCH, HIDDEN), jnp.float32,
                                minval=-xav_bound, maxval=xav_bound)

    params = init_params(k_params)

    # TODO(synk): only encode_mode='layer_norm_gru' is implemented; the 'gru'
    # (pack_padded_sequence) and 'transformer' branches are not covered here.
    x_tilde = recovery_forward(H, T, params, h_init)
    x_tilde = jax.block_until_ready(x_tilde)

    x_ref = reference_forward(H, T, params, h_init)
    assert x_tilde.shape == (BATCH, MAX_SEQ_LEN, FEATURE)
    assert jnp.allclose(x_tilde, x_ref, atol=1e-5, rtol=1e-5), (
        float(jnp.max(jnp.abs(x_tilde - x_ref))))

    print("KERNEL_OK")
</pallas_src>

<mosaic_0001>
module attributes {stable_mosaic.version = 11 : i64} {
  func.func @recovery_kernel(%arg0: memref<8xi32, #tpu.memory_space<smem>>, %arg1: memref<64x32xf32, #tpu.memory_space<vmem>>, %arg2: memref<8x32xf32, #tpu.memory_space<vmem>>, %arg3: memref<2x32x96xf32, #tpu.memory_space<vmem>>, %arg4: memref<2x1x96xf32, #tpu.memory_space<vmem>>, %arg5: memref<2x32x96xf32, #tpu.memory_space<vmem>>, %arg6: memref<2x1x96xf32, #tpu.memory_space<vmem>>, %arg7: memref<32x8xf32, #tpu.memory_space<vmem>>, %arg8: memref<1x8xf32, #tpu.memory_space<vmem>>, %arg9: memref<64x8xf32, #tpu.memory_space<vmem>>) attributes {dimension_semantics = [], scalar_prefetch = 0 : i64, scratch_operands = 0 : i64, tpu.core_type = #tpu.core_type<tc>} {
    %c0 = arith.constant 0 : index
    %0 = memref.load %arg0[%c0] : memref<8xi32, #tpu.memory_space<smem>>
    %c0_0 = arith.constant 0 : index
    %c0_1 = arith.constant 0 : index
    %c0_2 = arith.constant 0 : index
    %1 = vector.load %arg3[%c0_0, %c0_1, %c0_2] : memref<2x32x96xf32, #tpu.memory_space<vmem>>, vector<1x32x96xf32>
    %2 = vector.shape_cast %1 : vector<1x32x96xf32> to vector<32x96xf32>
    %c1 = arith.constant 1 : index
    %c0_3 = arith.constant 0 : index
    %c0_4 = arith.constant 0 : index
    %3 = vector.load %arg3[%c1, %c0_3, %c0_4] : memref<2x32x96xf32, #tpu.memory_space<vmem>>, vector<1x32x96xf32>
    %4 = vector.shape_cast %3 : vector<1x32x96xf32> to vector<32x96xf32>
    %c0_5 = arith.constant 0 : index
    %c0_6 = arith.constant 0 : index
    %c0_7 = arith.constant 0 : index
    %5 = vector.load %arg4[%c0_5, %c0_6, %c0_7] : memref<2x1x96xf32, #tpu.memory_space<vmem>>, vector<1x1x96xf32>
    %6 = vector.shape_cast %5 : vector<1x1x96xf32> to vector<1x96xf32>
    %c1_8 = arith.constant 1 : index
    %c0_9 = arith.constant 0 : index
    %c0_10 = arith.constant 0 : index
    %7 = vector.load %arg4[%c1_8, %c0_9, %c0_10] : memref<2x1x96xf32, #tpu.memory_space<vmem>>, vector<1x1x96xf32>
    %8 = vector.shape_cast %7 : vector<1x1x96xf32> to vector<1x96xf32>
    %c0_11 = arith.constant 0 : index
    %c0_12 = arith.constant 0 : index
    %c0_13 = arith.constant 0 : index
    %9 = vector.load %arg5[%c0_11, %c0_12, %c0_13] : memref<2x32x96xf32, #tpu.memory_space<vmem>>, vector<1x32x96xf32>
    %10 = vector.shape_cast %9 : vector<1x32x96xf32> to vector<32x96xf32>
    %c1_14 = arith.constant 1 : index
    %c0_15 = arith.constant 0 : index
    %c0_16 = arith.constant 0 : index
    %11 = vector.load %arg5[%c1_14, %c0_15, %c0_16] : memref<2x32x96xf32, #tpu.memory_space<vmem>>, vector<1x32x96xf32>
    %12 = vector.shape_cast %11 : vector<1x32x96xf32> to vector<32x96xf32>
    %c0_17 = arith.constant 0 : index
    %c0_18 = arith.constant 0 : index
    %c0_19 = arith.constant 0 : index
    %13 = vector.load %arg6[%c0_17, %c0_18, %c0_19] : memref<2x1x96xf32, #tpu.memory_space<vmem>>, vector<1x1x96xf32>
    %14 = vector.shape_cast %13 : vector<1x1x96xf32> to vector<1x96xf32>
    %c1_20 = arith.constant 1 : index
    %c0_21 = arith.constant 0 : index
    %c0_22 = arith.constant 0 : index
    %15 = vector.load %arg6[%c1_20, %c0_21, %c0_22] : memref<2x1x96xf32, #tpu.memory_space<vmem>>, vector<1x1x96xf32>
    %16 = vector.shape_cast %15 : vector<1x1x96xf32> to vector<1x96xf32>
    %c0_23 = arith.constant 0 : index
    %c0_24 = arith.constant 0 : index
    %17 = vector.load %arg7[%c0_23, %c0_24] : memref<32x8xf32, #tpu.memory_space<vmem>>, vector<32x8xf32>
    %c0_25 = arith.constant 0 : index
    %c0_26 = arith.constant 0 : index
    %18 = vector.load %arg8[%c0_25, %c0_26] : memref<1x8xf32, #tpu.memory_space<vmem>>, vector<1x8xf32>
    %c0_27 = arith.constant 0 : index
    %c0_28 = arith.constant 0 : index
    %19 = vector.load %arg2[%c0_27, %c0_28] : memref<8x32xf32, #tpu.memory_space<vmem>>, vector<8x32xf32>
    %c0_29 = arith.constant 0 : index
    %c0_30 = arith.constant 0 : index
    %20 = vector.load %arg1[%c0_29, %c0_30] : memref<64x32xf32, #tpu.memory_space<vmem>>, vector<64x32xf32>
    %cst = arith.constant dense<0.000000e+00> : vector<64x96xf32>
    %21 = tpu.matmul %20, %2, %cst {dimension_numbers = #tpu.dot_dimension_numbers<[1], [0], [0], [1], [0, 0, 1, 1], [], []>} : vector<64x32xf32>, vector<32x96xf32>, vector<64x96xf32> -> vector<64x96xf32>
    %22 = vector.broadcast %6 : vector<1x96xf32> to vector<64x96xf32>
    %23 = arith.addf %21, %22 : vector<64x96xf32>
    %24 = vector.extract_strided_slice %23 {offsets = [0, 0], sizes = [64, 64], strides = [1, 1]} : vector<64x96xf32> to vector<64x64xf32>
    %cst_31 = arith.constant dense<0.000000e+00> : vector<64xf32>
    %25 = vector.multi_reduction <add>, %24, %cst_31 [1] : vector<64x64xf32> to vector<64xf32>
    %26 = vector.shape_cast %25 : vector<64xf32> to vector<64x1xf32>
    %cst_32 = arith.constant 6.400000e+01 : f32
    %27 = vector.broadcast %cst_32 : f32 to vector<64x1xf32>
    %28 = arith.divf %26, %27 : vector<64x1xf32>
    %29 = vector.broadcast %28 : vector<64x1xf32> to vector<64x64xf32>
    %30 = arith.subf %24, %29 : vector<64x64xf32>
    %31 = arith.mulf %30, %30 : vector<64x64xf32>
    %cst_33 = arith.constant dense<0.000000e+00> : vector<64xf32>
    %32 = vector.multi_reduction <add>, %31, %cst_33 [1] : vector<64x64xf32> to vector<64xf32>
    %33 = vector.shape_cast %32 : vector<64xf32> to vector<64x1xf32>
    %cst_34 = arith.constant 6.400000e+01 : f32
    %34 = vector.broadcast %cst_34 : f32 to vector<64x1xf32>
    %35 = arith.divf %33, %34 : vector<64x1xf32>
    %36 = vector.broadcast %28 : vector<64x1xf32> to vector<64x64xf32>
    %37 = arith.subf %24, %36 : vector<64x64xf32>
    %cst_35 = arith.constant 9.99999974E-6 : f32
    %38 = vector.broadcast %cst_35 : f32 to vector<64x1xf32>
    %39 = arith.addf %35, %38 : vector<64x1xf32>
    %40 = math.rsqrt %39 : vector<64x1xf32>
    %41 = vector.broadcast %40 : vector<64x1xf32> to vector<64x64xf32>
    %42 = arith.mulf %37, %41 : vector<64x64xf32>
    %43 = vector.extract_strided_slice %23 {offsets = [0, 64], sizes = [64, 32], strides = [1, 1]} : vector<64x96xf32> to vector<64x32xf32>
    %cst_36 = arith.constant dense<0.000000e+00> : vector<64xf32>
    %44 = vector.multi_reduction <add>, %43, %cst_36 [1] : vector<64x32xf32> to vector<64xf32>
    %45 = vector.shape_cast %44 : vector<64xf32> to vector<64x1xf32>
    %cst_37 = arith.constant 3.200000e+01 : f32
    %46 = vector.broadcast %cst_37 : f32 to vector<64x1xf32>
    %47 = arith.divf %45, %46 : vector<64x1xf32>
    %48 = vector.broadcast %47 : vector<64x1xf32> to vector<64x32xf32>
    %49 = arith.subf %43, %48 : vector<64x32xf32>
    %50 = arith.mulf %49, %49 : vector<64x32xf32>
    %cst_38 = arith.constant dense<0.000000e+00> : vector<64xf32>
    %51 = vector.multi_reduction <add>, %50, %cst_38 [1] : vector<64x32xf32> to vector<64xf32>
    %52 = vector.shape_cast %51 : vector<64xf32> to vector<64x1xf32>
    %cst_39 = arith.constant 3.200000e+01 : f32
    %53 = vector.broadcast %cst_39 : f32 to vector<64x1xf32>
    %54 = arith.divf %52, %53 : vector<64x1xf32>
    %55 = vector.broadcast %47 : vector<64x1xf32> to vector<64x32xf32>
    %56 = arith.subf %43, %55 : vector<64x32xf32>
    %cst_40 = arith.constant 9.99999974E-6 : f32
    %57 = vector.broadcast %cst_40 : f32 to vector<64x1xf32>
    %58 = arith.addf %54, %57 : vector<64x1xf32>
    %59 = math.rsqrt %58 : vector<64x1xf32>
    %60 = vector.broadcast %59 : vector<64x1xf32> to vector<64x32xf32>
    %61 = arith.mulf %56, %60 : vector<64x32xf32>
    %cst_41 = arith.constant dense<0.000000e+00> : vector<8x96xf32>
    %62 = tpu.matmul %19, %10, %cst_41 {dimension_numbers = #tpu.dot_dimension_numbers<[1], [0], [0], [1], [0, 0, 1, 1], [], []>} : vector<8x32xf32>, vector<32x96xf32>, vector<8x96xf32> -> vector<8x96xf32>
    %63 = vector.broadcast %14 : vector<1x96xf32> to vector<8x96xf32>
    %64 = arith.addf %62, %63 : vector<8x96xf32>
    %cst_42 = arith.constant dense<0.000000e+00> : vector<8x96xf32>
    %65 = tpu.matmul %19, %12, %cst_42 {dimension_numbers = #tpu.dot_dimension_numbers<[1], [0], [0], [1], [0, 0, 1, 1], [], []>} : vector<8x32xf32>, vector<32x96xf32>, vector<8x96xf32> -> vector<8x96xf32>
    %66 = vector.broadcast %16 : vector<1x96xf32> to vector<8x96xf32>
    %67 = arith.addf %65, %66 : vector<8x96xf32>
    %68 = tpu.concatenate %64, %67 in 0 : vector<8x96xf32>, vector<8x96xf32> -> vector<16x96xf32>
    %69 = vector.extract_strided_slice %68 {offsets = [0, 0], sizes = [16, 64], strides = [1, 1]} : vector<16x96xf32> to vector<16x64xf32>
    %cst_43 = arith.constant dense<0.000000e+00> : vector<16xf32>
    %70 = vector.multi_reduction <add>, %69, %cst_43 [1] : vector<16x64xf32> to vector<16xf32>
    %71 = vector.shape_cast %70 : vector<16xf32> to vector<16x1xf32>
    %cst_44 = arith.constant 6.400000e+01 : f32
    %72 = vector.broadcast %cst_44 : f32 to vector<16x1xf32>
    %73 = arith.divf %71, %72 : vector<16x1xf32>
    %74 = vector.broadcast %73 : vector<16x1xf32> to vector<16x64xf32>
    %75 = arith.subf %69, %74 : vector<16x64xf32>
    %76 = arith.mulf %75, %75 : vector<16x64xf32>
    %cst_45 = arith.constant dense<0.000000e+00> : vector<16xf32>
    %77 = vector.multi_reduction <add>, %76, %cst_45 [1] : vector<16x64xf32> to vector<16xf32>
    %78 = vector.shape_cast %77 : vector<16xf32> to vector<16x1xf32>
    %cst_46 = arith.constant 6.400000e+01 : f32
    %79 = vector.broadcast %cst_46 : f32 to vector<16x1xf32>
    %80 = arith.divf %78, %79 : vector<16x1xf32>
    %81 = vector.broadcast %73 : vector<16x1xf32> to vector<16x64xf32>
    %82 = arith.subf %69, %81 : vector<16x64xf32>
    %cst_47 = arith.constant 9.99999974E-6 : f32
    %83 = vector.broadcast %cst_47 : f32 to vector<16x1xf32>
    %84 = arith.addf %80, %83 : vector<16x1xf32>
    %85 = math.rsqrt %84 : vector<16x1xf32>
    %86 = vector.broadcast %85 : vector<16x1xf32> to vector<16x64xf32>
    %87 = arith.mulf %82, %86 : vector<16x64xf32>
    %88 = vector.extract_strided_slice %68 {offsets = [0, 64], sizes = [16, 32], strides = [1, 1]} : vector<16x96xf32> to vector<16x32xf32>
    %cst_48 = arith.constant dense<0.000000e+00> : vector<16xf32>
    %89 = vector.multi_reduction <add>, %88, %cst_48 [1] : vector<16x32xf32> to vector<16xf32>
    %90 = vector.shape_cast %89 : vector<16xf32> to vector<16x1xf32>
    %cst_49 = arith.constant 3.200000e+01 : f32
    %91 = vector.broadcast %cst_49 : f32 to vector<16x1xf32>
    %92 = arith.divf %90, %91 : vector<16x1xf32>
    %93 = vector.broadcast %92 : vector<16x1xf32> to vector<16x32xf32>
    %94 = arith.subf %88, %93 : vector<16x32xf32>
    %95 = arith.mulf %94, %94 : vector<16x32xf32>
    %cst_50 = arith.constant dense<0.000000e+00> : vector<16xf32>
    %96 = vector.multi_reduction <add>, %95, %cst_50 [1] : vector<16x32xf32> to vector<16xf32>
    %97 = vector.shape_cast %96 : vector<16xf32> to vector<16x1xf32>
    %cst_51 = arith.constant 3.200000e+01 : f32
    %98 = vector.broadcast %cst_51 : f32 to vector<16x1xf32>
    %99 = arith.divf %97, %98 : vector<16x1xf32>
    %100 = vector.broadcast %92 : vector<16x1xf32> to vector<16x32xf32>
    %101 = arith.subf %88, %100 : vector<16x32xf32>
    %cst_52 = arith.constant 9.99999974E-6 : f32
    %102 = vector.broadcast %cst_52 : f32 to vector<16x1xf32>
    %103 = arith.addf %99, %102 : vector<16x1xf32>
    %104 = math.rsqrt %103 : vector<16x1xf32>
    %105 = vector.broadcast %104 : vector<16x1xf32> to vector<16x32xf32>
    %106 = arith.mulf %101, %105 : vector<16x32xf32>
    %107 = vector.extract_strided_slice %42 {offsets = [0, 0], sizes = [8, 64], strides = [1, 1]} : vector<64x64xf32> to vector<8x64xf32>
    %108 = vector.extract_strided_slice %61 {offsets = [0, 0], sizes = [8, 32], strides = [1, 1]} : vector<64x32xf32> to vector<8x32xf32>
    %109 = vector.extract_strided_slice %87 {offsets = [0, 0], sizes = [8, 64], strides = [1, 1]} : vector<16x64xf32> to vector<8x64xf32>
    %110 = arith.addf %107, %109 : vector<8x64xf32>
    %111 = arith.negf %110 : vector<8x64xf32>
    %112 = math.exp %111 : vector<8x64xf32>
    %cst_53 = arith.constant 1.000000e+00 : f32
    %113 = vector.broadcast %cst_53 : f32 to vector<8x64xf32>
    %114 = arith.addf %113, %112 : vector<8x64xf32>
    %115 = arith.divf %113, %114 : vector<8x64xf32>
    %116 = vector.extract_strided_slice %115 {offsets = [0, 0], sizes = [8, 32], strides = [1, 1]} : vector<8x64xf32> to vector<8x32xf32>
    %117 = vector.extract_strided_slice %115 {offsets = [0, 32], sizes = [8, 32], strides = [1, 1]} : vector<8x64xf32> to vector<8x32xf32>
    %118 = vector.extract_strided_slice %106 {offsets = [0, 0], sizes = [8, 32], strides = [1, 1]} : vector<16x32xf32> to vector<8x32xf32>
    %119 = arith.mulf %117, %118 : vector<8x32xf32>
    %120 = arith.addf %108, %119 : vector<8x32xf32>
    %121 = math.tanh %120 : vector<8x32xf32>
    %cst_54 = arith.constant 1.000000e+00 : f32
    %122 = vector.broadcast %cst_54 : f32 to vector<8x32xf32>
    %123 = arith.subf %122, %116 : vector<8x32xf32>
    %124 = arith.mulf %123, %19 : vector<8x32xf32>
    %125 = arith.mulf %116, %121 : vector<8x32xf32>
    %126 = arith.addf %124, %125 : vector<8x32xf32>
    %cst_55 = arith.constant dense<0.000000e+00> : vector<8x96xf32>
    %127 = tpu.matmul %126, %4, %cst_55 {dimension_numbers = #tpu.dot_dimension_numbers<[1], [0], [0], [1], [0, 0, 1, 1], [], []>} : vector<8x32xf32>, vector<32x96xf32>, vector<8x96xf32> -> vector<8x96xf32>
    %128 = vector.broadcast %8 : vector<1x96xf32> to vector<8x96xf32>
    %129 = arith.addf %127, %128 : vector<8x96xf32>
    %130 = vector.extract_strided_slice %129 {offsets = [0, 0], sizes = [8, 64], strides = [1, 1]} : vector<8x96xf32> to vector<8x64xf32>
    %cst_56 = arith.constant dense<0.000000e+00> : vector<8xf32>
    %131 = vector.multi_reduction <add>, %130, %cst_56 [1] : vector<8x64xf32> to vector<8xf32>
    %132 = vector.shape_cast %131 : vector<8xf32> to vector<8x1xf32>
    %cst_57 = arith.constant 6.400000e+01 : f32
    %133 = vector.broadcast %cst_57 : f32 to vector<8x1xf32>
    %134 = arith.divf %132, %133 : vector<8x1xf32>
    %135 = vector.broadcast %134 : vector<8x1xf32> to vector<8x64xf32>
    %136 = arith.subf %130, %135 : vector<8x64xf32>
    %137 = arith.mulf %136, %136 : vector<8x64xf32>
    %cst_58 = arith.constant dense<0.000000e+00> : vector<8xf32>
    %138 = vector.multi_reduction <add>, %137, %cst_58 [1] : vector<8x64xf32> to vector<8xf32>
    %139 = vector.shape_cast %138 : vector<8xf32> to vector<8x1xf32>
    %cst_59 = arith.constant 6.400000e+01 : f32
    %140 = vector.broadcast %cst_59 : f32 to vector<8x1xf32>
    %141 = arith.divf %139, %140 : vector<8x1xf32>
    %142 = vector.broadcast %134 : vector<8x1xf32> to vector<8x64xf32>
    %143 = arith.subf %130, %142 : vector<8x64xf32>
    %cst_60 = arith.constant 9.99999974E-6 : f32
    %144 = vector.broadcast %cst_60 : f32 to vector<8x1xf32>
    %145 = arith.addf %141, %144 : vector<8x1xf32>
    %146 = math.rsqrt %145 : vector<8x1xf32>
    %147 = vector.broadcast %146 : vector<8x1xf32> to vector<8x64xf32>
    %148 = arith.mulf %143, %147 : vector<8x64xf32>
    %149 = vector.extract_strided_slice %129 {offsets = [0, 64], sizes = [8, 32], strides = [1, 1]} : vector<8x96xf32> to vector<8x32xf32>
    %cst_61 = arith.constant dense<0.000000e+00> : vector<8xf32>
    %150 = vector.multi_reduction <add>, %149, %cst_61 [1] : vector<8x32xf32> to vector<8xf32>
    %151 = vector.shape_cast %150 : vector<8xf32> to vector<8x1xf32>
    %cst_62 = arith.constant 3.200000e+01 : f32
    %152 = vector.broadcast %cst_62 : f32 to vector<8x1xf32>
    %153 = arith.divf %151, %152 : vector<8x1xf32>
    %154 = vector.broadcast %153 : vector<8x1xf32> to vector<8x32xf32>
    %155 = arith.subf %149, %154 : vector<8x32xf32>
    %156 = arith.mulf %155, %155 : vector<8x32xf32>
    %cst_63 = arith.constant dense<0.000000e+00> : vector<8xf32>
    %157 = vector.multi_reduction <add>, %156, %cst_63 [1] : vector<8x32xf32> to vector<8xf32>
    %158 = vector.shape_cast %157 : vector<8xf32> to vector<8x1xf32>
    %cst_64 = arith.constant 3.200000e+01 : f32
    %159 = vector.broadcast %cst_64 : f32 to vector<8x1xf32>
    %160 = arith.divf %158, %159 : vector<8x1xf32>
    %161 = vector.broadcast %153 : vector<8x1xf32> to vector<8x32xf32>
    %162 = arith.subf %149, %161 : vector<8x32xf32>
    %cst_65 = arith.constant 9.99999974E-6 : f32
    %163 = vector.broadcast %cst_65 : f32 to vector<8x1xf32>
    %164 = arith.addf %160, %163 : vector<8x1xf32>
    %165 = math.rsqrt %164 : vector<8x1xf32>
    %166 = vector.broadcast %165 : vector<8x1xf32> to vector<8x32xf32>
    %167 = arith.mulf %162, %166 : vector<8x32xf32>
    %168 = vector.extract_strided_slice %87 {offsets = [8, 0], sizes = [8, 64], strides = [1, 1]} : vector<16x64xf32> to vector<8x64xf32>
    %169 = arith.addf %148, %168 : vector<8x64xf32>
    %170 = arith.negf %169 : vector<8x64xf32>
    %171 = math.exp %170 : vector<8x64xf32>
    %cst_66 = arith.constant 1.000000e+00 : f32
    %172 = vector.broadcast %cst_66 : f32 to vector<8x64xf32>
    %173 = arith.addf %172, %171 : vector<8x64xf32>
    %174 = arith.divf %172, %173 : vector<8x64xf32>
    %175 = vector.extract_strided_slice %174 {offsets = [0, 0], sizes = [8, 32], strides = [1, 1]} : vector<8x64xf32> to vector<8x32xf32>
    %176 = vector.extract_strided_slice %174 {offsets = [0, 32], sizes = [8, 32], strides = [1, 1]} : vector<8x64xf32> to vector<8x32xf32>
    %177 = vector.extract_strided_slice %106 {offsets = [8, 0], sizes = [8, 32], strides = [1, 1]} : vector<16x32xf32> to vector<8x32xf32>
    %178 = arith.mulf %176, %177 : vector<8x32xf32>
    %179 = arith.addf %167, %178 : vector<8x32xf32>
    %180 = math.tanh %179 : vector<8x32xf32>
    %cst_67 = arith.constant 1.000000e+00 : f32
    %181 = vector.broadcast %cst_67 : f32 to vector<8x32xf32>
    %182 = arith.subf %181, %175 : vector<8x32xf32>
    %183 = arith.mulf %182, %19 : vector<8x32xf32>
    %184 = arith.mulf %175, %180 : vector<8x32xf32>
    %185 = arith.addf %183, %184 : vector<8x32xf32>
    %cst_68 = arith.constant dense<0.000000e+00> : vector<8x96xf32>
    %186 = tpu.matmul %126, %10, %cst_68 {dimension_numbers = #tpu.dot_dimension_numbers<[1], [0], [0], [1], [0, 0, 1, 1], [], []>} : vector<8x32xf32>, vector<32x96xf32>, vector<8x96xf32> -> vector<8x96xf32>
    %187 = vector.broadcast %14 : vector<1x96xf32> to vector<8x96xf32>
    %188 = arith.addf %186, %187 : vector<8x96xf32>
    %cst_69 = arith.constant dense<0.000000e+00> : vector<8x96xf32>
    %189 = tpu.matmul %185, %12, %cst_69 {dimension_numbers = #tpu.dot_dimension_numbers<[1], [0], [0], [1], [0, 0, 1, 1], [], []>} : vector<8x32xf32>, vector<32x96xf32>, vector<8x96xf32> -> vector<8x96xf32>
    %190 = vector.broadcast %16 : vector<1x96xf32> to vector<8x96xf32>
    %191 = arith.addf %189, %190 : vector<8x96xf32>
    %192 = tpu.concatenate %188, %191 in 0 : vector<8x96xf32>, vector<8x96xf32> -> vector<16x96xf32>
    %193 = vector.extract_strided_slice %192 {offsets = [0, 0], sizes = [16, 64], strides = [1, 1]} : vector<16x96xf32> to vector<16x64xf32>
    %cst_70 = arith.constant dense<0.000000e+00> : vector<16xf32>
    %194 = vector.multi_reduction <add>, %193, %cst_70 [1] : vector<16x64xf32> to vector<16xf32>
    %195 = vector.shape_cast %194 : vector<16xf32> to vector<16x1xf32>
    %cst_71 = arith.constant 6.400000e+01 : f32
    %196 = vector.broadcast %cst_71 : f32 to vector<16x1xf32>
    %197 = arith.divf %195, %196 : vector<16x1xf32>
    %198 = vector.broadcast %197 : vector<16x1xf32> to vector<16x64xf32>
    %199 = arith.subf %193, %198 : vector<16x64xf32>
    %200 = arith.mulf %199, %199 : vector<16x64xf32>
    %cst_72 = arith.constant dense<0.000000e+00> : vector<16xf32>
    %201 = vector.multi_reduction <add>, %200, %cst_72 [1] : vector<16x64xf32> to vector<16xf32>
    %202 = vector.shape_cast %201 : vector<16xf32> to vector<16x1xf32>
    %cst_73 = arith.constant 6.400000e+01 : f32
    %203 = vector.broadcast %cst_73 : f32 to vector<16x1xf32>
    %204 = arith.divf %202, %203 : vector<16x1xf32>
    %205 = vector.broadcast %197 : vector<16x1xf32> to vector<16x64xf32>
    %206 = arith.subf %193, %205 : vector<16x64xf32>
    %cst_74 = arith.constant 9.99999974E-6 : f32
    %207 = vector.broadcast %cst_74 : f32 to vector<16x1xf32>
    %208 = arith.addf %204, %207 : vector<16x1xf32>
    %209 = math.rsqrt %208 : vector<16x1xf32>
    %210 = vector.broadcast %209 : vector<16x1xf32> to vector<16x64xf32>
    %211 = arith.mulf %206, %210 : vector<16x64xf32>
    %212 = vector.extract_strided_slice %192 {offsets = [0, 64], sizes = [16, 32], strides = [1, 1]} : vector<16x96xf32> to vector<16x32xf32>
    %cst_75 = arith.constant dense<0.000000e+00> : vector<16xf32>
    %213 = vector.multi_reduction <add>, %212, %cst_75 [1] : vector<16x32xf32> to vector<16xf32>
    %214 = vector.shape_cast %213 : vector<16xf32> to vector<16x1xf32>
    %cst_76 = arith.constant 3.200000e+01 : f32
    %215 = vector.broadcast %cst_76 : f32 to vector<16x1xf32>
    %216 = arith.divf %214, %215 : vector<16x1xf32>
    %217 = vector.broadcast %216 : vector<16x1xf32> to vector<16x32xf32>
    %218 = arith.subf %212, %217 : vector<16x32xf32>
    %219 = arith.mulf %218, %218 : vector<16x32xf32>
    %cst_77 = arith.constant dense<0.000000e+00> : vector<16xf32>
    %220 = vector.multi_reduction <add>, %219, %cst_77 [1] : vector<16x32xf32> to vector<16xf32>
    %221 = vector.shape_cast %220 : vector<16xf32> to vector<16x1xf32>
    %cst_78 = arith.constant 3.200000e+01 : f32
    %222 = vector.broadcast %cst_78 : f32 to vector<16x1xf32>
    %223 = arith.divf %221, %222 : vector<16x1xf32>
    %224 = vector.broadcast %216 : vector<16x1xf32> to vector<16x32xf32>
    %225 = arith.subf %212, %224 : vector<16x32xf32>
    %cst_79 = arith.constant 9.99999974E-6 : f32
    %226 = vector.broadcast %cst_79 : f32 to vector<16x1xf32>
    %227 = arith.addf %223, %226 : vector<16x1xf32>
    %228 = math.rsqrt %227 : vector<16x1xf32>
    %229 = vector.broadcast %228 : vector<16x1xf32> to vector<16x32xf32>
    %230 = arith.mulf %225, %229 : vector<16x32xf32>
    %231 = vector.extract_strided_slice %42 {offsets = [8, 0], sizes = [8, 64], strides = [1, 1]} : vector<64x64xf32> to vector<8x64xf32>
    %232 = vector.extract_strided_slice %61 {offsets = [8, 0], sizes = [8, 32], strides = [1, 1]} : vector<64x32xf32> to vector<8x32xf32>
    %233 = vector.extract_strided_slice %211 {offsets = [0, 0], sizes = [8, 64], strides = [1, 1]} : vector<16x64xf32> to vector<8x64xf32>
    %234 = arith.addf %231, %233 : vector<8x64xf32>
    %235 = arith.negf %234 : vector<8x64xf32>
    %236 = math.exp %235 : vector<8x64xf32>
    %cst_80 = arith.constant 1.000000e+00 : f32
    %237 = vector.broadcast %cst_80 : f32 to vector<8x64xf32>
    %238 = arith.addf %237, %236 : vector<8x64xf32>
    %239 = arith.divf %237, %238 : vector<8x64xf32>
    %240 = vector.extract_strided_slice %239 {offsets = [0, 0], sizes = [8, 32], strides = [1, 1]} : vector<8x64xf32> to vector<8x32xf32>
    %241 = vector.extract_strided_slice %239 {offsets = [0, 32], sizes = [8, 32], strides = [1, 1]} : vector<8x64xf32> to vector<8x32xf32>
    %242 = vector.extract_strided_slice %230 {offsets = [0, 0], sizes = [8, 32], strides = [1, 1]} : vector<16x32xf32> to vector<8x32xf32>
    %243 = arith.mulf %241, %242 : vector<8x32xf32>
    %244 = arith.addf %232, %243 : vector<8x32xf32>
    %245 = math.tanh %244 : vector<8x32xf32>
    %cst_81 = arith.constant 1.000000e+00 : f32
    %246 = vector.broadcast %cst_81 : f32 to vector<8x32xf32>
    %247 = arith.subf %246, %240 : vector<8x32xf32>
    %248 = arith.mulf %247, %126 : vector<8x32xf32>
    %249 = arith.mulf %240, %245 : vector<8x32xf32>
    %250 = arith.addf %248, %249 : vector<8x32xf32>
    %cst_82 = arith.constant dense<0.000000e+00> : vector<8x96xf32>
    %251 = tpu.matmul %250, %4, %cst_82 {dimension_numbers = #tpu.dot_dimension_numbers<[1], [0], [0], [1], [0, 0, 1, 1], [], []>} : vector<8x32xf32>, vector<32x96xf32>, vector<8x96xf32> -> vector<8x96xf32>
    %252 = vector.broadcast %8 : vector<1x96xf32> to vector<8x96xf32>
    %253 = arith.addf %251, %252 : vector<8x96xf32>
    %254 = vector.extract_strided_slice %253 {offsets = [0, 0], sizes = [8, 64], strides = [1, 1]} : vector<8x96xf32> to vector<8x64xf32>
    %cst_83 = arith.constant dense<0.000000e+00> : vector<8xf32>
    %255 = vector.multi_reduction <add>, %254, %cst_83 [1] : vector<8x64xf32> to vector<8xf32>
    %256 = vector.shape_cast %255 : vector<8xf32> to vector<8x1xf32>
    %cst_84 = arith.constant 6.400000e+01 : f32
    %257 = vector.broadcast %cst_84 : f32 to vector<8x1xf32>
    %258 = arith.divf %256, %257 : vector<8x1xf32>
    %259 = vector.broadcast %258 : vector<8x1xf32> to vector<8x64xf32>
    %260 = arith.subf %254, %259 : vector<8x64xf32>
    %261 = arith.mulf %260, %260 : vector<8x64xf32>
    %cst_85 = arith.constant dense<0.000000e+00> : vector<8xf32>
    %262 = vector.multi_reduction <add>, %261, %cst_85 [1] : vector<8x64xf32> to vector<8xf32>
    %263 = vector.shape_cast %262 : vector<8xf32> to vector<8x1xf32>
    %cst_86 = arith.constant 6.400000e+01 : f32
    %264 = vector.broadcast %cst_86 : f32 to vector<8x1xf32>
    %265 = arith.divf %263, %264 : vector<8x1xf32>
    %266 = vector.broadcast %258 : vector<8x1xf32> to vector<8x64xf32>
    %267 = arith.subf %254, %266 : vector<8x64xf32>
    %cst_87 = arith.constant 9.99999974E-6 : f32
    %268 = vector.broadcast %cst_87 : f32 to vector<8x1xf32>
    %269 = arith.addf %265, %268 : vector<8x1xf32>
    %270 = math.rsqrt %269 : vector<8x1xf32>
    %271 = vector.broadcast %270 : vector<8x1xf32> to vector<8x64xf32>
    %272 = arith.mulf %267, %271 : vector<8x64xf32>
    %273 = vector.extract_strided_slice %253 {offsets = [0, 64], sizes = [8, 32], strides = [1, 1]} : vector<8x96xf32> to vector<8x32xf32>
    %cst_88 = arith.constant dense<0.000000e+00> : vector<8xf32>
    %274 = vector.multi_reduction <add>, %273, %cst_88 [1] : vector<8x32xf32> to vector<8xf32>
    %275 = vector.shape_cast %274 : vector<8xf32> to vector<8x1xf32>
    %cst_89 = arith.constant 3.200000e+01 : f32
    %276 = vector.broadcast %cst_89 : f32 to vector<8x1xf32>
    %277 = arith.divf %275, %276 : vector<8x1xf32>
    %278 = vector.broadcast %277 : vector<8x1xf32> to vector<8x32xf32>
    %279 = arith.subf %273, %278 : vector<8x32xf32>
    %280 = arith.mulf %279, %279 : vector<8x32xf32>
    %cst_90 = arith.constant dense<0.000000e+00> : vector<8xf32>
    %281 = vector.multi_reduction <add>, %280, %cst_90 [1] : vector<8x32xf32> to vector<8xf32>
    %282 = vector.shape_cast %281 : vector<8xf32> to vector<8x1xf32>
    %cst_91 = arith.constant 3.200000e+01 : f32
    %283 = vector.broadcast %cst_91 : f32 to vector<8x1xf32>
    %284 = arith.divf %282, %283 : vector<8x1xf32>
    %285 = vector.broadcast %277 : vector<8x1xf32> to vector<8x32xf32>
    %286 = arith.subf %273, %285 : vector<8x32xf32>
    %cst_92 = arith.constant 9.99999974E-6 : f32
    %287 = vector.broadcast %cst_92 : f32 to vector<8x1xf32>
    %288 = arith.addf %284, %287 : vector<8x1xf32>
    %289 = math.rsqrt %288 : vector<8x1xf32>
    %290 = vector.broadcast %289 : vector<8x1xf32> to vector<8x32xf32>
    %291 = arith.mulf %286, %290 : vector<8x32xf32>
    %292 = vector.extract_strided_slice %211 {offsets = [8, 0], sizes = [8, 64], strides = [1, 1]} : vector<16x64xf32> to vector<8x64xf32>
    %293 = arith.addf %272, %292 : vector<8x64xf32>
    %294 = arith.negf %293 : vector<8x64xf32>
    %295 = math.exp %294 : vector<8x64xf32>
    %cst_93 = arith.constant 1.000000e+00 : f32
    %296 = vector.broadcast %cst_93 : f32 to vector<8x64xf32>
    %297 = arith.addf %296, %295 : vector<8x64xf32>
    %298 = arith.divf %296, %297 : vector<8x64xf32>
    %299 = vector.extract_strided_slice %298 {offsets = [0, 0], sizes = [8, 32], strides = [1, 1]} : vector<8x64xf32> to vector<8x32xf32>
    %300 = vector.extract_strided_slice %298 {offsets = [0, 32], sizes = [8, 32], strides = [1, 1]} : vector<8x64xf32> to vector<8x32xf32>
    %301 = vector.extract_strided_slice %230 {offsets = [8, 0], sizes = [8, 32], strides = [1, 1]} : vector<16x32xf32> to vector<8x32xf32>
    %302 = arith.mulf %300, %301 : vector<8x32xf32>
    %303 = arith.addf %291, %302 : vector<8x32xf32>
    %304 = math.tanh %303 : vector<8x32xf32>
    %cst_94 = arith.constant 1.000000e+00 : f32
    %305 = vector.broadcast %cst_94 : f32 to vector<8x32xf32>
    %306 = arith.subf %305, %299 : vector<8x32xf32>
    %307 = arith.mulf %306, %185 : vector<8x32xf32>
    %308 = arith.mulf %299, %304 : vector<8x32xf32>
    %309 = arith.addf %307, %308 : vector<8x32xf32>
    %cst_95 = arith.constant dense<0.000000e+00> : vector<8x96xf32>
    %310 = tpu.matmul %250, %10, %cst_95 {dimension_numbers = #tpu.dot_dimension_numbers<[1], [0], [0], [1], [0, 0, 1, 1], [], []>} : vector<8x32xf32>, vector<32x96xf32>, vector<8x96xf32> -> vector<8x96xf32>
    %311 = vector.broadcast %14 : vector<1x96xf32> to vector<8x96xf32>
    %312 = arith.addf %310, %311 : vector<8x96xf32>
    %cst_96 = arith.constant dense<0.000000e+00> : vector<8x96xf32>
    %313 = tpu.matmul %309, %12, %cst_96 {dimension_numbers = #tpu.dot_dimension_numbers<[1], [0], [0], [1], [0, 0, 1, 1], [], []>} : vector<8x32xf32>, vector<32x96xf32>, vector<8x96xf32> -> vector<8x96xf32>
    %314 = vector.broadcast %16 : vector<1x96xf32> to vector<8x96xf32>
    %315 = arith.addf %313, %314 : vector<8x96xf32>
    %316 = tpu.concatenate %312, %315 in 0 : vector<8x96xf32>, vector<8x96xf32> -> vector<16x96xf32>
    %317 = vector.extract_strided_slice %316 {offsets = [0, 0], sizes = [16, 64], strides = [1, 1]} : vector<16x96xf32> to vector<16x64xf32>
    %cst_97 = arith.constant dense<0.000000e+00> : vector<16xf32>
    %318 = vector.multi_reduction <add>, %317, %cst_97 [1] : vector<16x64xf32> to vector<16xf32>
    %319 = vector.shape_cast %318 : vector<16xf32> to vector<16x1xf32>
    %cst_98 = arith.constant 6.400000e+01 : f32
    %320 = vector.broadcast %cst_98 : f32 to vector<16x1xf32>
    %321 = arith.divf %319, %320 : vector<16x1xf32>
    %322 = vector.broadcast %321 : vector<16x1xf32> to vector<16x64xf32>
    %323 = arith.subf %317, %322 : vector<16x64xf32>
    %324 = arith.mulf %323, %323 : vector<16x64xf32>
    %cst_99 = arith.constant dense<0.000000e+00> : vector<16xf32>
    %325 = vector.multi_reduction <add>, %324, %cst_99 [1] : vector<16x64xf32> to vector<16xf32>
    %326 = vector.shape_cast %325 : vector<16xf32> to vector<16x1xf32>
    %cst_100 = arith.constant 6.400000e+01 : f32
    %327 = vector.broadcast %cst_100 : f32 to vector<16x1xf32>
    %328 = arith.divf %326, %327 : vector<16x1xf32>
    %329 = vector.broadcast %321 : vector<16x1xf32> to vector<16x64xf32>
    %330 = arith.subf %317, %329 : vector<16x64xf32>
    %cst_101 = arith.constant 9.99999974E-6 : f32
    %331 = vector.broadcast %cst_101 : f32 to vector<16x1xf32>
    %332 = arith.addf %328, %331 : vector<16x1xf32>
    %333 = math.rsqrt %332 : vector<16x1xf32>
    %334 = vector.broadcast %333 : vector<16x1xf32> to vector<16x64xf32>
    %335 = arith.mulf %330, %334 : vector<16x64xf32>
    %336 = vector.extract_strided_slice %316 {offsets = [0, 64], sizes = [16, 32], strides = [1, 1]} : vector<16x96xf32> to vector<16x32xf32>
    %cst_102 = arith.constant dense<0.000000e+00> : vector<16xf32>
    %337 = vector.multi_reduction <add>, %336, %cst_102 [1] : vector<16x32xf32> to vector<16xf32>
    %338 = vector.shape_cast %337 : vector<16xf32> to vector<16x1xf32>
    %cst_103 = arith.constant 3.200000e+01 : f32
    %339 = vector.broadcast %cst_103 : f32 to vector<16x1xf32>
    %340 = arith.divf %338, %339 : vector<16x1xf32>
    %341 = vector.broadcast %340 : vector<16x1xf32> to vector<16x32xf32>
    %342 = arith.subf %336, %341 : vector<16x32xf32>
    %343 = arith.mulf %342, %342 : vector<16x32xf32>
    %cst_104 = arith.constant dense<0.000000e+00> : vector<16xf32>
    %344 = vector.multi_reduction <add>, %343, %cst_104 [1] : vector<16x32xf32> to vector<16xf32>
    %345 = vector.shape_cast %344 : vector<16xf32> to vector<16x1xf32>
    %cst_105 = arith.constant 3.200000e+01 : f32
    %346 = vector.broadcast %cst_105 : f32 to vector<16x1xf32>
    %347 = arith.divf %345, %346 : vector<16x1xf32>
    %348 = vector.broadcast %340 : vector<16x1xf32> to vector<16x32xf32>
    %349 = arith.subf %336, %348 : vector<16x32xf32>
    %cst_106 = arith.constant 9.99999974E-6 : f32
    %350 = vector.broadcast %cst_106 : f32 to vector<16x1xf32>
    %351 = arith.addf %347, %350 : vector<16x1xf32>
    %352 = math.rsqrt %351 : vector<16x1xf32>
    %353 = vector.broadcast %352 : vector<16x1xf32> to vector<16x32xf32>
    %354 = arith.mulf %349, %353 : vector<16x32xf32>
    %355 = vector.extract_strided_slice %42 {offsets = [16, 0], sizes = [8, 64], strides = [1, 1]} : vector<64x64xf32> to vector<8x64xf32>
    %356 = vector.extract_strided_slice %61 {offsets = [16, 0], sizes = [8, 32], strides = [1, 1]} : vector<64x32xf32> to vector<8x32xf32>
    %357 = vector.extract_strided_slice %335 {offsets = [0, 0], sizes = [8, 64], strides = [1, 1]} : vector<16x64xf32> to vector<8x64xf32>
    %358 = arith.addf %355, %357 : vector<8x64xf32>
    %359 = arith.negf %358 : vector<8x64xf32>
    %360 = math.exp %359 : vector<8x64xf32>
    %cst_107 = arith.constant 1.000000e+00 : f32
    %361 = vector.broadcast %cst_107 : f32 to vector<8x64xf32>
    %362 = arith.addf %361, %360 : vector<8x64xf32>
    %363 = arith.divf %361, %362 : vector<8x64xf32>
    %364 = vector.extract_strided_slice %363 {offsets = [0, 0], sizes = [8, 32], strides = [1, 1]} : vector<8x64xf32> to vector<8x32xf32>
    %365 = vector.extract_strided_slice %363 {offsets = [0, 32], sizes = [8, 32], strides = [1, 1]} : vector<8x64xf32> to vector<8x32xf32>
    %366 = vector.extract_strided_slice %354 {offsets = [0, 0], sizes = [8, 32], strides = [1, 1]} : vector<16x32xf32> to vector<8x32xf32>
    %367 = arith.mulf %365, %366 : vector<8x32xf32>
    %368 = arith.addf %356, %367 : vector<8x32xf32>
    %369 = math.tanh %368 : vector<8x32xf32>
    %cst_108 = arith.constant 1.000000e+00 : f32
    %370 = vector.broadcast %cst_108 : f32 to vector<8x32xf32>
    %371 = arith.subf %370, %364 : vector<8x32xf32>
    %372 = arith.mulf %371, %250 : vector<8x32xf32>
    %373 = arith.mulf %364, %369 : vector<8x32xf32>
    %374 = arith.addf %372, %373 : vector<8x32xf32>
    %cst_109 = arith.constant dense<0.000000e+00> : vector<8x96xf32>
    %375 = tpu.matmul %374, %4, %cst_109 {dimension_numbers = #tpu.dot_dimension_numbers<[1], [0], [0], [1], [0, 0, 1, 1], [], []>} : vector<8x32xf32>, vector<32x96xf32>, vector<8x96xf32> -> vector<8x96xf32>
    %376 = vector.broadcast %8 : vector<1x96xf32> to vector<8x96xf32>
    %377 = arith.addf %375, %376 : vector<8x96xf32>
    %378 = vector.extract_strided_slice %377 {offsets = [0, 0], sizes = [8, 64], strides = [1, 1]} : vector<8x96xf32> to vector<8x64xf32>
    %cst_110 = arith.constant dense<0.000000e+00> : vector<8xf32>
    %379 = vector.multi_reduction <add>, %378, %cst_110 [1] : vector<8x64xf32> to vector<8xf32>
    %380 = vector.shape_cast %379 : vector<8xf32> to vector<8x1xf32>
    %cst_111 = arith.constant 6.400000e+01 : f32
    %381 = vector.broadcast %cst_111 : f32 to vector<8x1xf32>
    %382 = arith.divf %380, %381 : vector<8x1xf32>
    %383 = vector.broadcast %382 : vector<8x1xf32> to vector<8x64xf32>
    %384 = arith.subf %378, %383 : vector<8x64xf32>
    %385 = arith.mulf %384, %384 : vector<8x64xf32>
    %cst_112 = arith.constant dense<0.000000e+00> : vector<8xf32>
    %386 = vector.multi_reduction <add>, %385, %cst_112 [1] : vector<8x64xf32> to vector<8xf32>
    %387 = vector.shape_cast %386 : vector<8xf32> to vector<8x1xf32>
    %cst_113 = arith.constant 6.400000e+01 : f32
    %388 = vector.broadcast %cst_113 : f32 to vector<8x1xf32>
    %389 = arith.divf %387, %388 : vector<8x1xf32>
    %390 = vector.broadcast %382 : vector<8x1xf32> to vector<8x64xf32>
    %391 = arith.subf %378, %390 : vector<8x64xf32>
    %cst_114 = arith.constant 9.99999974E-6 : f32
    %392 = vector.broadcast %cst_114 : f32 to vector<8x1xf32>
    %393 = arith.addf %389, %392 : vector<8x1xf32>
    %394 = math.rsqrt %393 : vector<8x1xf32>
    %395 = vector.broadcast %394 : vector<8x1xf32> to vector<8x64xf32>
    %396 = arith.mulf %391, %395 : vector<8x64xf32>
    %397 = vector.extract_strided_slice %377 {offsets = [0, 64], sizes = [8, 32], strides = [1, 1]} : vector<8x96xf32> to vector<8x32xf32>
    %cst_115 = arith.constant dense<0.000000e+00> : vector<8xf32>
    %398 = vector.multi_reduction <add>, %397, %cst_115 [1] : vector<8x32xf32> to vector<8xf32>
    %399 = vector.shape_cast %398 : vector<8xf32> to vector<8x1xf32>
    %cst_116 = arith.constant 3.200000e+01 : f32
    %400 = vector.broadcast %cst_116 : f32 to vector<8x1xf32>
    %401 = arith.divf %399, %400 : vector<8x1xf32>
    %402 = vector.broadcast %401 : vector<8x1xf32> to vector<8x32xf32>
    %403 = arith.subf %397, %402 : vector<8x32xf32>
    %404 = arith.mulf %403, %403 : vector<8x32xf32>
    %cst_117 = arith.constant dense<0.000000e+00> : vector<8xf32>
    %405 = vector.multi_reduction <add>, %404, %cst_117 [1] : vector<8x32xf32> to vector<8xf32>
    %406 = vector.shape_cast %405 : vector<8xf32> to vector<8x1xf32>
    %cst_118 = arith.constant 3.200000e+01 : f32
    %407 = vector.broadcast %cst_118 : f32 to vector<8x1xf32>
    %408 = arith.divf %406, %407 : vector<8x1xf32>
    %409 = vector.broadcast %401 : vector<8x1xf32> to vector<8x32xf32>
    %410 = arith.subf %397, %409 : vector<8x32xf32>
    %cst_119 = arith.constant 9.99999974E-6 : f32
    %411 = vector.broadcast %cst_119 : f32 to vector<8x1xf32>
    %412 = arith.addf %408, %411 : vector<8x1xf32>
    %413 = math.rsqrt %412 : vector<8x1xf32>
    %414 = vector.broadcast %413 : vector<8x1xf32> to vector<8x32xf32>
    %415 = arith.mulf %410, %414 : vector<8x32xf32>
    %416 = vector.extract_strided_slice %335 {offsets = [8, 0], sizes = [8, 64], strides = [1, 1]} : vector<16x64xf32> to vector<8x64xf32>
    %417 = arith.addf %396, %416 : vector<8x64xf32>
    %418 = arith.negf %417 : vector<8x64xf32>
    %419 = math.exp %418 : vector<8x64xf32>
    %cst_120 = arith.constant 1.000000e+00 : f32
    %420 = vector.broadcast %cst_120 : f32 to vector<8x64xf32>
    %421 = arith.addf %420, %419 : vector<8x64xf32>
    %422 = arith.divf %420, %421 : vector<8x64xf32>
    %423 = vector.extract_strided_slice %422 {offsets = [0, 0], sizes = [8, 32], strides = [1, 1]} : vector<8x64xf32> to vector<8x32xf32>
    %424 = vector.extract_strided_slice %422 {offsets = [0, 32], sizes = [8, 32], strides = [1, 1]} : vector<8x64xf32> to vector<8x32xf32>
    %425 = vector.extract_strided_slice %354 {offsets = [8, 0], sizes = [8, 32], strides = [1, 1]} : vector<16x32xf32> to vector<8x32xf32>
    %426 = arith.mulf %424, %425 : vector<8x32xf32>
    %427 = arith.addf %415, %426 : vector<8x32xf32>
    %428 = math.tanh %427 : vector<8x32xf32>
    %cst_121 = arith.constant 1.000000e+00 : f32
    %429 = vector.broadcast %cst_121 : f32 to vector<8x32xf32>
    %430 = arith.subf %429, %423 : vector<8x32xf32>
    %431 = arith.mulf %430, %309 : vector<8x32xf32>
    %432 = arith.mulf %423, %428 : vector<8x32xf32>
    %433 = arith.addf %431, %432 : vector<8x32xf32>
    %cst_122 = arith.constant dense<0.000000e+00> : vector<8x96xf32>
    %434 = tpu.matmul %374, %10, %cst_122 {dimension_numbers = #tpu.dot_dimension_numbers<[1], [0], [0], [1], [0, 0, 1, 1], [], []>} : vector<8x32xf32>, vector<32x96xf32>, vector<8x96xf32> -> vector<8x96xf32>
    %435 = vector.broadcast %14 : vector<1x96xf32> to vector<8x96xf32>
    %436 = arith.addf %434, %435 : vector<8x96xf32>
    %cst_123 = arith.constant dense<0.000000e+00> : vector<8x96xf32>
    %437 = tpu.matmul %433, %12, %cst_123 {dimension_numbers = #tpu.dot_dimension_numbers<[1], [0], [0], [1], [0, 0, 1, 1], [], []>} : vector<8x32xf32>, vector<32x96xf32>, vector<8x96xf32> -> vector<8x96xf32>
    %438 = vector.broadcast %16 : vector<1x96xf32> to vector<8x96xf32>
    %439 = arith.addf %437, %438 : vector<8x96xf32>
    %440 = tpu.concatenate %436, %439 in 0 : vector<8x96xf32>, vector<8x96xf32> -> vector<16x96xf32>
    %441 = vector.extract_strided_slice %440 {offsets = [0, 0], sizes = [16, 64], strides = [1, 1]} : vector<16x96xf32> to vector<16x64xf32>
    %cst_124 = arith.constant dense<0.000000e+00> : vector<16xf32>
    %442 = vector.multi_reduction <add>, %441, %cst_124 [1] : vector<16x64xf32> to vector<16xf32>
    %443 = vector.shape_cast %442 : vector<16xf32> to vector<16x1xf32>
    %cst_125 = arith.constant 6.400000e+01 : f32
    %444 = vector.broadcast %cst_125 : f32 to vector<16x1xf32>
    %445 = arith.divf %443, %444 : vector<16x1xf32>
    %446 = vector.broadcast %445 : vector<16x1xf32> to vector<16x64xf32>
    %447 = arith.subf %441, %446 : vector<16x64xf32>
    %448 = arith.mulf %447, %447 : vector<16x64xf32>
    %cst_126 = arith.constant dense<0.000000e+00> : vector<16xf32>
    %449 = vector.multi_reduction <add>, %448, %cst_126 [1] : vector<16x64xf32> to vector<16xf32>
    %450 = vector.shape_cast %449 : vector<16xf32> to vector<16x1xf32>
    %cst_127 = arith.constant 6.400000e+01 : f32
    %451 = vector.broadcast %cst_127 : f32 to vector<16x1xf32>
    %452 = arith.divf %450, %451 : vector<16x1xf32>
    %453 = vector.broadcast %445 : vector<16x1xf32> to vector<16x64xf32>
    %454 = arith.subf %441, %453 : vector<16x64xf32>
    %cst_128 = arith.constant 9.99999974E-6 : f32
    %455 = vector.broadcast %cst_128 : f32 to vector<16x1xf32>
    %456 = arith.addf %452, %455 : vector<16x1xf32>
    %457 = math.rsqrt %456 : vector<16x1xf32>
    %458 = vector.broadcast %457 : vector<16x1xf32> to vector<16x64xf32>
    %459 = arith.mulf %454, %458 : vector<16x64xf32>
    %460 = vector.extract_strided_slice %440 {offsets = [0, 64], sizes = [16, 32], strides = [1, 1]} : vector<16x96xf32> to vector<16x32xf32>
    %cst_129 = arith.constant dense<0.000000e+00> : vector<16xf32>
    %461 = vector.multi_reduction <add>, %460, %cst_129 [1] : vector<16x32xf32> to vector<16xf32>
    %462 = vector.shape_cast %461 : vector<16xf32> to vector<16x1xf32>
    %cst_130 = arith.constant 3.200000e+01 : f32
    %463 = vector.broadcast %cst_130 : f32 to vector<16x1xf32>
    %464 = arith.divf %462, %463 : vector<16x1xf32>
    %465 = vector.broadcast %464 : vector<16x1xf32> to vector<16x32xf32>
    %466 = arith.subf %460, %465 : vector<16x32xf32>
    %467 = arith.mulf %466, %466 : vector<16x32xf32>
    %cst_131 = arith.constant dense<0.000000e+00> : vector<16xf32>
    %468 = vector.multi_reduction <add>, %467, %cst_131 [1] : vector<16x32xf32> to vector<16xf32>
    %469 = vector.shape_cast %468 : vector<16xf32> to vector<16x1xf32>
    %cst_132 = arith.constant 3.200000e+01 : f32
    %470 = vector.broadcast %cst_132 : f32 to vector<16x1xf32>
    %471 = arith.divf %469, %470 : vector<16x1xf32>
    %472 = vector.broadcast %464 : vector<16x1xf32> to vector<16x32xf32>
    %473 = arith.subf %460, %472 : vector<16x32xf32>
    %cst_133 = arith.constant 9.99999974E-6 : f32
    %474 = vector.broadcast %cst_133 : f32 to vector<16x1xf32>
    %475 = arith.addf %471, %474 : vector<16x1xf32>
    %476 = math.rsqrt %475 : vector<16x1xf32>
    %477 = vector.broadcast %476 : vector<16x1xf32> to vector<16x32xf32>
    %478 = arith.mulf %473, %477 : vector<16x32xf32>
    %479 = vector.extract_strided_slice %42 {offsets = [24, 0], sizes = [8, 64], strides = [1, 1]} : vector<64x64xf32> to vector<8x64xf32>
    %480 = vector.extract_strided_slice %61 {offsets = [24, 0], sizes = [8, 32], strides = [1, 1]} : vector<64x32xf32> to vector<8x32xf32>
    %481 = vector.extract_strided_slice %459 {offsets = [0, 0], sizes = [8, 64], strides = [1, 1]} : vector<16x64xf32> to vector<8x64xf32>
    %482 = arith.addf %479, %481 : vector<8x64xf32>
    %483 = arith.negf %482 : vector<8x64xf32>
    %484 = math.exp %483 : vector<8x64xf32>
    %cst_134 = arith.constant 1.000000e+00 : f32
    %485 = vector.broadcast %cst_134 : f32 to vector<8x64xf32>
    %486 = arith.addf %485, %484 : vector<8x64xf32>
    %487 = arith.divf %485, %486 : vector<8x64xf32>
    %488 = vector.extract_strided_slice %487 {offsets = [0, 0], sizes = [8, 32], strides = [1, 1]} : vector<8x64xf32> to vector<8x32xf32>
    %489 = vector.extract_strided_slice %487 {offsets = [0, 32], sizes = [8, 32], strides = [1, 1]} : vector<8x64xf32> to vector<8x32xf32>
    %490 = vector.extract_strided_slice %478 {offsets = [0, 0], sizes = [8, 32], strides = [1, 1]} : vector<16x32xf32> to vector<8x32xf32>
    %491 = arith.mulf %489, %490 : vector<8x32xf32>
    %492 = arith.addf %480, %491 : vector<8x32xf32>
    %493 = math.tanh %492 : vector<8x32xf32>
    %cst_135 = arith.constant 1.000000e+00 : f32
    %494 = vector.broadcast %cst_135 : f32 to vector<8x32xf32>
    %495 = arith.subf %494, %488 : vector<8x32xf32>
    %496 = arith.mulf %495, %374 : vector<8x32xf32>
    %497 = arith.mulf %488, %493 : vector<8x32xf32>
    %498 = arith.addf %496, %497 : vector<8x32xf32>
    %cst_136 = arith.constant dense<0.000000e+00> : vector<8x96xf32>
    %499 = tpu.matmul %498, %4, %cst_136 {dimension_numbers = #tpu.dot_dimension_numbers<[1], [0], [0], [1], [0, 0, 1, 1], [], []>} : vector<8x32xf32>, vector<32x96xf32>, vector<8x96xf32> -> vector<8x96xf32>
    %500 = vector.broadcast %8 : vector<1x96xf32> to vector<8x96xf32>
    %501 = arith.addf %499, %500 : vector<8x96xf32>
    %502 = vector.extract_strided_slice %501 {offsets = [0, 0], sizes = [8, 64], strides = [1, 1]} : vector<8x96xf32> to vector<8x64xf32>
    %cst_137 = arith.constant dense<0.000000e+00> : vector<8xf32>
    %503 = vector.multi_reduction <add>, %502, %cst_137 [1] : vector<8x64xf32> to vector<8xf32>
    %504 = vector.shape_cast %503 : vector<8xf32> to vector<8x1xf32>
    %cst_138 = arith.constant 6.400000e+01 : f32
    %505 = vector.broadcast %cst_138 : f32 to vector<8x1xf32>
    %506 = arith.divf %504, %505 : vector<8x1xf32>
    %507 = vector.broadcast %506 : vector<8x1xf32> to vector<8x64xf32>
    %508 = arith.subf %502, %507 : vector<8x64xf32>
    %509 = arith.mulf %508, %508 : vector<8x64xf32>
    %cst_139 = arith.constant dense<0.000000e+00> : vector<8xf32>
    %510 = vector.multi_reduction <add>, %509, %cst_139 [1] : vector<8x64xf32> to vector<8xf32>
    %511 = vector.shape_cast %510 : vector<8xf32> to vector<8x1xf32>
    %cst_140 = arith.constant 6.400000e+01 : f32
    %512 = vector.broadcast %cst_140 : f32 to vector<8x1xf32>
    %513 = arith.divf %511, %512 : vector<8x1xf32>
    %514 = vector.broadcast %506 : vector<8x1xf32> to vector<8x64xf32>
    %515 = arith.subf %502, %514 : vector<8x64xf32>
    %cst_141 = arith.constant 9.99999974E-6 : f32
    %516 = vector.broadcast %cst_141 : f32 to vector<8x1xf32>
    %517 = arith.addf %513, %516 : vector<8x1xf32>
    %518 = math.rsqrt %517 : vector<8x1xf32>
    %519 = vector.broadcast %518 : vector<8x1xf32> to vector<8x64xf32>
    %520 = arith.mulf %515, %519 : vector<8x64xf32>
    %521 = vector.extract_strided_slice %501 {offsets = [0, 64], sizes = [8, 32], strides = [1, 1]} : vector<8x96xf32> to vector<8x32xf32>
    %cst_142 = arith.constant dense<0.000000e+00> : vector<8xf32>
    %522 = vector.multi_reduction <add>, %521, %cst_142 [1] : vector<8x32xf32> to vector<8xf32>
    %523 = vector.shape_cast %522 : vector<8xf32> to vector<8x1xf32>
    %cst_143 = arith.constant 3.200000e+01 : f32
    %524 = vector.broadcast %cst_143 : f32 to vector<8x1xf32>
    %525 = arith.divf %523, %524 : vector<8x1xf32>
    %526 = vector.broadcast %525 : vector<8x1xf32> to vector<8x32xf32>
    %527 = arith.subf %521, %526 : vector<8x32xf32>
    %528 = arith.mulf %527, %527 : vector<8x32xf32>
    %cst_144 = arith.constant dense<0.000000e+00> : vector<8xf32>
    %529 = vector.multi_reduction <add>, %528, %cst_144 [1] : vector<8x32xf32> to vector<8xf32>
    %530 = vector.shape_cast %529 : vector<8xf32> to vector<8x1xf32>
    %cst_145 = arith.constant 3.200000e+01 : f32
    %531 = vector.broadcast %cst_145 : f32 to vector<8x1xf32>
    %532 = arith.divf %530, %531 : vector<8x1xf32>
    %533 = vector.broadcast %525 : vector<8x1xf32> to vector<8x32xf32>
    %534 = arith.subf %521, %533 : vector<8x32xf32>
    %cst_146 = arith.constant 9.99999974E-6 : f32
    %535 = vector.broadcast %cst_146 : f32 to vector<8x1xf32>
    %536 = arith.addf %532, %535 : vector<8x1xf32>
    %537 = math.rsqrt %536 : vector<8x1xf32>
    %538 = vector.broadcast %537 : vector<8x1xf32> to vector<8x32xf32>
    %539 = arith.mulf %534, %538 : vector<8x32xf32>
    %540 = vector.extract_strided_slice %459 {offsets = [8, 0], sizes = [8, 64], strides = [1, 1]} : vector<16x64xf32> to vector<8x64xf32>
    %541 = arith.addf %520, %540 : vector<8x64xf32>
    %542 = arith.negf %541 : vector<8x64xf32>
    %543 = math.exp %542 : vector<8x64xf32>
    %cst_147 = arith.constant 1.000000e+00 : f32
    %544 = vector.broadcast %cst_147 : f32 to vector<8x64xf32>
    %545 = arith.addf %544, %543 : vector<8x64xf32>
    %546 = arith.divf %544, %545 : vector<8x64xf32>
    %547 = vector.extract_strided_slice %546 {offsets = [0, 0], sizes = [8, 32], strides = [1, 1]} : vector<8x64xf32> to vector<8x32xf32>
    %548 = vector.extract_strided_slice %546 {offsets = [0, 32], sizes = [8, 32], strides = [1, 1]} : vector<8x64xf32> to vector<8x32xf32>
    %549 = vector.extract_strided_slice %478 {offsets = [8, 0], sizes = [8, 32], strides = [1, 1]} : vector<16x32xf32> to vector<8x32xf32>
    %550 = arith.mulf %548, %549 : vector<8x32xf32>
    %551 = arith.addf %539, %550 : vector<8x32xf32>
    %552 = math.tanh %551 : vector<8x32xf32>
    %cst_148 = arith.constant 1.000000e+00 : f32
    %553 = vector.broadcast %cst_148 : f32 to vector<8x32xf32>
    %554 = arith.subf %553, %547 : vector<8x32xf32>
    %555 = arith.mulf %554, %433 : vector<8x32xf32>
    %556 = arith.mulf %547, %552 : vector<8x32xf32>
    %557 = arith.addf %555, %556 : vector<8x32xf32>
    %cst_149 = arith.constant dense<0.000000e+00> : vector<8x96xf32>
    %558 = tpu.matmul %498, %10, %cst_149 {dimension_numbers = #tpu.dot_dimension_numbers<[1], [0], [0], [1], [0, 0, 1, 1], [], []>} : vector<8x32xf32>, vector<32x96xf32>, vector<8x96xf32> -> vector<8x96xf32>
    %559 = vector.broadcast %14 : vector<1x96xf32> to vector<8x96xf32>
    %560 = arith.addf %558, %559 : vector<8x96xf32>
    %cst_150 = arith.constant dense<0.000000e+00> : vector<8x96xf32>
    %561 = tpu.matmul %557, %12, %cst_150 {dimension_numbers = #tpu.dot_dimension_numbers<[1], [0], [0], [1], [0, 0, 1, 1], [], []>} : vector<8x32xf32>, vector<32x96xf32>, vector<8x96xf32> -> vector<8x96xf32>
    %562 = vector.broadcast %16 : vector<1x96xf32> to vector<8x96xf32>
    %563 = arith.addf %561, %562 : vector<8x96xf32>
    %564 = tpu.concatenate %560, %563 in 0 : vector<8x96xf32>, vector<8x96xf32> -> vector<16x96xf32>
    %565 = vector.extract_strided_slice %564 {offsets = [0, 0], sizes = [16, 64], strides = [1, 1]} : vector<16x96xf32> to vector<16x64xf32>
    %cst_151 = arith.constant dense<0.000000e+00> : vector<16xf32>
    %566 = vector.multi_reduction <add>, %565, %cst_151 [1] : vector<16x64xf32> to vector<16xf32>
    %567 = vector.shape_cast %566 : vector<16xf32> to vector<16x1xf32>
    %cst_152 = arith.constant 6.400000e+01 : f32
    %568 = vector.broadcast %cst_152 : f32 to vector<16x1xf32>
    %569 = arith.divf %567, %568 : vector<16x1xf32>
    %570 = vector.broadcast %569 : vector<16x1xf32> to vector<16x64xf32>
    %571 = arith.subf %565, %570 : vector<16x64xf32>
    %572 = arith.mulf %571, %571 : vector<16x64xf32>
    %cst_153 = arith.constant dense<0.000000e+00> : vector<16xf32>
    %573 = vector.multi_reduction <add>, %572, %cst_153 [1] : vector<16x64xf32> to vector<16xf32>
    %574 = vector.shape_cast %573 : vector<16xf32> to vector<16x1xf32>
    %cst_154 = arith.constant 6.400000e+01 : f32
    %575 = vector.broadcast %cst_154 : f32 to vector<16x1xf32>
    %576 = arith.divf %574, %575 : vector<16x1xf32>
    %577 = vector.broadcast %569 : vector<16x1xf32> to vector<16x64xf32>
    %578 = arith.subf %565, %577 : vector<16x64xf32>
    %cst_155 = arith.constant 9.99999974E-6 : f32
    %579 = vector.broadcast %cst_155 : f32 to vector<16x1xf32>
    %580 = arith.addf %576, %579 : vector<16x1xf32>
    %581 = math.rsqrt %580 : vector<16x1xf32>
    %582 = vector.broadcast %581 : vector<16x1xf32> to vector<16x64xf32>
    %583 = arith.mulf %578, %582 : vector<16x64xf32>
    %584 = vector.extract_strided_slice %564 {offsets = [0, 64], sizes = [16, 32], strides = [1, 1]} : vector<16x96xf32> to vector<16x32xf32>
    %cst_156 = arith.constant dense<0.000000e+00> : vector<16xf32>
    %585 = vector.multi_reduction <add>, %584, %cst_156 [1] : vector<16x32xf32> to vector<16xf32>
    %586 = vector.shape_cast %585 : vector<16xf32> to vector<16x1xf32>
    %cst_157 = arith.constant 3.200000e+01 : f32
    %587 = vector.broadcast %cst_157 : f32 to vector<16x1xf32>
    %588 = arith.divf %586, %587 : vector<16x1xf32>
    %589 = vector.broadcast %588 : vector<16x1xf32> to vector<16x32xf32>
    %590 = arith.subf %584, %589 : vector<16x32xf32>
    %591 = arith.mulf %590, %590 : vector<16x32xf32>
    %cst_158 = arith.constant dense<0.000000e+00> : vector<16xf32>
    %592 = vector.multi_reduction <add>, %591, %cst_158 [1] : vector<16x32xf32> to vector<16xf32>
    %593 = vector.shape_cast %592 : vector<16xf32> to vector<16x1xf32>
    %cst_159 = arith.constant 3.200000e+01 : f32
    %594 = vector.broadcast %cst_159 : f32 to vector<16x1xf32>
    %595 = arith.divf %593, %594 : vector<16x1xf32>
    %596 = vector.broadcast %588 : vector<16x1xf32> to vector<16x32xf32>
    %597 = arith.subf %584, %596 : vector<16x32xf32>
    %cst_160 = arith.constant 9.99999974E-6 : f32
    %598 = vector.broadcast %cst_160 : f32 to vector<16x1xf32>
    %599 = arith.addf %595, %598 : vector<16x1xf32>
    %600 = math.rsqrt %599 : vector<16x1xf32>
    %601 = vector.broadcast %600 : vector<16x1xf32> to vector<16x32xf32>
    %602 = arith.mulf %597, %601 : vector<16x32xf32>
    %603 = vector.extract_strided_slice %42 {offsets = [32, 0], sizes = [8, 64], strides = [1, 1]} : vector<64x64xf32> to vector<8x64xf32>
    %604 = vector.extract_strided_slice %61 {offsets = [32, 0], sizes = [8, 32], strides = [1, 1]} : vector<64x32xf32> to vector<8x32xf32>
    %605 = vector.extract_strided_slice %583 {offsets = [0, 0], sizes = [8, 64], strides = [1, 1]} : vector<16x64xf32> to vector<8x64xf32>
    %606 = arith.addf %603, %605 : vector<8x64xf32>
    %607 = arith.negf %606 : vector<8x64xf32>
    %608 = math.exp %607 : vector<8x64xf32>
    %cst_161 = arith.constant 1.000000e+00 : f32
    %609 = vector.broadcast %cst_161 : f32 to vector<8x64xf32>
    %610 = arith.addf %609, %608 : vector<8x64xf32>
    %611 = arith.divf %609, %610 : vector<8x64xf32>
    %612 = vector.extract_strided_slice %611 {offsets = [0, 0], sizes = [8, 32], strides = [1, 1]} : vector<8x64xf32> to vector<8x32xf32>
    %613 = vector.extract_strided_slice %611 {offsets = [0, 32], sizes = [8, 32], strides = [1, 1]} : vector<8x64xf32> to vector<8x32xf32>
    %614 = vector.extract_strided_slice %602 {offsets = [0, 0], sizes = [8, 32], strides = [1, 1]} : vector<16x32xf32> to vector<8x32xf32>
    %615 = arith.mulf %613, %614 : vector<8x32xf32>
    %616 = arith.addf %604, %615 : vector<8x32xf32>
    %617 = math.tanh %616 : vector<8x32xf32>
    %cst_162 = arith.constant 1.000000e+00 : f32
    %618 = vector.broadcast %cst_162 : f32 to vector<8x32xf32>
    %619 = arith.subf %618, %612 : vector<8x32xf32>
    %620 = arith.mulf %619, %498 : vector<8x32xf32>
    %621 = arith.mulf %612, %617 : vector<8x32xf32>
    %622 = arith.addf %620, %621 : vector<8x32xf32>
    %cst_163 = arith.constant dense<0.000000e+00> : vector<8x96xf32>
    %623 = tpu.matmul %622, %4, %cst_163 {dimension_numbers = #tpu.dot_dimension_numbers<[1], [0], [0], [1], [0, 0, 1, 1], [], []>} : vector<8x32xf32>, vector<32x96xf32>, vector<8x96xf32> -> vector<8x96xf32>
    %624 = vector.broadcast %8 : vector<1x96xf32> to vector<8x96xf32>
    %625 = arith.addf %623, %624 : vector<8x96xf32>
    %626 = vector.extract_strided_slice %625 {offsets = [0, 0], sizes = [8, 64], strides = [1, 1]} : vector<8x96xf32> to vector<8x64xf32>
    %cst_164 = arith.constant dense<0.000000e+00> : vector<8xf32>
    %627 = vector.multi_reduction <add>, %626, %cst_164 [1] : vector<8x64xf32> to vector<8xf32>
    %628 = vector.shape_cast %627 : vector<8xf32> to vector<8x1xf32>
    %cst_165 = arith.constant 6.400000e+01 : f32
    %629 = vector.broadcast %cst_165 : f32 to vector<8x1xf32>
    %630 = arith.divf %628, %629 : vector<8x1xf32>
    %631 = vector.broadcast %630 : vector<8x1xf32> to vector<8x64xf32>
    %632 = arith.subf %626, %631 : vector<8x64xf32>
    %633 = arith.mulf %632, %632 : vector<8x64xf32>
    %cst_166 = arith.constant dense<0.000000e+00> : vector<8xf32>
    %634 = vector.multi_reduction <add>, %633, %cst_166 [1] : vector<8x64xf32> to vector<8xf32>
    %635 = vector.shape_cast %634 : vector<8xf32> to vector<8x1xf32>
    %cst_167 = arith.constant 6.400000e+01 : f32
    %636 = vector.broadcast %cst_167 : f32 to vector<8x1xf32>
    %637 = arith.divf %635, %636 : vector<8x1xf32>
    %638 = vector.broadcast %630 : vector<8x1xf32> to vector<8x64xf32>
    %639 = arith.subf %626, %638 : vector<8x64xf32>
    %cst_168 = arith.constant 9.99999974E-6 : f32
    %640 = vector.broadcast %cst_168 : f32 to vector<8x1xf32>
    %641 = arith.addf %637, %640 : vector<8x1xf32>
    %642 = math.rsqrt %641 : vector<8x1xf32>
    %643 = vector.broadcast %642 : vector<8x1xf32> to vector<8x64xf32>
    %644 = arith.mulf %639, %643 : vector<8x64xf32>
    %645 = vector.extract_strided_slice %625 {offsets = [0, 64], sizes = [8, 32], strides = [1, 1]} : vector<8x96xf32> to vector<8x32xf32>
    %cst_169 = arith.constant dense<0.000000e+00> : vector<8xf32>
    %646 = vector.multi_reduction <add>, %645, %cst_169 [1] : vector<8x32xf32> to vector<8xf32>
    %647 = vector.shape_cast %646 : vector<8xf32> to vector<8x1xf32>
    %cst_170 = arith.constant 3.200000e+01 : f32
    %648 = vector.broadcast %cst_170 : f32 to vector<8x1xf32>
    %649 = arith.divf %647, %648 : vector<8x1xf32>
    %650 = vector.broadcast %649 : vector<8x1xf32> to vector<8x32xf32>
    %651 = arith.subf %645, %650 : vector<8x32xf32>
    %652 = arith.mulf %651, %651 : vector<8x32xf32>
    %cst_171 = arith.constant dense<0.000000e+00> : vector<8xf32>
    %653 = vector.multi_reduction <add>, %652, %cst_171 [1] : vector<8x32xf32> to vector<8xf32>
    %654 = vector.shape_cast %653 : vector<8xf32> to vector<8x1xf32>
    %cst_172 = arith.constant 3.200000e+01 : f32
    %655 = vector.broadcast %cst_172 : f32 to vector<8x1xf32>
    %656 = arith.divf %654, %655 : vector<8x1xf32>
    %657 = vector.broadcast %649 : vector<8x1xf32> to vector<8x32xf32>
    %658 = arith.subf %645, %657 : vector<8x32xf32>
    %cst_173 = arith.constant 9.99999974E-6 : f32
    %659 = vector.broadcast %cst_173 : f32 to vector<8x1xf32>
    %660 = arith.addf %656, %659 : vector<8x1xf32>
    %661 = math.rsqrt %660 : vector<8x1xf32>
    %662 = vector.broadcast %661 : vector<8x1xf32> to vector<8x32xf32>
    %663 = arith.mulf %658, %662 : vector<8x32xf32>
    %664 = vector.extract_strided_slice %583 {offsets = [8, 0], sizes = [8, 64], strides = [1, 1]} : vector<16x64xf32> to vector<8x64xf32>
    %665 = arith.addf %644, %664 : vector<8x64xf32>
    %666 = arith.negf %665 : vector<8x64xf32>
    %667 = math.exp %666 : vector<8x64xf32>
    %cst_174 = arith.constant 1.000000e+00 : f32
    %668 = vector.broadcast %cst_174 : f32 to vector<8x64xf32>
    %669 = arith.addf %668, %667 : vector<8x64xf32>
    %670 = arith.divf %668, %669 : vector<8x64xf32>
    %671 = vector.extract_strided_slice %670 {offsets = [0, 0], sizes = [8, 32], strides = [1, 1]} : vector<8x64xf32> to vector<8x32xf32>
    %672 = vector.extract_strided_slice %670 {offsets = [0, 32], sizes = [8, 32], strides = [1, 1]} : vector<8x64xf32> to vector<8x32xf32>
    %673 = vector.extract_strided_slice %602 {offsets = [8, 0], sizes = [8, 32], strides = [1, 1]} : vector<16x32xf32> to vector<8x32xf32>
    %674 = arith.mulf %672, %673 : vector<8x32xf32>
    %675 = arith.addf %663, %674 : vector<8x32xf32>
    %676 = math.tanh %675 : vector<8x32xf32>
    %cst_175 = arith.constant 1.000000e+00 : f32
    %677 = vector.broadcast %cst_175 : f32 to vector<8x32xf32>
    %678 = arith.subf %677, %671 : vector<8x32xf32>
    %679 = arith.mulf %678, %557 : vector<8x32xf32>
    %680 = arith.mulf %671, %676 : vector<8x32xf32>
    %681 = arith.addf %679, %680 : vector<8x32xf32>
    %cst_176 = arith.constant dense<0.000000e+00> : vector<8x96xf32>
    %682 = tpu.matmul %622, %10, %cst_176 {dimension_numbers = #tpu.dot_dimension_numbers<[1], [0], [0], [1], [0, 0, 1, 1], [], []>} : vector<8x32xf32>, vector<32x96xf32>, vector<8x96xf32> -> vector<8x96xf32>
    %683 = vector.broadcast %14 : vector<1x96xf32> to vector<8x96xf32>
    %684 = arith.addf %682, %683 : vector<8x96xf32>
    %cst_177 = arith.constant dense<0.000000e+00> : vector<8x96xf32>
    %685 = tpu.matmul %681, %12, %cst_177 {dimension_numbers = #tpu.dot_dimension_numbers<[1], [0], [0], [1], [0, 0, 1, 1], [], []>} : vector<8x32xf32>, vector<32x96xf32>, vector<8x96xf32> -> vector<8x96xf32>
    %686 = vector.broadcast %16 : vector<1x96xf32> to vector<8x96xf32>
    %687 = arith.addf %685, %686 : vector<8x96xf32>
    %688 = tpu.concatenate %684, %687 in 0 : vector<8x96xf32>, vector<8x96xf32> -> vector<16x96xf32>
    %689 = vector.extract_strided_slice %688 {offsets = [0, 0], sizes = [16, 64], strides = [1, 1]} : vector<16x96xf32> to vector<16x64xf32>
    %cst_178 = arith.constant dense<0.000000e+00> : vector<16xf32>
    %690 = vector.multi_reduction <add>, %689, %cst_178 [1] : vector<16x64xf32> to vector<16xf32>
    %691 = vector.shape_cast %690 : vector<16xf32> to vector<16x1xf32>
    %cst_179 = arith.constant 6.400000e+01 : f32
    %692 = vector.broadcast %cst_179 : f32 to vector<16x1xf32>
    %693 = arith.divf %691, %692 : vector<16x1xf32>
    %694 = vector.broadcast %693 : vector<16x1xf32> to vector<16x64xf32>
    %695 = arith.subf %689, %694 : vector<16x64xf32>
    %696 = arith.mulf %695, %695 : vector<16x64xf32>
    %cst_180 = arith.constant dense<0.000000e+00> : vector<16xf32>
    %697 = vector.multi_reduction <add>, %696, %cst_180 [1] : vector<16x64xf32> to vector<16xf32>
    %698 = vector.shape_cast %697 : vector<16xf32> to vector<16x1xf32>
    %cst_181 = arith.constant 6.400000e+01 : f32
    %699 = vector.broadcast %cst_181 : f32 to vector<16x1xf32>
    %700 = arith.divf %698, %699 : vector<16x1xf32>
    %701 = vector.broadcast %693 : vector<16x1xf32> to vector<16x64xf32>
    %702 = arith.subf %689, %701 : vector<16x64xf32>
    %cst_182 = arith.constant 9.99999974E-6 : f32
    %703 = vector.broadcast %cst_182 : f32 to vector<16x1xf32>
    %704 = arith.addf %700, %703 : vector<16x1xf32>
    %705 = math.rsqrt %704 : vector<16x1xf32>
    %706 = vector.broadcast %705 : vector<16x1xf32> to vector<16x64xf32>
    %707 = arith.mulf %702, %706 : vector<16x64xf32>
    %708 = vector.extract_strided_slice %688 {offsets = [0, 64], sizes = [16, 32], strides = [1, 1]} : vector<16x96xf32> to vector<16x32xf32>
    %cst_183 = arith.constant dense<0.000000e+00> : vector<16xf32>
    %709 = vector.multi_reduction <add>, %708, %cst_183 [1] : vector<16x32xf32> to vector<16xf32>
    %710 = vector.shape_cast %709 : vector<16xf32> to vector<16x1xf32>
    %cst_184 = arith.constant 3.200000e+01 : f32
    %711 = vector.broadcast %cst_184 : f32 to vector<16x1xf32>
    %712 = arith.divf %710, %711 : vector<16x1xf32>
    %713 = vector.broadcast %712 : vector<16x1xf32> to vector<16x32xf32>
    %714 = arith.subf %708, %713 : vector<16x32xf32>
    %715 = arith.mulf %714, %714 : vector<16x32xf32>
    %cst_185 = arith.constant dense<0.000000e+00> : vector<16xf32>
    %716 = vector.multi_reduction <add>, %715, %cst_185 [1] : vector<16x32xf32> to vector<16xf32>
    %717 = vector.shape_cast %716 : vector<16xf32> to vector<16x1xf32>
    %cst_186 = arith.constant 3.200000e+01 : f32
    %718 = vector.broadcast %cst_186 : f32 to vector<16x1xf32>
    %719 = arith.divf %717, %718 : vector<16x1xf32>
    %720 = vector.broadcast %712 : vector<16x1xf32> to vector<16x32xf32>
    %721 = arith.subf %708, %720 : vector<16x32xf32>
    %cst_187 = arith.constant 9.99999974E-6 : f32
    %722 = vector.broadcast %cst_187 : f32 to vector<16x1xf32>
    %723 = arith.addf %719, %722 : vector<16x1xf32>
    %724 = math.rsqrt %723 : vector<16x1xf32>
    %725 = vector.broadcast %724 : vector<16x1xf32> to vector<16x32xf32>
    %726 = arith.mulf %721, %725 : vector<16x32xf32>
    %727 = vector.extract_strided_slice %42 {offsets = [40, 0], sizes = [8, 64], strides = [1, 1]} : vector<64x64xf32> to vector<8x64xf32>
    %728 = vector.extract_strided_slice %61 {offsets = [40, 0], sizes = [8, 32], strides = [1, 1]} : vector<64x32xf32> to vector<8x32xf32>
    %729 = vector.extract_strided_slice %707 {offsets = [0, 0], sizes = [8, 64], strides = [1, 1]} : vector<16x64xf32> to vector<8x64xf32>
    %730 = arith.addf %727, %729 : vector<8x64xf32>
    %731 = arith.negf %730 : vector<8x64xf32>
    %732 = math.exp %731 : vector<8x64xf32>
    %cst_188 = arith.constant 1.000000e+00 : f32
    %733 = vector.broadcast %cst_188 : f32 to vector<8x64xf32>
    %734 = arith.addf %733, %732 : vector<8x64xf32>
    %735 = arith.divf %733, %734 : vector<8x64xf32>
    %736 = vector.extract_strided_slice %735 {offsets = [0, 0], sizes = [8, 32], strides = [1, 1]} : vector<8x64xf32> to vector<8x32xf32>
    %737 = vector.extract_strided_slice %735 {offsets = [0, 32], sizes = [8, 32], strides = [1, 1]} : vector<8x64xf32> to vector<8x32xf32>
    %738 = vector.extract_strided_slice %726 {offsets = [0, 0], sizes = [8, 32], strides = [1, 1]} : vector<16x32xf32> to vector<8x32xf32>
    %739 = arith.mulf %737, %738 : vector<8x32xf32>
    %740 = arith.addf %728, %739 : vector<8x32xf32>
    %741 = math.tanh %740 : vector<8x32xf32>
    %cst_189 = arith.constant 1.000000e+00 : f32
    %742 = vector.broadcast %cst_189 : f32 to vector<8x32xf32>
    %743 = arith.subf %742, %736 : vector<8x32xf32>
    %744 = arith.mulf %743, %622 : vector<8x32xf32>
    %745 = arith.mulf %736, %741 : vector<8x32xf32>
    %746 = arith.addf %744, %745 : vector<8x32xf32>
    %cst_190 = arith.constant dense<0.000000e+00> : vector<8x96xf32>
    %747 = tpu.matmul %746, %4, %cst_190 {dimension_numbers = #tpu.dot_dimension_numbers<[1], [0], [0], [1], [0, 0, 1, 1], [], []>} : vector<8x32xf32>, vector<32x96xf32>, vector<8x96xf32> -> vector<8x96xf32>
    %748 = vector.broadcast %8 : vector<1x96xf32> to vector<8x96xf32>
    %749 = arith.addf %747, %748 : vector<8x96xf32>
    %750 = vector.extract_strided_slice %749 {offsets = [0, 0], sizes = [8, 64], strides = [1, 1]} : vector<8x96xf32> to vector<8x64xf32>
    %cst_191 = arith.constant dense<0.000000e+00> : vector<8xf32>
    %751 = vector.multi_reduction <add>, %750, %cst_191 [1] : vector<8x64xf32> to vector<8xf32>
    %752 = vector.shape_cast %751 : vector<8xf32> to vector<8x1xf32>
    %cst_192 = arith.constant 6.400000e+01 : f32
    %753 = vector.broadcast %cst_192 : f32 to vector<8x1xf32>
    %754 = arith.divf %752, %753 : vector<8x1xf32>
    %755 = vector.broadcast %754 : vector<8x1xf32> to vector<8x64xf32>
    %756 = arith.subf %750, %755 : vector<8x64xf32>
    %757 = arith.mulf %756, %756 : vector<8x64xf32>
    %cst_193 = arith.constant dense<0.000000e+00> : vector<8xf32>
    %758 = vector.multi_reduction <add>, %757, %cst_193 [1] : vector<8x64xf32> to vector<8xf32>
    %759 = vector.shape_cast %758 : vector<8xf32> to vector<8x1xf32>
    %cst_194 = arith.constant 6.400000e+01 : f32
    %760 = vector.broadcast %cst_194 : f32 to vector<8x1xf32>
    %761 = arith.divf %759, %760 : vector<8x1xf32>
    %762 = vector.broadcast %754 : vector<8x1xf32> to vector<8x64xf32>
    %763 = arith.subf %750, %762 : vector<8x64xf32>
    %cst_195 = arith.constant 9.99999974E-6 : f32
    %764 = vector.broadcast %cst_195 : f32 to vector<8x1xf32>
    %765 = arith.addf %761, %764 : vector<8x1xf32>
    %766 = math.rsqrt %765 : vector<8x1xf32>
    %767 = vector.broadcast %766 : vector<8x1xf32> to vector<8x64xf32>
    %768 = arith.mulf %763, %767 : vector<8x64xf32>
    %769 = vector.extract_strided_slice %749 {offsets = [0, 64], sizes = [8, 32], strides = [1, 1]} : vector<8x96xf32> to vector<8x32xf32>
    %cst_196 = arith.constant dense<0.000000e+00> : vector<8xf32>
    %770 = vector.multi_reduction <add>, %769, %cst_196 [1] : vector<8x32xf32> to vector<8xf32>
    %771 = vector.shape_cast %770 : vector<8xf32> to vector<8x1xf32>
    %cst_197 = arith.constant 3.200000e+01 : f32
    %772 = vector.broadcast %cst_197 : f32 to vector<8x1xf32>
    %773 = arith.divf %771, %772 : vector<8x1xf32>
    %774 = vector.broadcast %773 : vector<8x1xf32> to vector<8x32xf32>
    %775 = arith.subf %769, %774 : vector<8x32xf32>
    %776 = arith.mulf %775, %775 : vector<8x32xf32>
    %cst_198 = arith.constant dense<0.000000e+00> : vector<8xf32>
    %777 = vector.multi_reduction <add>, %776, %cst_198 [1] : vector<8x32xf32> to vector<8xf32>
    %778 = vector.shape_cast %777 : vector<8xf32> to vector<8x1xf32>
    %cst_199 = arith.constant 3.200000e+01 : f32
    %779 = vector.broadcast %cst_199 : f32 to vector<8x1xf32>
    %780 = arith.divf %778, %779 : vector<8x1xf32>
    %781 = vector.broadcast %773 : vector<8x1xf32> to vector<8x32xf32>
    %782 = arith.subf %769, %781 : vector<8x32xf32>
    %cst_200 = arith.constant 9.99999974E-6 : f32
    %783 = vector.broadcast %cst_200 : f32 to vector<8x1xf32>
    %784 = arith.addf %780, %783 : vector<8x1xf32>
    %785 = math.rsqrt %784 : vector<8x1xf32>
    %786 = vector.broadcast %785 : vector<8x1xf32> to vector<8x32xf32>
    %787 = arith.mulf %782, %786 : vector<8x32xf32>
    %788 = vector.extract_strided_slice %707 {offsets = [8, 0], sizes = [8, 64], strides = [1, 1]} : vector<16x64xf32> to vector<8x64xf32>
    %789 = arith.addf %768, %788 : vector<8x64xf32>
    %790 = arith.negf %789 : vector<8x64xf32>
    %791 = math.exp %790 : vector<8x64xf32>
    %cst_201 = arith.constant 1.000000e+00 : f32
    %792 = vector.broadcast %cst_201 : f32 to vector<8x64xf32>
    %793 = arith.addf %792, %791 : vector<8x64xf32>
    %794 = arith.divf %792, %793 : vector<8x64xf32>
    %795 = vector.extract_strided_slice %794 {offsets = [0, 0], sizes = [8, 32], strides = [1, 1]} : vector<8x64xf32> to vector<8x32xf32>
    %796 = vector.extract_strided_slice %794 {offsets = [0, 32], sizes = [8, 32], strides = [1, 1]} : vector<8x64xf32> to vector<8x32xf32>
    %797 = vector.extract_strided_slice %726 {offsets = [8, 0], sizes = [8, 32], strides = [1, 1]} : vector<16x32xf32> to vector<8x32xf32>
    %798 = arith.mulf %796, %797 : vector<8x32xf32>
    %799 = arith.addf %787, %798 : vector<8x32xf32>
    %800 = math.tanh %799 : vector<8x32xf32>
    %cst_202 = arith.constant 1.000000e+00 : f32
    %801 = vector.broadcast %cst_202 : f32 to vector<8x32xf32>
    %802 = arith.subf %801, %795 : vector<8x32xf32>
    %803 = arith.mulf %802, %681 : vector<8x32xf32>
    %804 = arith.mulf %795, %800 : vector<8x32xf32>
    %805 = arith.addf %803, %804 : vector<8x32xf32>
    %cst_203 = arith.constant dense<0.000000e+00> : vector<8x96xf32>
    %806 = tpu.matmul %746, %10, %cst_203 {dimension_numbers = #tpu.dot_dimension_numbers<[1], [0], [0], [1], [0, 0, 1, 1], [], []>} : vector<8x32xf32>, vector<32x96xf32>, vector<8x96xf32> -> vector<8x96xf32>
    %807 = vector.broadcast %14 : vector<1x96xf32> to vector<8x96xf32>
    %808 = arith.addf %806, %807 : vector<8x96xf32>
    %cst_204 = arith.constant dense<0.000000e+00> : vector<8x96xf32>
    %809 = tpu.matmul %805, %12, %cst_204 {dimension_numbers = #tpu.dot_dimension_numbers<[1], [0], [0], [1], [0, 0, 1, 1], [], []>} : vector<8x32xf32>, vector<32x96xf32>, vector<8x96xf32> -> vector<8x96xf32>
    %810 = vector.broadcast %16 : vector<1x96xf32> to vector<8x96xf32>
    %811 = arith.addf %809, %810 : vector<8x96xf32>
    %812 = tpu.concatenate %808, %811 in 0 : vector<8x96xf32>, vector<8x96xf32> -> vector<16x96xf32>
    %813 = vector.extract_strided_slice %812 {offsets = [0, 0], sizes = [16, 64], strides = [1, 1]} : vector<16x96xf32> to vector<16x64xf32>
    %cst_205 = arith.constant dense<0.000000e+00> : vector<16xf32>
    %814 = vector.multi_reduction <add>, %813, %cst_205 [1] : vector<16x64xf32> to vector<16xf32>
    %815 = vector.shape_cast %814 : vector<16xf32> to vector<16x1xf32>
    %cst_206 = arith.constant 6.400000e+01 : f32
    %816 = vector.broadcast %cst_206 : f32 to vector<16x1xf32>
    %817 = arith.divf %815, %816 : vector<16x1xf32>
    %818 = vector.broadcast %817 : vector<16x1xf32> to vector<16x64xf32>
    %819 = arith.subf %813, %818 : vector<16x64xf32>
    %820 = arith.mulf %819, %819 : vector<16x64xf32>
    %cst_207 = arith.constant dense<0.000000e+00> : vector<16xf32>
    %821 = vector.multi_reduction <add>, %820, %cst_207 [1] : vector<16x64xf32> to vector<16xf32>
    %822 = vector.shape_cast %821 : vector<16xf32> to vector<16x1xf32>
    %cst_208 = arith.constant 6.400000e+01 : f32
    %823 = vector.broadcast %cst_208 : f32 to vector<16x1xf32>
    %824 = arith.divf %822, %823 : vector<16x1xf32>
    %825 = vector.broadcast %817 : vector<16x1xf32> to vector<16x64xf32>
    %826 = arith.subf %813, %825 : vector<16x64xf32>
    %cst_209 = arith.constant 9.99999974E-6 : f32
    %827 = vector.broadcast %cst_209 : f32 to vector<16x1xf32>
    %828 = arith.addf %824, %827 : vector<16x1xf32>
    %829 = math.rsqrt %828 : vector<16x1xf32>
    %830 = vector.broadcast %829 : vector<16x1xf32> to vector<16x64xf32>
    %831 = arith.mulf %826, %830 : vector<16x64xf32>
    %832 = vector.extract_strided_slice %812 {offsets = [0, 64], sizes = [16, 32], strides = [1, 1]} : vector<16x96xf32> to vector<16x32xf32>
    %cst_210 = arith.constant dense<0.000000e+00> : vector<16xf32>
    %833 = vector.multi_reduction <add>, %832, %cst_210 [1] : vector<16x32xf32> to vector<16xf32>
    %834 = vector.shape_cast %833 : vector<16xf32> to vector<16x1xf32>
    %cst_211 = arith.constant 3.200000e+01 : f32
    %835 = vector.broadcast %cst_211 : f32 to vector<16x1xf32>
    %836 = arith.divf %834, %835 : vector<16x1xf32>
    %837 = vector.broadcast %836 : vector<16x1xf32> to vector<16x32xf32>
    %838 = arith.subf %832, %837 : vector<16x32xf32>
    %839 = arith.mulf %838, %838 : vector<16x32xf32>
    %cst_212 = arith.constant dense<0.000000e+00> : vector<16xf32>
    %840 = vector.multi_reduction <add>, %839, %cst_212 [1] : vector<16x32xf32> to vector<16xf32>
    %841 = vector.shape_cast %840 : vector<16xf32> to vector<16x1xf32>
    %cst_213 = arith.constant 3.200000e+01 : f32
    %842 = vector.broadcast %cst_213 : f32 to vector<16x1xf32>
    %843 = arith.divf %841, %842 : vector<16x1xf32>
    %844 = vector.broadcast %836 : vector<16x1xf32> to vector<16x32xf32>
    %845 = arith.subf %832, %844 : vector<16x32xf32>
    %cst_214 = arith.constant 9.99999974E-6 : f32
    %846 = vector.broadcast %cst_214 : f32 to vector<16x1xf32>
    %847 = arith.addf %843, %846 : vector<16x1xf32>
    %848 = math.rsqrt %847 : vector<16x1xf32>
    %849 = vector.broadcast %848 : vector<16x1xf32> to vector<16x32xf32>
    %850 = arith.mulf %845, %849 : vector<16x32xf32>
    %851 = vector.extract_strided_slice %42 {offsets = [48, 0], sizes = [8, 64], strides = [1, 1]} : vector<64x64xf32> to vector<8x64xf32>
    %852 = vector.extract_strided_slice %61 {offsets = [48, 0], sizes = [8, 32], strides = [1, 1]} : vector<64x32xf32> to vector<8x32xf32>
    %853 = vector.extract_strided_slice %831 {offsets = [0, 0], sizes = [8, 64], strides = [1, 1]} : vector<16x64xf32> to vector<8x64xf32>
    %854 = arith.addf %851, %853 : vector<8x64xf32>
    %855 = arith.negf %854 : vector<8x64xf32>
    %856 = math.exp %855 : vector<8x64xf32>
    %cst_215 = arith.constant 1.000000e+00 : f32
    %857 = vector.broadcast %cst_215 : f32 to vector<8x64xf32>
    %858 = arith.addf %857, %856 : vector<8x64xf32>
    %859 = arith.divf %857, %858 : vector<8x64xf32>
    %860 = vector.extract_strided_slice %859 {offsets = [0, 0], sizes = [8, 32], strides = [1, 1]} : vector<8x64xf32> to vector<8x32xf32>
    %861 = vector.extract_strided_slice %859 {offsets = [0, 32], sizes = [8, 32], strides = [1, 1]} : vector<8x64xf32> to vector<8x32xf32>
    %862 = vector.extract_strided_slice %850 {offsets = [0, 0], sizes = [8, 32], strides = [1, 1]} : vector<16x32xf32> to vector<8x32xf32>
    %863 = arith.mulf %861, %862 : vector<8x32xf32>
    %864 = arith.addf %852, %863 : vector<8x32xf32>
    %865 = math.tanh %864 : vector<8x32xf32>
    %cst_216 = arith.constant 1.000000e+00 : f32
    %866 = vector.broadcast %cst_216 : f32 to vector<8x32xf32>
    %867 = arith.subf %866, %860 : vector<8x32xf32>
    %868 = arith.mulf %867, %746 : vector<8x32xf32>
    %869 = arith.mulf %860, %865 : vector<8x32xf32>
    %870 = arith.addf %868, %869 : vector<8x32xf32>
    %cst_217 = arith.constant dense<0.000000e+00> : vector<8x96xf32>
    %871 = tpu.matmul %870, %4, %cst_217 {dimension_numbers = #tpu.dot_dimension_numbers<[1], [0], [0], [1], [0, 0, 1, 1], [], []>} : vector<8x32xf32>, vector<32x96xf32>, vector<8x96xf32> -> vector<8x96xf32>
    %872 = vector.broadcast %8 : vector<1x96xf32> to vector<8x96xf32>
    %873 = arith.addf %871, %872 : vector<8x96xf32>
    %874 = vector.extract_strided_slice %873 {offsets = [0, 0], sizes = [8, 64], strides = [1, 1]} : vector<8x96xf32> to vector<8x64xf32>
    %cst_218 = arith.constant dense<0.000000e+00> : vector<8xf32>
    %875 = vector.multi_reduction <add>, %874, %cst_218 [1] : vector<8x64xf32> to vector<8xf32>
    %876 = vector.shape_cast %875 : vector<8xf32> to vector<8x1xf32>
    %cst_219 = arith.constant 6.400000e+01 : f32
    %877 = vector.broadcast %cst_219 : f32 to vector<8x1xf32>
    %878 = arith.divf %876, %877 : vector<8x1xf32>
    %879 = vector.broadcast %878 : vector<8x1xf32> to vector<8x64xf32>
    %880 = arith.subf %874, %879 : vector<8x64xf32>
    %881 = arith.mulf %880, %880 : vector<8x64xf32>
    %cst_220 = arith.constant dense<0.000000e+00> : vector<8xf32>
    %882 = vector.multi_reduction <add>, %881, %cst_220 [1] : vector<8x64xf32> to vector<8xf32>
    %883 = vector.shape_cast %882 : vector<8xf32> to vector<8x1xf32>
    %cst_221 = arith.constant 6.400000e+01 : f32
    %884 = vector.broadcast %cst_221 : f32 to vector<8x1xf32>
    %885 = arith.divf %883, %884 : vector<8x1xf32>
    %886 = vector.broadcast %878 : vector<8x1xf32> to vector<8x64xf32>
    %887 = arith.subf %874, %886 : vector<8x64xf32>
    %cst_222 = arith.constant 9.99999974E-6 : f32
    %888 = vector.broadcast %cst_222 : f32 to vector<8x1xf32>
    %889 = arith.addf %885, %888 : vector<8x1xf32>
    %890 = math.rsqrt %889 : vector<8x1xf32>
    %891 = vector.broadcast %890 : vector<8x1xf32> to vector<8x64xf32>
    %892 = arith.mulf %887, %891 : vector<8x64xf32>
    %893 = vector.extract_strided_slice %873 {offsets = [0, 64], sizes = [8, 32], strides = [1, 1]} : vector<8x96xf32> to vector<8x32xf32>
    %cst_223 = arith.constant dense<0.000000e+00> : vector<8xf32>
    %894 = vector.multi_reduction <add>, %893, %cst_223 [1] : vector<8x32xf32> to vector<8xf32>
    %895 = vector.shape_cast %894 : vector<8xf32> to vector<8x1xf32>
    %cst_224 = arith.constant 3.200000e+01 : f32
    %896 = vector.broadcast %cst_224 : f32 to vector<8x1xf32>
    %897 = arith.divf %895, %896 : vector<8x1xf32>
    %898 = vector.broadcast %897 : vector<8x1xf32> to vector<8x32xf32>
    %899 = arith.subf %893, %898 : vector<8x32xf32>
    %900 = arith.mulf %899, %899 : vector<8x32xf32>
    %cst_225 = arith.constant dense<0.000000e+00> : vector<8xf32>
    %901 = vector.multi_reduction <add>, %900, %cst_225 [1] : vector<8x32xf32> to vector<8xf32>
    %902 = vector.shape_cast %901 : vector<8xf32> to vector<8x1xf32>
    %cst_226 = arith.constant 3.200000e+01 : f32
    %903 = vector.broadcast %cst_226 : f32 to vector<8x1xf32>
    %904 = arith.divf %902, %903 : vector<8x1xf32>
    %905 = vector.broadcast %897 : vector<8x1xf32> to vector<8x32xf32>
    %906 = arith.subf %893, %905 : vector<8x32xf32>
    %cst_227 = arith.constant 9.99999974E-6 : f32
    %907 = vector.broadcast %cst_227 : f32 to vector<8x1xf32>
    %908 = arith.addf %904, %907 : vector<8x1xf32>
    %909 = math.rsqrt %908 : vector<8x1xf32>
    %910 = vector.broadcast %909 : vector<8x1xf32> to vector<8x32xf32>
    %911 = arith.mulf %906, %910 : vector<8x32xf32>
    %912 = vector.extract_strided_slice %831 {offsets = [8, 0], sizes = [8, 64], strides = [1, 1]} : vector<16x64xf32> to vector<8x64xf32>
    %913 = arith.addf %892, %912 : vector<8x64xf32>
    %914 = arith.negf %913 : vector<8x64xf32>
    %915 = math.exp %914 : vector<8x64xf32>
    %cst_228 = arith.constant 1.000000e+00 : f32
    %916 = vector.broadcast %cst_228 : f32 to vector<8x64xf32>
    %917 = arith.addf %916, %915 : vector<8x64xf32>
    %918 = arith.divf %916, %917 : vector<8x64xf32>
    %919 = vector.extract_strided_slice %918 {offsets = [0, 0], sizes = [8, 32], strides = [1, 1]} : vector<8x64xf32> to vector<8x32xf32>
    %920 = vector.extract_strided_slice %918 {offsets = [0, 32], sizes = [8, 32], strides = [1, 1]} : vector<8x64xf32> to vector<8x32xf32>
    %921 = vector.extract_strided_slice %850 {offsets = [8, 0], sizes = [8, 32], strides = [1, 1]} : vector<16x32xf32> to vector<8x32xf32>
    %922 = arith.mulf %920, %921 : vector<8x32xf32>
    %923 = arith.addf %911, %922 : vector<8x32xf32>
    %924 = math.tanh %923 : vector<8x32xf32>
    %cst_229 = arith.constant 1.000000e+00 : f32
    %925 = vector.broadcast %cst_229 : f32 to vector<8x32xf32>
    %926 = arith.subf %925, %919 : vector<8x32xf32>
    %927 = arith.mulf %926, %805 : vector<8x32xf32>
    %928 = arith.mulf %919, %924 : vector<8x32xf32>
    %929 = arith.addf %927, %928 : vector<8x32xf32>
    %cst_230 = arith.constant dense<0.000000e+00> : vector<8x96xf32>
    %930 = tpu.matmul %870, %10, %cst_230 {dimension_numbers = #tpu.dot_dimension_numbers<[1], [0], [0], [1], [0, 0, 1, 1], [], []>} : vector<8x32xf32>, vector<32x96xf32>, vector<8x96xf32> -> vector<8x96xf32>
    %931 = vector.broadcast %14 : vector<1x96xf32> to vector<8x96xf32>
    %932 = arith.addf %930, %931 : vector<8x96xf32>
    %cst_231 = arith.constant dense<0.000000e+00> : vector<8x96xf32>
    %933 = tpu.matmul %929, %12, %cst_231 {dimension_numbers = #tpu.dot_dimension_numbers<[1], [0], [0], [1], [0, 0, 1, 1], [], []>} : vector<8x32xf32>, vector<32x96xf32>, vector<8x96xf32> -> vector<8x96xf32>
    %934 = vector.broadcast %16 : vector<1x96xf32> to vector<8x96xf32>
    %935 = arith.addf %933, %934 : vector<8x96xf32>
    %936 = tpu.concatenate %932, %935 in 0 : vector<8x96xf32>, vector<8x96xf32> -> vector<16x96xf32>
    %937 = vector.extract_strided_slice %936 {offsets = [0, 0], sizes = [16, 64], strides = [1, 1]} : vector<16x96xf32> to vector<16x64xf32>
    %cst_232 = arith.constant dense<0.000000e+00> : vector<16xf32>
    %938 = vector.multi_reduction <add>, %937, %cst_232 [1] : vector<16x64xf32> to vector<16xf32>
    %939 = vector.shape_cast %938 : vector<16xf32> to vector<16x1xf32>
    %cst_233 = arith.constant 6.400000e+01 : f32
    %940 = vector.broadcast %cst_233 : f32 to vector<16x1xf32>
    %941 = arith.divf %939, %940 : vector<16x1xf32>
    %942 = vector.broadcast %941 : vector<16x1xf32> to vector<16x64xf32>
    %943 = arith.subf %937, %942 : vector<16x64xf32>
    %944 = arith.mulf %943, %943 : vector<16x64xf32>
    %cst_234 = arith.constant dense<0.000000e+00> : vector<16xf32>
    %945 = vector.multi_reduction <add>, %944, %cst_234 [1] : vector<16x64xf32> to vector<16xf32>
    %946 = vector.shape_cast %945 : vector<16xf32> to vector<16x1xf32>
    %cst_235 = arith.constant 6.400000e+01 : f32
    %947 = vector.broadcast %cst_235 : f32 to vector<16x1xf32>
    %948 = arith.divf %946, %947 : vector<16x1xf32>
    %949 = vector.broadcast %941 : vector<16x1xf32> to vector<16x64xf32>
    %950 = arith.subf %937, %949 : vector<16x64xf32>
    %cst_236 = arith.constant 9.99999974E-6 : f32
    %951 = vector.broadcast %cst_236 : f32 to vector<16x1xf32>
    %952 = arith.addf %948, %951 : vector<16x1xf32>
    %953 = math.rsqrt %952 : vector<16x1xf32>
    %954 = vector.broadcast %953 : vector<16x1xf32> to vector<16x64xf32>
    %955 = arith.mulf %950, %954 : vector<16x64xf32>
    %956 = vector.extract_strided_slice %936 {offsets = [0, 64], sizes = [16, 32], strides = [1, 1]} : vector<16x96xf32> to vector<16x32xf32>
    %cst_237 = arith.constant dense<0.000000e+00> : vector<16xf32>
    %957 = vector.multi_reduction <add>, %956, %cst_237 [1] : vector<16x32xf32> to vector<16xf32>
    %958 = vector.shape_cast %957 : vector<16xf32> to vector<16x1xf32>
    %cst_238 = arith.constant 3.200000e+01 : f32
    %959 = vector.broadcast %cst_238 : f32 to vector<16x1xf32>
    %960 = arith.divf %958, %959 : vector<16x1xf32>
    %961 = vector.broadcast %960 : vector<16x1xf32> to vector<16x32xf32>
    %962 = arith.subf %956, %961 : vector<16x32xf32>
    %963 = arith.mulf %962, %962 : vector<16x32xf32>
    %cst_239 = arith.constant dense<0.000000e+00> : vector<16xf32>
    %964 = vector.multi_reduction <add>, %963, %cst_239 [1] : vector<16x32xf32> to vector<16xf32>
    %965 = vector.shape_cast %964 : vector<16xf32> to vector<16x1xf32>
    %cst_240 = arith.constant 3.200000e+01 : f32
    %966 = vector.broadcast %cst_240 : f32 to vector<16x1xf32>
    %967 = arith.divf %965, %966 : vector<16x1xf32>
    %968 = vector.broadcast %960 : vector<16x1xf32> to vector<16x32xf32>
    %969 = arith.subf %956, %968 : vector<16x32xf32>
    %cst_241 = arith.constant 9.99999974E-6 : f32
    %970 = vector.broadcast %cst_241 : f32 to vector<16x1xf32>
    %971 = arith.addf %967, %970 : vector<16x1xf32>
    %972 = math.rsqrt %971 : vector<16x1xf32>
    %973 = vector.broadcast %972 : vector<16x1xf32> to vector<16x32xf32>
    %974 = arith.mulf %969, %973 : vector<16x32xf32>
    %975 = vector.extract_strided_slice %42 {offsets = [56, 0], sizes = [8, 64], strides = [1, 1]} : vector<64x64xf32> to vector<8x64xf32>
    %976 = vector.extract_strided_slice %61 {offsets = [56, 0], sizes = [8, 32], strides = [1, 1]} : vector<64x32xf32> to vector<8x32xf32>
    %977 = vector.extract_strided_slice %955 {offsets = [0, 0], sizes = [8, 64], strides = [1, 1]} : vector<16x64xf32> to vector<8x64xf32>
    %978 = arith.addf %975, %977 : vector<8x64xf32>
    %979 = arith.negf %978 : vector<8x64xf32>
    %980 = math.exp %979 : vector<8x64xf32>
    %cst_242 = arith.constant 1.000000e+00 : f32
    %981 = vector.broadcast %cst_242 : f32 to vector<8x64xf32>
    %982 = arith.addf %981, %980 : vector<8x64xf32>
    %983 = arith.divf %981, %982 : vector<8x64xf32>
    %984 = vector.extract_strided_slice %983 {offsets = [0, 0], sizes = [8, 32], strides = [1, 1]} : vector<8x64xf32> to vector<8x32xf32>
    %985 = vector.extract_strided_slice %983 {offsets = [0, 32], sizes = [8, 32], strides = [1, 1]} : vector<8x64xf32> to vector<8x32xf32>
    %986 = vector.extract_strided_slice %974 {offsets = [0, 0], sizes = [8, 32], strides = [1, 1]} : vector<16x32xf32> to vector<8x32xf32>
    %987 = arith.mulf %985, %986 : vector<8x32xf32>
    %988 = arith.addf %976, %987 : vector<8x32xf32>
    %989 = math.tanh %988 : vector<8x32xf32>
    %cst_243 = arith.constant 1.000000e+00 : f32
    %990 = vector.broadcast %cst_243 : f32 to vector<8x32xf32>
    %991 = arith.subf %990, %984 : vector<8x32xf32>
    %992 = arith.mulf %991, %870 : vector<8x32xf32>
    %993 = arith.mulf %984, %989 : vector<8x32xf32>
    %994 = arith.addf %992, %993 : vector<8x32xf32>
    %cst_244 = arith.constant dense<0.000000e+00> : vector<8x96xf32>
    %995 = tpu.matmul %994, %4, %cst_244 {dimension_numbers = #tpu.dot_dimension_numbers<[1], [0], [0], [1], [0, 0, 1, 1], [], []>} : vector<8x32xf32>, vector<32x96xf32>, vector<8x96xf32> -> vector<8x96xf32>
    %996 = vector.broadcast %8 : vector<1x96xf32> to vector<8x96xf32>
    %997 = arith.addf %995, %996 : vector<8x96xf32>
    %998 = vector.extract_strided_slice %997 {offsets = [0, 0], sizes = [8, 64], strides = [1, 1]} : vector<8x96xf32> to vector<8x64xf32>
    %cst_245 = arith.constant dense<0.000000e+00> : vector<8xf32>
    %999 = vector.multi_reduction <add>, %998, %cst_245 [1] : vector<8x64xf32> to vector<8xf32>
    %1000 = vector.shape_cast %999 : vector<8xf32> to vector<8x1xf32>
    %cst_246 = arith.constant 6.400000e+01 : f32
    %1001 = vector.broadcast %cst_246 : f32 to vector<8x1xf32>
    %1002 = arith.divf %1000, %1001 : vector<8x1xf32>
    %1003 = vector.broadcast %1002 : vector<8x1xf32> to vector<8x64xf32>
    %1004 = arith.subf %998, %1003 : vector<8x64xf32>
    %1005 = arith.mulf %1004, %1004 : vector<8x64xf32>
    %cst_247 = arith.constant dense<0.000000e+00> : vector<8xf32>
    %1006 = vector.multi_reduction <add>, %1005, %cst_247 [1] : vector<8x64xf32> to vector<8xf32>
    %1007 = vector.shape_cast %1006 : vector<8xf32> to vector<8x1xf32>
    %cst_248 = arith.constant 6.400000e+01 : f32
    %1008 = vector.broadcast %cst_248 : f32 to vector<8x1xf32>
    %1009 = arith.divf %1007, %1008 : vector<8x1xf32>
    %1010 = vector.broadcast %1002 : vector<8x1xf32> to vector<8x64xf32>
    %1011 = arith.subf %998, %1010 : vector<8x64xf32>
    %cst_249 = arith.constant 9.99999974E-6 : f32
    %1012 = vector.broadcast %cst_249 : f32 to vector<8x1xf32>
    %1013 = arith.addf %1009, %1012 : vector<8x1xf32>
    %1014 = math.rsqrt %1013 : vector<8x1xf32>
    %1015 = vector.broadcast %1014 : vector<8x1xf32> to vector<8x64xf32>
    %1016 = arith.mulf %1011, %1015 : vector<8x64xf32>
    %1017 = vector.extract_strided_slice %997 {offsets = [0, 64], sizes = [8, 32], strides = [1, 1]} : vector<8x96xf32> to vector<8x32xf32>
    %cst_250 = arith.constant dense<0.000000e+00> : vector<8xf32>
    %1018 = vector.multi_reduction <add>, %1017, %cst_250 [1] : vector<8x32xf32> to vector<8xf32>
    %1019 = vector.shape_cast %1018 : vector<8xf32> to vector<8x1xf32>
    %cst_251 = arith.constant 3.200000e+01 : f32
    %1020 = vector.broadcast %cst_251 : f32 to vector<8x1xf32>
    %1021 = arith.divf %1019, %1020 : vector<8x1xf32>
    %1022 = vector.broadcast %1021 : vector<8x1xf32> to vector<8x32xf32>
    %1023 = arith.subf %1017, %1022 : vector<8x32xf32>
    %1024 = arith.mulf %1023, %1023 : vector<8x32xf32>
    %cst_252 = arith.constant dense<0.000000e+00> : vector<8xf32>
    %1025 = vector.multi_reduction <add>, %1024, %cst_252 [1] : vector<8x32xf32> to vector<8xf32>
    %1026 = vector.shape_cast %1025 : vector<8xf32> to vector<8x1xf32>
    %cst_253 = arith.constant 3.200000e+01 : f32
    %1027 = vector.broadcast %cst_253 : f32 to vector<8x1xf32>
    %1028 = arith.divf %1026, %1027 : vector<8x1xf32>
    %1029 = vector.broadcast %1021 : vector<8x1xf32> to vector<8x32xf32>
    %1030 = arith.subf %1017, %1029 : vector<8x32xf32>
    %cst_254 = arith.constant 9.99999974E-6 : f32
    %1031 = vector.broadcast %cst_254 : f32 to vector<8x1xf32>
    %1032 = arith.addf %1028, %1031 : vector<8x1xf32>
    %1033 = math.rsqrt %1032 : vector<8x1xf32>
    %1034 = vector.broadcast %1033 : vector<8x1xf32> to vector<8x32xf32>
    %1035 = arith.mulf %1030, %1034 : vector<8x32xf32>
    %1036 = vector.extract_strided_slice %955 {offsets = [8, 0], sizes = [8, 64], strides = [1, 1]} : vector<16x64xf32> to vector<8x64xf32>
    %1037 = arith.addf %1016, %1036 : vector<8x64xf32>
    %1038 = arith.negf %1037 : vector<8x64xf32>
    %1039 = math.exp %1038 : vector<8x64xf32>
    %cst_255 = arith.constant 1.000000e+00 : f32
    %1040 = vector.broadcast %cst_255 : f32 to vector<8x64xf32>
    %1041 = arith.addf %1040, %1039 : vector<8x64xf32>
    %1042 = arith.divf %1040, %1041 : vector<8x64xf32>
    %1043 = vector.extract_strided_slice %1042 {offsets = [0, 0], sizes = [8, 32], strides = [1, 1]} : vector<8x64xf32> to vector<8x32xf32>
    %1044 = vector.extract_strided_slice %1042 {offsets = [0, 32], sizes = [8, 32], strides = [1, 1]} : vector<8x64xf32> to vector<8x32xf32>
    %1045 = vector.extract_strided_slice %974 {offsets = [8, 0], sizes = [8, 32], strides = [1, 1]} : vector<16x32xf32> to vector<8x32xf32>
    %1046 = arith.mulf %1044, %1045 : vector<8x32xf32>
    %1047 = arith.addf %1035, %1046 : vector<8x32xf32>
    %1048 = math.tanh %1047 : vector<8x32xf32>
    %cst_256 = arith.constant 1.000000e+00 : f32
    %1049 = vector.broadcast %cst_256 : f32 to vector<8x32xf32>
    %1050 = arith.subf %1049, %1043 : vector<8x32xf32>
    %1051 = arith.mulf %1050, %929 : vector<8x32xf32>
    %1052 = arith.mulf %1043, %1048 : vector<8x32xf32>
    %1053 = arith.addf %1051, %1052 : vector<8x32xf32>
    %1054 = tpu.concatenate %185, %309, %433, %557, %681, %805, %929, %1053 in 0 : vector<8x32xf32>, vector<8x32xf32>, vector<8x32xf32>, vector<8x32xf32>, vector<8x32xf32>, vector<8x32xf32>, vector<8x32xf32>, vector<8x32xf32> -> vector<64x32xf32>
    %cst_257 = arith.constant dense<0.000000e+00> : vector<64x8xf32>
    %1055 = tpu.matmul %1054, %17, %cst_257 {dimension_numbers = #tpu.dot_dimension_numbers<[1], [0], [0], [1], [0, 0, 1, 1], [], []>} : vector<64x32xf32>, vector<32x8xf32>, vector<64x8xf32> -> vector<64x8xf32>
    %1056 = vector.broadcast %18 : vector<1x8xf32> to vector<64x8xf32>
    %1057 = arith.addf %1055, %1056 : vector<64x8xf32>
    %1058 = arith.negf %1057 : vector<64x8xf32>
    %1059 = math.exp %1058 : vector<64x8xf32>
    %cst_258 = arith.constant 1.000000e+00 : f32
    %1060 = vector.broadcast %cst_258 : f32 to vector<64x8xf32>
    %1061 = arith.addf %1060, %1059 : vector<64x8xf32>
    %1062 = arith.divf %1060, %1061 : vector<64x8xf32>
    %1063 = tpu.iota {dimensions = array<i32: 0>} : vector<64x8xi32>
    %c8_i32 = arith.constant 8 : i32
    %1064 = arith.muli %0, %c8_i32 : i32
    %1065 = vector.broadcast %1064 : i32 to vector<64x8xi32>
    %1066 = arith.cmpi slt, %1063, %1065 : vector<64x8xi32>
    %cst_259 = arith.constant 0.000000e+00 : f32
    %1067 = vector.broadcast %cst_259 : f32 to vector<64x8xf32>
    %1068 = arith.select %1066, %1062, %1067 : vector<64x8xi1>, vector<64x8xf32>
    %c0_260 = arith.constant 0 : index
    %c0_261 = arith.constant 0 : index
    %1069 = vector.load %arg9[%c0_260, %c0_261] : memref<64x8xf32, #tpu.memory_space<vmem>>, vector<64x8xf32>
    tpu.vector_store %arg9[%c0_260, %c0_261], %1068 {strides = array<i32>} : memref<64x8xf32, #tpu.memory_space<vmem>>, vector<64x8xf32>,
    return
  }
}

</mosaic_0001>

<bundles_post_ra>
// kernel: tpu_custom_call.1
= control target key start
LH: loop header
LB: loop body
LE: loop exit
PB: predicated region body
PF: predicated region fallthrough
CT: control target
= control target key end

     0   :  { %14 = vsyncpa [#allocation3], 0  ;;  %s5670_s0 = inlined_call_operand.hbm [shape: s32[8], index: 0, kind: input, shape index: {}]   ;;  %s5671_s1 = inlined_call_operand.vmem [shape: f32[64,32], index: 1, kind: input, shape index: {}]   ;;  %s5672_s2 = inlined_call_operand.vmem [shape: f32[8,32], index: 2, kind: input, shape index: {}]   ;;  %s5673_s3 = inlined_call_operand.vmem [shape: f32[2,32,96], index: 3, kind: input, shape index: {}]   ;;  %s5674_s4 = inlined_call_operand.vmem [shape: f32[2,1,96], index: 4, kind: input, shape index: {}]   ;;  %s5675_s5 = inlined_call_operand.vmem [shape: f32[2,32,96], index: 5, kind: input, shape index: {}]   ;;  %s5676_s6 = inlined_call_operand.vmem [shape: f32[2,1,96], index: 6, kind: input, shape index: {}]   ;;  %s5677_s7 = inlined_call_operand.vmem [shape: f32[32,8], index: 7, kind: input, shape index: {}]   ;;  %s5678_s8 = inlined_call_operand.vmem [shape: f32[1,8], index: 8, kind: input, shape index: {}]   ;;  %s5679_s9 = inlined_call_operand.vmem [shape: f32[64,8], index: 9, kind: output, shape index: {}]  }
   0x1   :  { %s4637_s11 = scalar_lea.hbm %s5670_s0, 16 }
   0x2   :  { %p4638_p0 = scmp.ne.s32.totalorder %s5670_s0, %s4637_s11  ;;  %p4641_p1 = scmp.lt.u32.totalorder %s4637_s11, %s5670_s0 }
   0x4   :  { %p4643_p2 = pnand %p4641_p1, %p4638_p0 }
   0x6   :  { %4646 = shalt.err (!%p4643_p2)
}
   0x7   :  { %s4649_s16 = smov [#allocation2]  }
   0x8   :  { %22 = dma.hbm_to_smem %s5670_s0, 16, %s4649_s16, [#allocation3]  }
   0x9   :  { %4647 = dma.done.wait [#allocation3], 16  }
   0xa   :  { %4648 = vsyncadd [#allocation3], 4294967280 }
   0xb   :  { %42 = sfence }
   0xc   :  { %v44_v0 = vld [vmem:[%s5673_s3] sm:$0xff]  ;;  %v45_v1 = vld [vmem:[%s5673_s3 + $0x8] sm:$0xff]  ;;  %v46_v2 = vld [vmem:[%s5673_s3 + $0x10] sm:$0xff]  ;;  %vm88_vm0 = vcmask 261120   ;;  %v4650_v13 = vmov 0.0|0.0   ;;  %vm4651_vm1 = vmmov 0  }
   0xd   :  { %v4202_v3 = vpack.c.bf16 %v45_v1, %v44_v0  ;;  %v47_v4 = vld [vmem:[%s5673_s3 + $0x18] sm:$0xff]  ;;  %v78_v5 = vld [vmem:[%s5671_s1 + $0x20] sm:$0xff]  ;;  %v57_v9 = vld [vmem:[%s5675_s5 + $0x8] sm:$0xff]  ;;  %v4652_v19 = vmov 0.0   ;;  %vm218_vm2 = vcmask 523264   ;;  %s4655_s17 = smov 32  }
   0xe   :  { %v4206_v6 = vpack.c.bf16 %v47_v4, %v46_v2  ;;  %3912 = vmatprep.mubr.msk.f32.mxu1 %vm88_vm0, %v78_v5  ;;  %v74_v7 = vld [vmem:[%s5671_s1] sm:$0xff]  ;;  %v79_v10 = vld [vmem:[%s5671_s1 + $0x28] sm:$0xff]  ;;  %v80_v14 = vld [vmem:[%s5671_s1 + $0x30] sm:$0xff]  ;;  %vm3660_vm4 = vcmask 64512  }
   0xf   :  { %4362 = vmatprep.subr.bf16.mxu1 %v4202_v3  ;;  %4203 = vmatprep.subr.bf16.mxu0 %v4202_v3  ;;  %v56_v8 = vld [vmem:[%s5675_s5] sm:$0xff]  ;;  %v75_v12 = vld [vmem:[%s5671_s1 + $0x8] sm:$0xff]  ;;  %v58_v15 = vld [vmem:[%s5675_s5 + $0x10] sm:$0xff] }
  0x10   :  { %4364 = vmatpush3.bf16.msra.mxu1 %v4202_v3  ;;  %4205 = vmatpush3.bf16.msra.mxu0 %v4202_v3  ;;  %v4747_v11 = vpack.c.bf16 %v57_v9, %v56_v8  ;;  %v59_v16 = vld [vmem:[%s5675_s5 + $0x18] sm:$0xff]  ;;  %v4780_v20 = vld [vmem:[%s5672_s2] sm:$0xff]  ;;  %s4653_s2 = smov 64   ;;  %v3680_v51 = vld [vmem:[%s5675_s5 + $0x28] sm:$0xff] }
  0x11   :  { %4363 = vmatprep.subr.bf16.mxu1 %v4206_v6  ;;  %4207 = vmatprep.subr.bf16.mxu0 %v4206_v6  ;;  %v81_v17 = vld [vmem:[%s5671_s1 + $0x38] sm:$0xff]  ;;  %v4770_v18 = vpack.c.bf16 %v59_v16, %v58_v15  ;;  %v4794_v23 = vld [vmem:[%s5674_s4] ss:$0 sm:$0xff]  ;;  %v3681_v52 = vld [vmem:[%s5675_s5 + $0x30] sm:$0xff] }
  0x12   :  { %3906 = vmatprep.mubr.msk.f32.mxu0 %vm88_vm0, %v74_v7  ;;  %v4807_v29 = vld [vmem:[%s5676_s6] ss:$0 sm:$0xff]  ;;  %v3682_v54 = vld [vmem:[%s5675_s5 + $0x38] sm:$0xff] }
  0x13   :  { %v3679_v50 = vld [vmem:[%s5675_s5 + $0x20] sm:$0xff]  ;;  %v4833_v55 = vpack.c.bf16 %v3682_v54, %v3681_v52  ;;  %s4654_s5 = smov 96  }
  0x14   :  { %4365 = vmatpush3.bf16.msra.mxu1 %v4206_v6  ;;  %4209 = vmatpush3.bf16.msra.mxu0 %v4206_v6  ;;  %v4827_v53 = vpack.c.bf16 %v3680_v51, %v3679_v50  ;;  %v3677_v50 = vld [vmem:[%s5673_s3 + $0x38] sm:$0xff] }
  0x15   :  { %4210 = vmatprep.subr.bf16.mxu1 %v4650_v13  ;;  %4222 = vmatprep.subr.bf16.mxu0 %v4650_v13 }
  0x17   :  { %3913 = vmatmul.mubr.msk.f32.vlgmr.msra.gmra.mrb[0].mxu1 %vm88_vm0, %v79_v10  ;;  %3907 = vmatmul.mubr.msk.f32.vlgmr.msra.gmra.mrb[0].mxu0 %vm88_vm0, %v75_v12 }
  0x18   :  { %4212 = vmatpush3.bf16.msra.mxu1 %v4747_v11  ;;  %3915 = vmatprep.mubr.msk.f32.mxu1 %vm88_vm0, %v80_v14 }
  0x19   :  { %4213 = vmatprep.subr.bf16.mxu1 %v4650_v13 }
  0x1b   :  { %3916 = vmatmul.mubr.msk.f32.gmra.mrb[2].mxu1 %vm88_vm0, %v81_v17 }
  0x1c   :  { %4215 = vmatpush3.bf16.msra.mxu1 %v4770_v18  ;;  %3926 = vmatprep.mubr.msk.f32.mxu1 %vm4651_vm1, %v4652_v19 }
  0x1d   :  { %4216 = vmatprep.subr.bf16.mxu1 %v4650_v13 }
  0x1f   :  { %3927 = vmatmul.mubr.msk.f32.vlgmr.msra.gmra.mrb[4].mxu1 %vm88_vm0, %v4780_v20 }
  0x20   :  { %3937 = vmatprep.mubr.msk.f32.mxu1 %vm4651_vm1, %v4652_v19  ;;  %4218 = vmatpush3.bf16.msra.mxu1 %v4827_v53 }
  0x21   :  { %4219 = vmatprep.subr.bf16.mxu1 %v4650_v13 }
  0x24   :  { %4221 = vmatpush3.bf16.msra.mxu1 %v4833_v55 }
  0x25   :  { %4228 = vmatprep.subr.bf16.mxu1 %v4650_v13 }
  0x27   :  { %3938 = vmatmul.mubr.msk.f32.vlgmr.msra.gmra.mrb[6].mxu1 %vm88_vm0, %v4780_v20 }
  0x28   :  { %4230 = vmatpush3.bf16.msra.mxu1 %v4747_v11  ;;  %3959 = vmatprep.mubr.msk.f32.mxu1 %vm4651_vm1, %v4652_v19 }
  0x29   :  { %4231 = vmatprep.subr.bf16.mxu1 %v4650_v13 }
  0x2c   :  { %4233 = vmatpush3.bf16.msra.mxu1 %v4770_v18 }
  0x2d   :  { %4240 = vmatprep.subr.bf16.mxu1 %v4650_v13 }
  0xea   :  { %v4787_v21 = vpop.f32.mrb[0].mxu1  ;;  %v4789_v22 = vpop.f32.mrb[0].mxu0 }
  0xeb   :  { %v4796_v24 = vpop.f32.mrb[1].mxu1  ;;  %v179_v25 = vpop.f32.mrb[1].mxu0 }
  0xec   :  { %v180_v26 = vadd.f32 %v4794_v23, %v179_v25 }
  0xee   :  { %v4799_v27 = vpop.f32.mrb[2].mxu1  ;;  %332 = vrot.lane.b32.xlu1 %v180_v26, %s4653_s2  ;;  %v219_v42 = vsel %vm218_vm2, %v180_v26, 0.0 }
  0xef   :  { %v4802_v28 = vpop.f32.mrb[3].mxu1 }
  0xf2   :  { %v568_v30 = vpop.f32.mrb[4].mxu1 }
  0xf3   :  { %v569_v31 = vadd.f32 %v4807_v29, %v568_v30  ;;  %v3928_v32 = vpop.f32.mrb[5].mxu1 }
  0xf5   :  { %676 = vrot.lane.b32.xlu0 %v569_v31, %s4653_s2  ;;  %v648_v36 = vsel %vm218_vm2, %v569_v31, 0.0 }
 0x160   :  { %v333_v35 = vpop.permute.xlu1 %332 }
 0x161   :  { %v356_v37 = vsel %vm88_vm0, %v333_v35, 0.0 }
 0x167   :  { %v677_v33 = vpop.permute.xlu0 %676 }
 0x168   :  { %v682_v34 = vsel %vm88_vm0, %v677_v33, 0.0 }
 0x169   :  { %683 = vadd.xlane.f32.xlu0 %v682_v34 }
 0x16d   :  { %649 = vadd.xlane.f32.xlu0 %v648_v36 }
 0x171   :  { %357 = vadd.xlane.f32.xlu0 %v356_v37  ;;  %v644_v37 = vpop.f32.mrb[6].mxu1 }
 0x1f6   :  { %v684_v38 = vpop.xlane.xlu0 %683 }
 0x1f7   :  { %v688_v39 = vmul.f32 0.03125, %v684_v38  ;;  %v3939_v38 = vpop.f32.mrb[7].mxu1 }
 0x1f9   :  { %v690_v40 = vsub.f32 %v569_v31, %v688_v39  ;;  %v3674_v39 = vld [vmem:[%s5673_s3 + $0x20] sm:$0xff] }
 0x1fa   :  { %v650_v43 = vpop.xlane.xlu0 %649 }
 0x1fb   :  { %v692_v41 = vmul.f32 %v690_v40, %v690_v40  ;;  %v654_v44 = vmul.f32 0.015625, %v650_v43 }
 0x1fd   :  { %696 = vrot.lane.b32.xlu1 %v692_v41, %s4653_s2  ;;  %v656_v45 = vsub.f32 %v569_v31, %v654_v44  ;;  %v76_v41 = vld [vmem:[%s5671_s1 + $0x10] sm:$0xff] }
 0x1fe   :  { %v358_v61 = vpop.xlane.xlu0 %357  ;;  %3909 = vmatprep.mubr.msk.f32.mxu0 %vm88_vm0, %v76_v41 }
 0x1ff   :  { %v658_v48 = vmul.f32 %v656_v45, %v656_v45  ;;  %v381_v62 = vmul.f32 0.03125, %v358_v61 }
 0x201   :  { %v660_v49 = vsel %vm218_vm2, %v658_v48, 0.0  ;;  %v389_v63 = vsub.f32 %v180_v26, %v381_v62  ;;  %v77_v48 = vld [vmem:[%s5671_s1 + $0x18] sm:$0xff] }
 0x202   :  { %3910 = vmatmul.mubr.msk.f32.gmra.mrb[2].mxu0 %vm88_vm0, %v77_v48 }
 0x203   :  { %v397_v0 = vmul.f32 %v389_v63, %v389_v63  ;;  %3948 = vmatprep.mubr.msk.f32.mxu0 %vm4651_vm1, %v4652_v19 }
 0x221   :  { %220 = vadd.xlane.f32.xlu1 %v219_v42 }
 0x26f   :  { %v697_v46 = vpop.permute.xlu1 %696 }
 0x270   :  { %v702_v47 = vsel %vm88_vm0, %v697_v46, 0.0 }
 0x271   :  { %703 = vadd.xlane.f32.xlu0 %v702_v47 }
 0x275   :  { %661 = vadd.xlane.f32.xlu0 %v660_v49  ;;  %v3676_v49 = vld [vmem:[%s5673_s3 + $0x30] sm:$0xff] }
 0x276   :  { %v4875_v52 = vpack.c.bf16 %v3677_v50, %v3676_v49 }
 0x2ae   :  { %v221_v56 = vpop.xlane.xlu1 %220 }
 0x2af   :  { %v244_v57 = vmul.f32 0.015625, %v221_v56  ;;  %v4884_v56 = vld [vmem:[%s5676_s6 + $0x1] ss:$0 sm:$0xff] }
 0x2b1   :  { %v252_v58 = vsub.f32 %v180_v26, %v244_v57 }
 0x2b3   :  { %v260_v59 = vmul.f32 %v252_v58, %v252_v58 }
 0x2b5   :  { %v268_v60 = vsel %vm218_vm2, %v260_v59, 0.0 }
 0x2b6   :  { %269 = vadd.xlane.f32.xlu1 %v268_v60 }
 0x2c7   :  { %413 = vrot.lane.b32.xlu1 %v397_v0, %s4653_s2 }
 0x2fe   :  { %v704_v1 = vpop.xlane.xlu0 %703 }
 0x2ff   :  { %v708_v2 = vmul.f32 0.03125, %v704_v1 }
 0x301   :  { %v710_v3 = vadd.f32 1e-05, %v708_v2  ;;  %v4909_v2 = vpop.f32.mrb[2].mxu0 }
 0x302   :  { %v662_v7 = vpop.xlane.xlu0 %661 }
 0x303   :  { %4373 = vrsqrt.f32 %v710_v3  ;;  %v666_v10 = vmul.f32 0.015625, %v662_v7  ;;  %v4911_v3 = vpop.f32.mrb[3].mxu0 }
 0x305   :  { %v668_v15 = vadd.f32 1e-05, %v666_v10 }
 0x30d   :  { %v4374_v4 = vpop.eup %4373 }
 0x30e   :  { %v714_v5 = vmul.f32 %v4374_v4, %v690_v40  ;;  %v3675_v40 = vld [vmem:[%s5673_s3 + $0x28] sm:$0xff] }
 0x30f   :  { %v4860_v42 = vpack.c.bf16 %v3675_v40, %v3674_v39 }
 0x310   :  { %724 = vrot.lane.b32.xlu0 %v714_v5, %s4654_s5 }
 0x311   :  { %4224 = vmatpush3.bf16.msra.mxu0 %v4860_v42 }
 0x312   :  { %4225 = vmatprep.subr.bf16.mxu0 %v4650_v13 }
 0x315   :  { %4227 = vmatpush3.bf16.msra.mxu0 %v4875_v52 }
 0x316   :  { %4234 = vmatprep.subr.bf16.mxu0 %v4650_v13 }
 0x343   :  { %v270_v6 = vpop.xlane.xlu1 %269 }
 0x344   :  { %v292_v8 = vmul.f32 0.015625, %v270_v6  ;;  %v4916_v6 = vld [vmem:[%s5674_s4 + $0x1] ss:$0 sm:$0xff] }
 0x346   :  { %v300_v14 = vadd.f32 1e-05, %v292_v8 }
 0x347   :  { %v414_v9 = vpop.permute.xlu1 %413 }
 0x348   :  { %v437_v12 = vsel %vm88_vm0, %v414_v9, 0.0  ;;  %4375 = vrsqrt.f32 %v300_v14 }
 0x349   :  { %438 = vadd.xlane.f32.xlu1 %v437_v12  ;;  %4377 = vrsqrt.f32 %v668_v15 }
 0x352   :  { %v4376_v16 = vpop.eup %4375 }
 0x353   :  { %v4378_v17 = vpop.eup %4377  ;;  %v316_v25 = vmul.f32 %v4376_v16, %v252_v58  ;;  %v645_v58 = vadd.f32 %v4884_v56, %v644_v37 }
 0x354   :  { %v672_v26 = vmul.f32 %v4378_v17, %v656_v45 }
 0x356   :  { %v716_v30 = vadd.f32 %v672_v26, %v316_v25  ;;  %v651_v25 = vsel %vm218_vm2, %v645_v58, 0.0 }
 0x358   :  { %v3697_v31 = vmul.f32 -1.442695, %v716_v30 }
 0x35a   :  { %4379 = vpow2.f32 %v3697_v31 }
 0x364   :  { %v4380_v32 = vpop.eup %4379 }
 0x365   :  { %v720_v33 = vadd.f32 1.0, %v4380_v32 }
 0x367   :  { %4381 = vrcp.f32 %v720_v33 }
 0x371   :  { %v4382_v34 = vpop.eup %4381 }
 0x372   :  { %v734_v59 = vsub.f32 1.0, %v4382_v34 }
 0x374   :  { %v735_v61 = vmul.f32 %v734_v59, %v4780_v20 }
 0x382   :  { %v725_v35 = vpop.permute.xlu0 %724 }
 0x383   :  { %v727_v36 = vmul.f32 %v4382_v34, %v725_v35 }
 0x385   :  { %729 = vrot.lane.b32.xlu0 %v727_v36, %s4655_s17 }
 0x3d6   :  { %v439_v43 = vpop.xlane.xlu1 %438 }
 0x3d7   :  { %v461_v44 = vmul.f32 0.03125, %v439_v43 }
 0x3d9   :  { %v469_v45 = vadd.f32 1e-05, %v461_v44 }
 0x3db   :  { %4383 = vrsqrt.f32 %v469_v45 }
 0x3e5   :  { %v4384_v46 = vpop.eup %4383 }
 0x3e6   :  { %v485_v47 = vmul.f32 %v4384_v46, %v389_v63  ;;  %v4935_v46 = vadd.f32 %v4789_v22, %v4794_v23 }
 0x3f7   :  { %v730_v51 = vpop.permute.xlu0 %729 }
 0x3f8   :  { %v732_v54 = vadd.f32 %v730_v51, %v485_v47  ;;  %v222_v47 = vsel %vm218_vm2, %v4935_v46, 0.0 }
 0x3fa   :  { %4385 = vtanh.f32 %v732_v54 }
 0x404   :  { %v4386_v57 = vpop.eup %4385 }
 0x405   :  { %737 = vrot.lane.b32.xlu0 %v4386_v57, %s4653_s2 }
 0x409   :  { %678 = vrot.lane.b32.xlu0 %v645_v58, %s4653_s2 }
 0x477   :  { %v738_v60 = vpop.permute.xlu0 %737 }
 0x478   :  { %v740_v62 = vmul.f32 %v4382_v34, %v738_v60 }
 0x47a   :  { %v4890_v63 = vadd.f32 %v740_v62, %v735_v61 }
 0x47b   :  { %v679_v0 = vpop.permute.xlu0 %678 }
 0x47c   :  { %3949 = vmatmul.mubr.msk.f32.vlgmr.msra.gmra.mrb[4].mxu0 %vm88_vm0, %v4890_v63  ;;  %3960 = vmatmul.mubr.msk.f32.vlgmr.msra.gmra.mrb[8].mxu1 %vm88_vm0, %v4890_v63  ;;  %v685_v1 = vsel %vm88_vm0, %v679_v0, 0.0 }
 0x47d   :  { %686 = vadd.xlane.f32.xlu0 %v685_v1  ;;  %4236 = vmatpush3.bf16.msra.mxu0 %v4827_v53 }
 0x47e   :  { %4237 = vmatprep.subr.bf16.mxu0 %v4650_v13  ;;  %3970 = vmatprep.mubr.msk.f32.mxu0 %vm4651_vm1, %v4652_v19 }
 0x47f   :  { %4242 = vmatpush3.bf16.msra.mxu1 %v4860_v42  ;;  %3981 = vmatprep.mubr.msk.f32.mxu1 %vm4651_vm1, %v4652_v19 }
 0x480   :  { %4243 = vmatprep.subr.bf16.mxu1 %v4650_v13 }
 0x481   :  { %4239 = vmatpush3.bf16.msra.mxu0 %v4833_v55 }
 0x482   :  { %4246 = vmatprep.subr.bf16.mxu0 %v4650_v13 }
 0x483   :  { %4245 = vmatpush3.bf16.msra.mxu1 %v4875_v52 }
 0x484   :  { %4252 = vmatprep.subr.bf16.mxu1 %v4650_v13 }
 0x50a   :  { %v687_v4 = vpop.xlane.xlu0 %686 }
 0x50b   :  { %v689_v5 = vmul.f32 0.03125, %v687_v4 }
 0x50d   :  { %v691_v9 = vsub.f32 %v645_v58, %v689_v5 }
 0x50f   :  { %v693_v16 = vmul.f32 %v691_v9, %v691_v9 }
 0x54f   :  { %v817_v7 = vpop.f32.mrb[4].mxu0  ;;  %v947_v8 = vpop.f32.mrb[8].mxu1 }
 0x550   :  { %v818_v10 = vadd.f32 %v4916_v6, %v817_v7  ;;  %v4920_v12 = vadd.f32 %v4807_v29, %v947_v8  ;;  %v3950_v14 = vpop.f32.mrb[5].mxu0  ;;  %v3961_v15 = vpop.f32.mrb[9].mxu1 }
 0x552   :  { %835 = vrot.lane.b32.xlu1 %v818_v10, %s4653_s2  ;;  %1052 = vrot.lane.b32.xlu0 %v4920_v12, %s4653_s2  ;;  %v821_v17 = vsel %vm218_vm2, %v818_v10, 0.0  ;;  %v1024_v1 = vsel %vm218_vm2, %v4920_v12, 0.0 }
 0x556   :  { %698 = vrot.lane.b32.xlu1 %v693_v16, %s4653_s2 }
 0x571   :  { %822 = vadd.xlane.f32.xlu0 %v821_v17 }
 0x57a   :  { %652 = vadd.xlane.f32.xlu1 %v651_v25 }
 0x5c4   :  { %v836_v26 = vpop.permute.xlu1 %835  ;;  %v1053_v31 = vpop.permute.xlu0 %1052 }
 0x5c5   :  { %v838_v30 = vsel %vm88_vm0, %v836_v26, 0.0  ;;  %v1058_v32 = vsel %vm88_vm0, %v1053_v31, 0.0 }
 0x5c6   :  { %839 = vadd.xlane.f32.xlu1 %v838_v30 }
 0x5c8   :  { %v699_v33 = vpop.permute.xlu1 %698 }
 0x5c9   :  { %v705_v34 = vsel %vm88_vm0, %v699_v33, 0.0 }
 0x5ca   :  { %1059 = vadd.xlane.f32.xlu1 %v1058_v32 }
 0x5ce   :  { %706 = vadd.xlane.f32.xlu1 %v705_v34 }
 0x5fe   :  { %v823_v35 = vpop.xlane.xlu0 %822 }
 0x5ff   :  { %v824_v36 = vmul.f32 0.015625, %v823_v35 }
 0x601   :  { %v825_v37 = vsub.f32 %v818_v10, %v824_v36 }
 0x603   :  { %v826_v38 = vmul.f32 %v825_v37, %v825_v37 }
 0x605   :  { %v827_v39 = vsel %vm218_vm2, %v826_v38, 0.0 }
 0x606   :  { %828 = vadd.xlane.f32.xlu1 %v827_v39 }
 0x607   :  { %v653_v40 = vpop.xlane.xlu1 %652 }
 0x608   :  { %v655_v41 = vmul.f32 0.015625, %v653_v40 }
 0x60a   :  { %v657_v43 = vsub.f32 %v645_v58, %v655_v41 }
 0x60c   :  { %v659_v44 = vmul.f32 %v657_v43, %v657_v43 }
 0x60e   :  { %v663_v45 = vsel %vm218_vm2, %v659_v44, 0.0 }
 0x60f   :  { %664 = vadd.xlane.f32.xlu0 %v663_v45 }
 0x625   :  { %334 = vrot.lane.b32.xlu0 %v4935_v46, %s4653_s2 }
 0x644   :  { %223 = vadd.xlane.f32.xlu0 %v222_v47 }
 0x653   :  { %v840_v48 = vpop.xlane.xlu1 %839 }
 0x654   :  { %v841_v49 = vmul.f32 0.03125, %v840_v48 }
 0x656   :  { %v4941_v50 = vsub.f32 %v818_v10, %v841_v49 }
 0x657   :  { %v1060_v51 = vpop.xlane.xlu1 %1059 }
 0x658   :  { %v1064_v54 = vmul.f32 0.03125, %v1060_v51  ;;  %v843_v57 = vmul.f32 %v4941_v50, %v4941_v50 }
 0x65a   :  { %v4946_v58 = vsub.f32 %v4920_v12, %v1064_v54  ;;  %845 = vrot.lane.b32.xlu1 %v843_v57, %s4653_s2 }
 0x65b   :  { %v707_v22 = vpop.xlane.xlu1 %706 }
 0x65c   :  { %v709_v59 = vmul.f32 0.03125, %v707_v22  ;;  %v1068_v60 = vmul.f32 %v4946_v58, %v4946_v58 }
 0x65e   :  { %v711_v61 = vadd.f32 1e-05, %v709_v59  ;;  %1072 = vrot.lane.b32.xlu1 %v1068_v60, %s4653_s2 }
 0x660   :  { %4387 = vrsqrt.f32 %v711_v61 }
 0x66a   :  { %v4388_v62 = vpop.eup %4387 }
 0x66b   :  { %v715_v0 = vmul.f32 %v4388_v62, %v691_v9 }
 0x66d   :  { %863 = vrot.lane.b32.xlu0 %v715_v0, %s4654_s5 }
 0x682   :  { %1025 = vadd.xlane.f32.xlu1 %v1024_v1 }
 0x693   :  { %v829_v8 = vpop.xlane.xlu1 %828 }
 0x694   :  { %v830_v14 = vmul.f32 0.015625, %v829_v8 }
 0x696   :  { %v831_v16 = vadd.f32 1e-05, %v830_v14 }
 0x69c   :  { %v665_v4 = vpop.xlane.xlu0 %664 }
 0x69d   :  { %v667_v10 = vmul.f32 0.015625, %v665_v4 }
 0x69f   :  { %v669_v15 = vadd.f32 1e-05, %v667_v10 }
 0x6a0   :  { %v335_v5 = vpop.permute.xlu0 %334 }
 0x6a1   :  { %v359_v7 = vsel %vm88_vm0, %v335_v5, 0.0  ;;  %4389 = vrsqrt.f32 %v669_v15 }
 0x6a2   :  { %360 = vadd.xlane.f32.xlu1 %v359_v7  ;;  %4391 = vrsqrt.f32 %v831_v16 }
 0x6ab   :  { %v4390_v17 = vpop.eup %4389 }
 0x6ac   :  { %v4392_v9 = vpop.eup %4391  ;;  %v673_v25 = vmul.f32 %v4390_v17, %v657_v43 }
 0x6ad   :  { %v833_v26 = vmul.f32 %v4392_v9, %v825_v37 }
 0x6af   :  { %v855_v30 = vadd.f32 %v833_v26, %v673_v25 }
 0x6b1   :  { %v3700_v31 = vmul.f32 -1.442695, %v855_v30 }
 0x6b3   :  { %4393 = vpow2.f32 %v3700_v31 }
 0x6bd   :  { %v4394_v34 = vpop.eup %4393 }
 0x6be   :  { %v859_v36 = vadd.f32 1.0, %v4394_v34 }
 0x6c0   :  { %4395 = vrcp.f32 %v859_v36 }
 0x6ca   :  { %v4396_v44 = vpop.eup %4395 }
 0x6cc   :  { %v846_v32 = vpop.permute.xlu1 %845 }
 0x6cd   :  { %v848_v33 = vsel %vm88_vm0, %v846_v32, 0.0 }
 0x6ce   :  { %849 = vadd.xlane.f32.xlu1 %v848_v33 }
 0x6d0   :  { %v1073_v35 = vpop.permute.xlu1 %1072 }
 0x6d1   :  { %v224_v38 = vpop.xlane.xlu0 %223  ;;  %v1078_v39 = vsel %vm88_vm0, %v1073_v35, 0.0 }
 0x6d2   :  { %v245_v40 = vmul.f32 0.015625, %v224_v38  ;;  %1079 = vadd.xlane.f32.xlu1 %v1078_v39 }
 0x6d4   :  { %v253_v41 = vsub.f32 %v4935_v46, %v245_v40 }
 0x6d6   :  { %v261_v43 = vmul.f32 %v253_v41, %v253_v41 }
 0x6d8   :  { %v271_v37 = vsel %vm218_vm2, %v261_v43, 0.0 }
 0x6d9   :  { %272 = vadd.xlane.f32.xlu1 %v271_v37 }
 0x6df   :  { %v864_v45 = vpop.permute.xlu0 %863 }
 0x6e0   :  { %v866_v47 = vmul.f32 %v4396_v44, %v864_v45 }
 0x6e2   :  { %868 = vrot.lane.b32.xlu0 %v866_v47, %s4655_s17  ;;  %v873_v47 = vsub.f32 1.0, %v4396_v44 }
 0x70f   :  { %v1026_v48 = vpop.xlane.xlu1 %1025 }
 0x710   :  { %v1030_v49 = vmul.f32 0.015625, %v1026_v48 }
 0x712   :  { %v1032_v51 = vsub.f32 %v4920_v12, %v1030_v49  ;;  %v874_v49 = vmul.f32 %v873_v47, %v4780_v20 }
 0x714   :  { %v1034_v54 = vmul.f32 %v1032_v51, %v1032_v51 }
 0x716   :  { %v1036_v57 = vsel %vm218_vm2, %v1034_v54, 0.0 }
 0x717   :  { %1037 = vadd.xlane.f32.xlu1 %v1036_v57 }
 0x72f   :  { %v361_v22 = vpop.xlane.xlu1 %360 }
 0x730   :  { %v382_v59 = vmul.f32 0.03125, %v361_v22 }
 0x732   :  { %v390_v60 = vsub.f32 %v4935_v46, %v382_v59 }
 0x734   :  { %v398_v61 = vmul.f32 %v390_v60, %v390_v60 }
 0x736   :  { %415 = vrot.lane.b32.xlu1 %v398_v61, %s4653_s2 }
 0x754   :  { %v869_v10 = vpop.permute.xlu0 %868 }
 0x75b   :  { %v850_v62 = vpop.xlane.xlu1 %849 }
 0x75c   :  { %v851_v0 = vmul.f32 0.03125, %v850_v62 }
 0x75e   :  { %v852_v1 = vadd.f32 1e-05, %v851_v0 }
 0x75f   :  { %v1080_v4 = vpop.xlane.xlu1 %1079 }
 0x760   :  { %4397 = vrsqrt.f32 %v852_v1  ;;  %v1084_v5 = vmul.f32 0.03125, %v1080_v4 }
 0x762   :  { %v1086_v7 = vadd.f32 1e-05, %v1084_v5 }
 0x764   :  { %4399 = vrsqrt.f32 %v1086_v7 }
 0x766   :  { %v273_v17 = vpop.xlane.xlu1 %272 }
 0x767   :  { %v293_v30 = vmul.f32 0.015625, %v273_v17 }
 0x769   :  { %v301_v32 = vadd.f32 1e-05, %v293_v30 }
 0x76a   :  { %v4398_v12 = vpop.eup %4397 }
 0x76b   :  { %v854_v8 = vmul.f32 %v4398_v12, %v4941_v50 }
 0x76d   :  { %v871_v14 = vadd.f32 %v869_v10, %v854_v8 }
 0x76e   :  { %v4400_v15 = vpop.eup %4399 }
 0x76f   :  { %4401 = vtanh.f32 %v871_v14  ;;  %v1090_v46 = vmul.f32 %v4400_v15, %v4946_v58 }
 0x771   :  { %1100 = vrot.lane.b32.xlu0 %v1090_v46, %s4654_s5 }
 0x779   :  { %v4402_v16 = vpop.eup %4401 }
 0x77a   :  { %876 = vrot.lane.b32.xlu0 %v4402_v16, %s4653_s2 }
 0x7a4   :  { %v1038_v9 = vpop.xlane.xlu1 %1037 }
 0x7a5   :  { %v1042_v25 = vmul.f32 0.015625, %v1038_v9 }
 0x7a7   :  { %v1044_v50 = vadd.f32 1e-05, %v1042_v25 }
 0x7a8   :  { %v416_v26 = vpop.permute.xlu1 %415 }
 0x7a9   :  { %v440_v31 = vsel %vm88_vm0, %v416_v26, 0.0  ;;  %4403 = vrsqrt.f32 %v1044_v50 }
 0x7aa   :  { %441 = vadd.xlane.f32.xlu0 %v440_v31  ;;  %4405 = vrsqrt.f32 %v301_v32 }
 0x7b3   :  { %v4404_v33 = vpop.eup %4403 }
 0x7b4   :  { %v4406_v34 = vpop.eup %4405  ;;  %v1048_v58 = vmul.f32 %v4404_v33, %v1032_v51 }
 0x7b5   :  { %v317_v35 = vmul.f32 %v4406_v34, %v253_v41 }
 0x7b7   :  { %v1092_v36 = vadd.f32 %v1048_v58, %v317_v35 }
 0x7b9   :  { %v3703_v38 = vmul.f32 -1.442695, %v1092_v36 }
 0x7bb   :  { %4407 = vpow2.f32 %v3703_v38 }
 0x7c5   :  { %v4408_v39 = vpop.eup %4407 }
 0x7c6   :  { %v1096_v40 = vadd.f32 1.0, %v4408_v39 }
 0x7c8   :  { %4409 = vrcp.f32 %v1096_v40 }
 0x7d2   :  { %v4410_v43 = vpop.eup %4409 }
 0x7d3   :  { %v1110_v5 = vsub.f32 1.0, %v4410_v43 }
 0x7d5   :  { %v1111_v12 = vmul.f32 %v1110_v5, %v4890_v63 }
 0x7e3   :  { %v1101_v37 = vpop.permute.xlu0 %1100 }
 0x7e4   :  { %v1103_v45 = vmul.f32 %v4410_v43, %v1101_v37 }
 0x7e6   :  { %1105 = vrot.lane.b32.xlu1 %v1103_v45, %s4655_s17 }
 0x7ec   :  { %v877_v48 = vpop.permute.xlu0 %876 }
 0x7ed   :  { %v879_v54 = vmul.f32 %v4396_v44, %v877_v48 }
 0x7ef   :  { %v4972_v57 = vadd.f32 %v879_v54, %v874_v49 }
 0x7f1   :  { %3971 = vmatmul.mubr.msk.f32.vlgmr.msra.gmra.mrb[6].mxu0 %vm88_vm0, %v4972_v57 }
 0x7f2   :  { %4248 = vmatpush3.bf16.msra.mxu0 %v4747_v11  ;;  %3992 = vmatprep.mubr.msk.f32.mxu0 %vm4651_vm1, %v4652_v19 }
 0x7f3   :  { %4249 = vmatprep.subr.bf16.mxu0 %v4650_v13 }
 0x7f6   :  { %4251 = vmatpush3.bf16.msra.mxu0 %v4770_v18 }
 0x7f7   :  { %4258 = vmatprep.subr.bf16.mxu0 %v4650_v13 }
 0x837   :  { %v442_v41 = vpop.xlane.xlu0 %441 }
 0x838   :  { %v462_v51 = vmul.f32 0.03125, %v442_v41  ;;  %v5022_v41 = vadd.f32 %v4794_v23, %v4911_v3 }
 0x83a   :  { %v470_v20 = vadd.f32 1e-05, %v462_v51  ;;  %v225_v23 = vsel %vm218_vm2, %v5022_v41, 0.0 }
 0x83c   :  { %4411 = vrsqrt.f32 %v470_v20 }
 0x846   :  { %v4412_v44 = vpop.eup %4411 }
 0x847   :  { %v486_v22 = vmul.f32 %v4412_v44, %v390_v60 }
 0x858   :  { %v1106_v59 = vpop.permute.xlu1 %1105 }
 0x859   :  { %v1108_v61 = vadd.f32 %v1106_v59, %v486_v22 }
 0x85b   :  { %4413 = vtanh.f32 %v1108_v61 }
 0x865   :  { %v4414_v62 = vpop.eup %4413 }
 0x866   :  { %1113 = vrot.lane.b32.xlu1 %v4414_v62, %s4653_s2 }
 0x8c4   :  { %v1020_v0 = vpop.f32.mrb[6].mxu0 }
 0x8c5   :  { %v1021_v1 = vadd.f32 %v4884_v56, %v1020_v0  ;;  %v3972_v4 = vpop.f32.mrb[7].mxu0 }
 0x8c7   :  { %1054 = vrot.lane.b32.xlu1 %v1021_v1, %s4653_s2  ;;  %v1027_v50 = vsel %vm218_vm2, %v1021_v1, 0.0 }
 0x8d8   :  { %v1114_v7 = vpop.permute.xlu1 %1113 }
 0x8d9   :  { %v1116_v8 = vmul.f32 %v4410_v43, %v1114_v7 }
 0x8db   :  { %v4986_v10 = vadd.f32 %v1116_v8, %v1111_v12 }
 0x8dd   :  { %3982 = vmatmul.mubr.msk.f32.vlgmr.msra.gmra.mrb[10].mxu1 %vm88_vm0, %v4986_v10  ;;  %3993 = vmatmul.mubr.msk.f32.vlgmr.msra.gmra.mrb[8].mxu0 %vm88_vm0, %v4986_v10 }
 0x8de   :  { %4254 = vmatpush3.bf16.msra.mxu1 %v4827_v53  ;;  %4003 = vmatprep.mubr.msk.f32.mxu1 %vm4651_vm1, %v4652_v19 }
 0x8df   :  { %4255 = vmatprep.subr.bf16.mxu1 %v4650_v13  ;;  %4260 = vmatpush3.bf16.msra.mxu0 %v4860_v42 }
 0x8e0   :  { %4261 = vmatprep.subr.bf16.mxu0 %v4650_v13  ;;  %4014 = vmatprep.mubr.msk.f32.mxu0 %vm4651_vm1, %v4652_v19 }
 0x8e2   :  { %4257 = vmatpush3.bf16.msra.mxu1 %v4833_v55 }
 0x8e3   :  { %4264 = vmatprep.subr.bf16.mxu1 %v4650_v13  ;;  %4263 = vmatpush3.bf16.msra.mxu0 %v4875_v52 }
 0x8e4   :  { %4270 = vmatprep.subr.bf16.mxu0 %v4650_v13 }
 0x939   :  { %v1055_v63 = vpop.permute.xlu1 %1054 }
 0x93a   :  { %v1061_v60 = vsel %vm88_vm0, %v1055_v63, 0.0 }
 0x93b   :  { %1062 = vadd.xlane.f32.xlu1 %v1061_v60 }
 0x9b0   :  { %v1187_v14 = vpop.f32.mrb[10].mxu1  ;;  %v1317_v15 = vpop.f32.mrb[8].mxu0 }
 0x9b1   :  { %v1188_v46 = vadd.f32 %v4916_v6, %v1187_v14  ;;  %v3983_v16 = vpop.f32.mrb[11].mxu1  ;;  %v3994_v17 = vpop.f32.mrb[9].mxu0  ;;  %v5008_v9 = vadd.f32 %v4807_v29, %v1317_v15 }
 0x9b3   :  { %1205 = vrot.lane.b32.xlu0 %v1188_v46, %s4653_s2  ;;  %v1191_v32 = vsel %vm218_vm2, %v1188_v46, 0.0  ;;  %v1394_v12 = vsel %vm218_vm2, %v5008_v9, 0.0 }
 0x9b7   :  { %1422 = vrot.lane.b32.xlu0 %v5008_v9, %s4653_s2 }
 0x9c8   :  { %v1063_v25 = vpop.xlane.xlu1 %1062 }
 0x9c9   :  { %v1065_v26 = vmul.f32 0.03125, %v1063_v25 }
 0x9cb   :  { %v1067_v30 = vsub.f32 %v1021_v1, %v1065_v26 }
 0x9cd   :  { %v1069_v31 = vmul.f32 %v1067_v30, %v1067_v30 }
 0x9cf   :  { %1074 = vrot.lane.b32.xlu1 %v1069_v31, %s4653_s2 }
 0x9d6   :  { %1028 = vadd.xlane.f32.xlu0 %v1027_v50 }
 0x9f3   :  { %1192 = vadd.xlane.f32.xlu1 %v1191_v32 }
 0xa25   :  { %v1206_v33 = vpop.permute.xlu0 %1205 }
 0xa26   :  { %v1208_v34 = vsel %vm88_vm0, %v1206_v33, 0.0 }
 0xa27   :  { %1209 = vadd.xlane.f32.xlu0 %v1208_v34 }
 0xa29   :  { %v1423_v29 = vpop.permute.xlu0 %1422 }
 0xa2a   :  { %v1428_v58 = vsel %vm88_vm0, %v1423_v29, 0.0 }
 0xa2b   :  { %1429 = vadd.xlane.f32.xlu0 %v1428_v58 }
 0xa41   :  { %v1075_v35 = vpop.permute.xlu1 %1074 }
 0xa42   :  { %v1081_v36 = vsel %vm88_vm0, %v1075_v35, 0.0 }
 0xa43   :  { %1082 = vadd.xlane.f32.xlu0 %v1081_v36 }
 0xa63   :  { %v1029_v38 = vpop.xlane.xlu0 %1028 }
 0xa64   :  { %v1031_v39 = vmul.f32 0.015625, %v1029_v38 }
 0xa66   :  { %v1033_v40 = vsub.f32 %v1021_v1, %v1031_v39 }
 0xa68   :  { %v1035_v43 = vmul.f32 %v1033_v40, %v1033_v40 }
 0xa6a   :  { %v1039_v37 = vsel %vm218_vm2, %v1035_v43, 0.0 }
 0xa6b   :  { %1040 = vadd.xlane.f32.xlu0 %v1039_v37 }
 0xa80   :  { %v1193_v45 = vpop.xlane.xlu1 %1192 }
 0xa81   :  { %v1194_v47 = vmul.f32 0.015625, %v1193_v45 }
 0xa83   :  { %v1195_v48 = vsub.f32 %v1188_v46, %v1194_v47 }
 0xa85   :  { %v1196_v49 = vmul.f32 %v1195_v48, %v1195_v48 }
 0xa87   :  { %v1197_v54 = vsel %vm218_vm2, %v1196_v49, 0.0 }
 0xa88   :  { %1198 = vadd.xlane.f32.xlu0 %v1197_v54 }
 0xa9e   :  { %336 = vrot.lane.b32.xlu0 %v5022_v41, %s4653_s2 }
 0xab4   :  { %v1210_v51 = vpop.xlane.xlu0 %1209 }
 0xab5   :  { %v1211_v20 = vmul.f32 0.03125, %v1210_v51 }
 0xab7   :  { %v5026_v44 = vsub.f32 %v1188_v46, %v1211_v20 }
 0xab8   :  { %v1430_v22 = vpop.xlane.xlu0 %1429 }
 0xab9   :  { %v1434_v59 = vmul.f32 0.03125, %v1430_v22  ;;  %v1213_v61 = vmul.f32 %v5026_v44, %v5026_v44 }
 0xabb   :  { %v5031_v62 = vsub.f32 %v5008_v9, %v1434_v59  ;;  %1215 = vrot.lane.b32.xlu1 %v1213_v61, %s4653_s2 }
 0xabd   :  { %226 = vadd.xlane.f32.xlu0 %v225_v23  ;;  %v1438_v3 = vmul.f32 %v5031_v62, %v5031_v62 }
 0xabf   :  { %1442 = vrot.lane.b32.xlu1 %v1438_v3, %s4653_s2 }
 0xad0   :  { %v1083_v0 = vpop.xlane.xlu0 %1082 }
 0xad1   :  { %v1085_v1 = vmul.f32 0.03125, %v1083_v0 }
 0xad3   :  { %v1087_v4 = vadd.f32 1e-05, %v1085_v1 }
 0xad5   :  { %4415 = vrsqrt.f32 %v1087_v4 }
 0xadf   :  { %v4416_v5 = vpop.eup %4415 }
 0xae0   :  { %v1091_v7 = vmul.f32 %v4416_v5, %v1067_v30 }
 0xae2   :  { %1233 = vrot.lane.b32.xlu0 %v1091_v7, %s4654_s5 }
 0xae3   :  { %1395 = vadd.xlane.f32.xlu1 %v1394_v12 }
 0xaf8   :  { %v1041_v8 = vpop.xlane.xlu0 %1040 }
 0xaf9   :  { %v1043_v15 = vmul.f32 0.015625, %v1041_v8 }
 0xafb   :  { %v1045_v17 = vadd.f32 1e-05, %v1043_v15 }
 0xb15   :  { %v1199_v63 = vpop.xlane.xlu0 %1198 }
 0xb16   :  { %v1200_v60 = vmul.f32 0.015625, %v1199_v63 }
 0xb18   :  { %v1201_v16 = vadd.f32 1e-05, %v1200_v60 }
 0xb19   :  { %v337_v14 = vpop.permute.xlu0 %336 }
 0xb1a   :  { %v362_v46 = vsel %vm88_vm0, %v337_v14, 0.0  ;;  %4417 = vrsqrt.f32 %v1201_v16 }
 0xb1b   :  { %363 = vadd.xlane.f32.xlu1 %v362_v46  ;;  %4419 = vrsqrt.f32 %v1045_v17 }
 0xb24   :  { %v4418_v25 = vpop.eup %4417 }
 0xb25   :  { %v4420_v26 = vpop.eup %4419  ;;  %v1203_v30 = vmul.f32 %v4418_v25, %v1195_v48 }
 0xb26   :  { %v1049_v32 = vmul.f32 %v4420_v26, %v1033_v40 }
 0xb28   :  { %v1225_v33 = vadd.f32 %v1203_v30, %v1049_v32 }
 0xb2a   :  { %v3705_v58 = vmul.f32 -1.442695, %v1225_v33 }
 0xb2c   :  { %4421 = vpow2.f32 %v3705_v58 }
 0xb2d   :  { %v1216_v31 = vpop.permute.xlu1 %1215 }
 0xb2e   :  { %v1218_v50 = vsel %vm88_vm0, %v1216_v31, 0.0 }
 0xb2f   :  { %1219 = vadd.xlane.f32.xlu1 %v1218_v50 }
 0xb31   :  { %v1443_v34 = vpop.permute.xlu1 %1442 }
 0xb32   :  { %v1448_v29 = vsel %vm88_vm0, %v1443_v34, 0.0 }
 0xb33   :  { %1449 = vadd.xlane.f32.xlu1 %v1448_v29 }
 0xb36   :  { %v4422_v35 = vpop.eup %4421 }
 0xb37   :  { %v1229_v36 = vadd.f32 1.0, %v4422_v35 }
 0xb39   :  { %4423 = vrcp.f32 %v1229_v36 }
 0xb43   :  { %v4424_v40 = vpop.eup %4423 }
 0xb4a   :  { %v227_v38 = vpop.xlane.xlu0 %226 }
 0xb4b   :  { %v246_v39 = vmul.f32 0.015625, %v227_v38 }
 0xb4d   :  { %v254_v43 = vsub.f32 %v5022_v41, %v246_v39 }
 0xb4f   :  { %v262_v37 = vmul.f32 %v254_v43, %v254_v43 }
 0xb51   :  { %v274_v45 = vsel %vm218_vm2, %v262_v37, 0.0  ;;  %v1243_v37 = vsub.f32 1.0, %v4424_v40 }
 0xb52   :  { %275 = vadd.xlane.f32.xlu1 %v274_v45 }
 0xb54   :  { %v1234_v47 = vpop.permute.xlu0 %1233 }
 0xb55   :  { %v1236_v48 = vmul.f32 %v4424_v40, %v1234_v47  ;;  %v1244_v47 = vmul.f32 %v1243_v37, %v4972_v57 }
 0xb57   :  { %1238 = vrot.lane.b32.xlu0 %v1236_v48, %s4655_s17 }
 0xb70   :  { %v1396_v49 = vpop.xlane.xlu1 %1395 }
 0xb71   :  { %v1400_v54 = vmul.f32 0.015625, %v1396_v49 }
 0xb73   :  { %v1402_v51 = vsub.f32 %v5008_v9, %v1400_v54 }
 0xb75   :  { %v1404_v20 = vmul.f32 %v1402_v51, %v1402_v51 }
 0xb77   :  { %v1406_v22 = vsel %vm218_vm2, %v1404_v20, 0.0 }
 0xb78   :  { %1407 = vadd.xlane.f32.xlu1 %v1406_v22 }
 0xba8   :  { %v364_v59 = vpop.xlane.xlu1 %363 }
 0xba9   :  { %v383_v61 = vmul.f32 0.03125, %v364_v59 }
 0xbab   :  { %v391_v23 = vsub.f32 %v5022_v41, %v383_v61 }
 0xbad   :  { %v399_v3 = vmul.f32 %v391_v23, %v391_v23 }
 0xbaf   :  { %417 = vrot.lane.b32.xlu1 %v399_v3, %s4653_s2 }
 0xbbc   :  { %v1220_v0 = vpop.xlane.xlu1 %1219 }
 0xbbd   :  { %v1221_v1 = vmul.f32 0.03125, %v1220_v0 }
 0xbbf   :  { %v1222_v4 = vadd.f32 1e-05, %v1221_v1 }
 0xbc0   :  { %v1450_v5 = vpop.xlane.xlu1 %1449 }
 0xbc1   :  { %4425 = vrsqrt.f32 %v1222_v4  ;;  %v1454_v7 = vmul.f32 0.03125, %v1450_v5 }
 0xbc3   :  { %v1456_v12 = vadd.f32 1e-05, %v1454_v7 }
 0xbc5   :  { %4427 = vrsqrt.f32 %v1456_v12 }
 0xbc9   :  { %v1239_v63 = vpop.permute.xlu0 %1238 }
 0xbcb   :  { %v4426_v9 = vpop.eup %4425 }
 0xbcc   :  { %v1224_v8 = vmul.f32 %v4426_v9, %v5026_v44 }
 0xbce   :  { %v1241_v60 = vadd.f32 %v1239_v63, %v1224_v8 }
 0xbcf   :  { %v4428_v14 = vpop.eup %4427 }
 0xbd0   :  { %4429 = vtanh.f32 %v1241_v60  ;;  %v1460_v41 = vmul.f32 %v4428_v14, %v5031_v62 }
 0xbd2   :  { %1470 = vrot.lane.b32.xlu0 %v1460_v41, %s4654_s5  ;;  %v5097_v41 = vld [vmem:[%s5676_s6] ss:$0 sm:$0xff] }
 0xbda   :  { %v4430_v15 = vpop.eup %4429 }
 0xbdb   :  { %1246 = vrot.lane.b32.xlu0 %v4430_v15, %s4653_s2 }
 0xbdf   :  { %v276_v46 = vpop.xlane.xlu1 %275 }
 0xbe0   :  { %v294_v25 = vmul.f32 0.015625, %v276_v46 }
 0xbe2   :  { %v302_v30 = vadd.f32 1e-05, %v294_v25 }
 0xc05   :  { %v1408_v16 = vpop.xlane.xlu1 %1407 }
 0xc06   :  { %v1412_v17 = vmul.f32 0.015625, %v1408_v16 }
 0xc08   :  { %v1414_v26 = vadd.f32 1e-05, %v1412_v17 }
 0xc0a   :  { %4431 = vrsqrt.f32 %v1414_v26 }
 0xc0b   :  { %4433 = vrsqrt.f32 %v302_v30 }
 0xc14   :  { %v4432_v44 = vpop.eup %4431 }
 0xc15   :  { %v4434_v31 = vpop.eup %4433  ;;  %v1418_v50 = vmul.f32 %v4432_v44, %v1402_v51 }
 0xc16   :  { %v318_v32 = vmul.f32 %v4434_v31, %v254_v43 }
 0xc18   :  { %v1462_v33 = vadd.f32 %v1418_v50, %v318_v32 }
 0xc1a   :  { %v3708_v29 = vmul.f32 -1.442695, %v1462_v33 }
 0xc1c   :  { %4435 = vpow2.f32 %v3708_v29 }
 0xc21   :  { %v418_v34 = vpop.permute.xlu1 %417 }
 0xc22   :  { %v443_v62 = vsel %vm88_vm0, %v418_v34, 0.0 }
 0xc23   :  { %444 = vadd.xlane.f32.xlu0 %v443_v62 }
 0xc26   :  { %v4436_v58 = vpop.eup %4435 }
 0xc27   :  { %v1466_v35 = vadd.f32 1.0, %v4436_v58 }
 0xc29   :  { %4437 = vrcp.f32 %v1466_v35 }
 0xc33   :  { %v4438_v36 = vpop.eup %4437 }
 0xc34   :  { %v1480_v4 = vsub.f32 1.0, %v4438_v36 }
 0xc36   :  { %v1481_v7 = vmul.f32 %v1480_v4, %v4986_v10 }
 0xc44   :  { %v1471_v38 = vpop.permute.xlu0 %1470 }
 0xc45   :  { %v1473_v39 = vmul.f32 %v4438_v36, %v1471_v38 }
 0xc47   :  { %1475 = vrot.lane.b32.xlu1 %v1473_v39, %s4655_s17 }
 0xc4d   :  { %v1247_v45 = vpop.permute.xlu0 %1246 }
 0xc4e   :  { %v1249_v43 = vmul.f32 %v4424_v40, %v1247_v45 }
 0xc50   :  { %v5059_v48 = vadd.f32 %v1249_v43, %v1244_v47  ;;  %v5115_v47 = vld [vmem:[%s5674_s4] ss:$0 sm:$0xff] }
 0xc51   :  { %v5119_v43 = vadd.f32 %v5115_v47, %v4909_v2 }
 0xc52   :  { %4004 = vmatmul.mubr.msk.f32.vlgmr.msra.gmra.mrb[12].mxu1 %vm88_vm0, %v5059_v48 }
 0xc53   :  { %4266 = vmatpush3.bf16.msra.mxu1 %v4747_v11  ;;  %4025 = vmatprep.mubr.msk.f32.mxu1 %vm4651_vm1, %v4652_v19 }
 0xc54   :  { %4267 = vmatprep.subr.bf16.mxu1 %v4650_v13 }
 0xc57   :  { %4269 = vmatpush3.bf16.msra.mxu1 %v4770_v18 }
 0xc58   :  { %4276 = vmatprep.subr.bf16.mxu1 %v4650_v13 }
 0xcb0   :  { %v445_v49 = vpop.xlane.xlu0 %444 }
 0xcb1   :  { %v463_v54 = vmul.f32 0.03125, %v445_v49 }
 0xcb3   :  { %v471_v51 = vadd.f32 1e-05, %v463_v54  ;;  %v228_v54 = vsel %vm218_vm2, %v5119_v43, 0.0 }
 0xcb5   :  { %4439 = vrsqrt.f32 %v471_v51 }
 0xcb9   :  { %v1476_v22 = vpop.permute.xlu1 %1475 }
 0xcbf   :  { %v4440_v40 = vpop.eup %4439 }
 0xcc0   :  { %v487_v20 = vmul.f32 %v4440_v40, %v391_v23 }
 0xcc2   :  { %v1478_v59 = vadd.f32 %v1476_v22, %v487_v20 }
 0xcc4   :  { %4441 = vtanh.f32 %v1478_v59 }
 0xcce   :  { %v4442_v61 = vpop.eup %4441 }
 0xccf   :  { %1483 = vrot.lane.b32.xlu1 %v4442_v61, %s4653_s2 }
 0xd25   :  { %v1390_v3 = vpop.f32.mrb[12].mxu1 }
 0xd26   :  { %v1391_v0 = vadd.f32 %v4884_v56, %v1390_v3  ;;  %v4005_v1 = vpop.f32.mrb[13].mxu1 }
 0xd28   :  { %1424 = vrot.lane.b32.xlu1 %v1391_v0, %s4653_s2 }
 0xd41   :  { %v1484_v5 = vpop.permute.xlu1 %1483 }
 0xd42   :  { %v1486_v12 = vmul.f32 %v4438_v36, %v1484_v5 }
 0xd44   :  { %v5073_v9 = vadd.f32 %v1486_v12, %v1481_v7 }
 0xd46   :  { %4015 = vmatmul.mubr.msk.f32.vlgmr.msra.gmra.mrb[10].mxu0 %vm88_vm0, %v5073_v9  ;;  %4026 = vmatmul.mubr.msk.f32.vlgmr.msra.gmra.mrb[14].mxu1 %vm88_vm0, %v5073_v9 }
 0xd47   :  { %4272 = vmatpush3.bf16.msra.mxu0 %v4827_v53  ;;  %4036 = vmatprep.mubr.msk.f32.mxu0 %vm4651_vm1, %v4652_v19 }
 0xd48   :  { %4273 = vmatprep.subr.bf16.mxu0 %v4650_v13  ;;  %4278 = vmatpush3.bf16.msra.mxu1 %v4860_v42 }
 0xd49   :  { %4279 = vmatprep.subr.bf16.mxu1 %v4650_v13  ;;  %4047 = vmatprep.mubr.msk.f32.mxu1 %vm4651_vm1, %v4652_v19 }
 0xd4b   :  { %4275 = vmatpush3.bf16.msra.mxu0 %v4833_v55 }
 0xd4c   :  { %4282 = vmatprep.subr.bf16.mxu0 %v4650_v13  ;;  %4281 = vmatpush3.bf16.msra.mxu1 %v4875_v52 }
 0xd4d   :  { %4288 = vmatprep.subr.bf16.mxu1 %v4650_v13 }
 0xd9a   :  { %v1425_v56 = vpop.permute.xlu1 %1424 }
 0xd9b   :  { %v1431_v10 = vsel %vm88_vm0, %v1425_v56, 0.0 }
 0xd9c   :  { %1432 = vadd.xlane.f32.xlu1 %v1431_v10 }
 0xe19   :  { %v1557_v23 = vpop.f32.mrb[10].mxu0  ;;  %v1687_v8 = vpop.f32.mrb[14].mxu1 }
 0xe1a   :  { %v1558_v63 = vadd.f32 %v4916_v6, %v1557_v23  ;;  %v4016_v60 = vpop.f32.mrb[11].mxu0  ;;  %v4027_v14 = vpop.f32.mrb[15].mxu1  ;;  %v5100_v15 = vadd.f32 %v5097_v41, %v1687_v8  ;;  %v1397_v6 = vsel %vm218_vm2, %v1391_v0, 0.0 }
 0xe1c   :  { %1575 = vrot.lane.b32.xlu0 %v1558_v63, %s4653_s2  ;;  %v1561_v26 = vsel %vm218_vm2, %v1558_v63, 0.0  ;;  %v1764_v7 = vsel %vm218_vm2, %v5100_v15, 0.0 }
 0xe20   :  { %1792 = vrot.lane.b32.xlu0 %v5100_v15, %s4653_s2 }
 0xe29   :  { %v1433_v46 = vpop.xlane.xlu1 %1432 }
 0xe2a   :  { %v1435_v16 = vmul.f32 0.03125, %v1433_v46 }
 0xe2c   :  { %v1437_v17 = vsub.f32 %v1391_v0, %v1435_v16 }
 0xe2e   :  { %v1439_v25 = vmul.f32 %v1437_v17, %v1437_v17 }
 0xe30   :  { %1444 = vrot.lane.b32.xlu1 %v1439_v25, %s4653_s2 }
 0xe3f   :  { %1398 = vadd.xlane.f32.xlu0 %v1397_v6 }
 0xe54   :  { %1562 = vadd.xlane.f32.xlu1 %v1561_v26 }
 0xe8e   :  { %v1576_v30 = vpop.permute.xlu0 %1575 }
 0xe8f   :  { %v1578_v44 = vsel %vm88_vm0, %v1576_v30, 0.0 }
 0xe90   :  { %1579 = vadd.xlane.f32.xlu0 %v1578_v44 }
 0xe92   :  { %v1793_v31 = vpop.permute.xlu0 %1792 }
 0xe93   :  { %v1798_v50 = vsel %vm88_vm0, %v1793_v31, 0.0 }
 0xe94   :  { %1799 = vadd.xlane.f32.xlu0 %v1798_v50 }
 0xea2   :  { %v1445_v32 = vpop.permute.xlu1 %1444 }
 0xea3   :  { %v1451_v33 = vsel %vm88_vm0, %v1445_v32, 0.0 }
 0xea4   :  { %1452 = vadd.xlane.f32.xlu0 %v1451_v33 }
 0xecc   :  { %v1399_v34 = vpop.xlane.xlu0 %1398 }
 0xecd   :  { %v1401_v62 = vmul.f32 0.015625, %v1399_v34 }
 0xecf   :  { %v1403_v29 = vsub.f32 %v1391_v0, %v1401_v62 }
 0xed1   :  { %v1405_v58 = vmul.f32 %v1403_v29, %v1403_v29 }
 0xed3   :  { %v1409_v35 = vsel %vm218_vm2, %v1405_v58, 0.0 }
 0xed4   :  { %1410 = vadd.xlane.f32.xlu0 %v1409_v35 }
 0xee1   :  { %v1563_v36 = vpop.xlane.xlu1 %1562 }
 0xee2   :  { %v1564_v38 = vmul.f32 0.015625, %v1563_v36 }
 0xee4   :  { %v1565_v39 = vsub.f32 %v1558_v63, %v1564_v38 }
 0xee6   :  { %v1566_v37 = vmul.f32 %v1565_v39, %v1565_v39 }
 0xee8   :  { %v1567_v45 = vsel %vm218_vm2, %v1566_v37, 0.0 }
 0xee9   :  { %1568 = vadd.xlane.f32.xlu0 %v1567_v45 }
 0xeff   :  { %338 = vrot.lane.b32.xlu0 %v5119_v43, %s4653_s2 }
 0xf1d   :  { %v1580_v49 = vpop.xlane.xlu0 %1579 }
 0xf1e   :  { %v1581_v51 = vmul.f32 0.03125, %v1580_v49  ;;  %229 = vadd.xlane.f32.xlu0 %v228_v54 }
 0xf20   :  { %v5125_v40 = vsub.f32 %v1558_v63, %v1581_v51 }
 0xf21   :  { %v1800_v20 = vpop.xlane.xlu0 %1799 }
 0xf22   :  { %v1804_v22 = vmul.f32 0.03125, %v1800_v20  ;;  %v1583_v59 = vmul.f32 %v5125_v40, %v5125_v40 }
 0xf24   :  { %v5130_v61 = vsub.f32 %v5100_v15, %v1804_v22  ;;  %1585 = vrot.lane.b32.xlu1 %v1583_v59, %s4653_s2 }
 0xf26   :  { %v1808_v2 = vmul.f32 %v5130_v61, %v5130_v61 }
 0xf28   :  { %1812 = vrot.lane.b32.xlu1 %v1808_v2, %s4653_s2 }
 0xf31   :  { %v1453_v3 = vpop.xlane.xlu0 %1452 }
 0xf32   :  { %v1455_v0 = vmul.f32 0.03125, %v1453_v3 }
 0xf34   :  { %v1457_v1 = vadd.f32 1e-05, %v1455_v0 }
 0xf36   :  { %4443 = vrsqrt.f32 %v1457_v1 }
 0xf40   :  { %v4444_v4 = vpop.eup %4443 }
 0xf41   :  { %v1461_v5 = vmul.f32 %v4444_v4, %v1437_v17 }
 0xf43   :  { %1603 = vrot.lane.b32.xlu0 %v1461_v5, %s4654_s5 }
 0xf4c   :  { %1765 = vadd.xlane.f32.xlu1 %v1764_v7 }
 0xf61   :  { %v1411_v12 = vpop.xlane.xlu0 %1410 }
 0xf62   :  { %v1413_v8 = vmul.f32 0.015625, %v1411_v12 }
 0xf64   :  { %v1415_v14 = vadd.f32 1e-05, %v1413_v8 }
 0xf76   :  { %v1569_v56 = vpop.xlane.xlu0 %1568 }
 0xf77   :  { %v1570_v10 = vmul.f32 0.015625, %v1569_v56 }
 0xf79   :  { %v1571_v60 = vadd.f32 1e-05, %v1570_v10 }
 0xf7a   :  { %v339_v23 = vpop.permute.xlu0 %338 }
 0xf7b   :  { %v365_v63 = vsel %vm88_vm0, %v339_v23, 0.0  ;;  %4445 = vrsqrt.f32 %v1571_v60 }
 0xf7c   :  { %366 = vadd.xlane.f32.xlu1 %v365_v63  ;;  %4447 = vrsqrt.f32 %v1415_v14 }
 0xf85   :  { %v4446_v46 = vpop.eup %4445 }
 0xf86   :  { %v4448_v16 = vpop.eup %4447  ;;  %v1573_v17 = vmul.f32 %v4446_v46, %v1565_v39 }
 0xf87   :  { %v1419_v25 = vmul.f32 %v4448_v16, %v1403_v29 }
 0xf89   :  { %v1595_v6 = vadd.f32 %v1573_v17, %v1419_v25 }
 0xf8b   :  { %v3710_v26 = vmul.f32 -1.442695, %v1595_v6 }
 0xf8d   :  { %4449 = vpow2.f32 %v3710_v26 }
 0xf96   :  { %v1586_v30 = vpop.permute.xlu1 %1585 }
 0xf97   :  { %v1588_v44 = vsel %vm88_vm0, %v1586_v30, 0.0  ;;  %v4450_v32 = vpop.eup %4449 }
 0xf98   :  { %1589 = vadd.xlane.f32.xlu1 %v1588_v44  ;;  %v1599_v33 = vadd.f32 1.0, %v4450_v32 }
 0xf9a   :  { %v1813_v31 = vpop.permute.xlu1 %1812  ;;  %4451 = vrcp.f32 %v1599_v33 }
 0xf9b   :  { %v1818_v50 = vsel %vm88_vm0, %v1813_v31, 0.0 }
 0xf9c   :  { %1819 = vadd.xlane.f32.xlu1 %v1818_v50 }
 0xfa4   :  { %v4452_v36 = vpop.eup %4451 }
 0xfab   :  { %v230_v34 = vpop.xlane.xlu0 %229 }
 0xfac   :  { %v247_v62 = vmul.f32 0.015625, %v230_v34 }
 0xfae   :  { %v255_v58 = vsub.f32 %v5119_v43, %v247_v62 }
 0xfb0   :  { %v263_v35 = vmul.f32 %v255_v58, %v255_v58 }
 0xfb2   :  { %v277_v29 = vsel %vm218_vm2, %v263_v35, 0.0  ;;  %v1613_v35 = vsub.f32 1.0, %v4452_v36 }
 0xfb3   :  { %278 = vadd.xlane.f32.xlu1 %v277_v29 }
 0xfb5   :  { %v1604_v38 = vpop.permute.xlu0 %1603 }
 0xfb6   :  { %v1606_v39 = vmul.f32 %v4452_v36, %v1604_v38  ;;  %v1614_v38 = vmul.f32 %v1613_v35, %v5059_v48 }
 0xfb8   :  { %1608 = vrot.lane.b32.xlu0 %v1606_v39, %s4655_s17 }
 0xfd9   :  { %v1766_v37 = vpop.xlane.xlu1 %1765 }
 0xfda   :  { %v1770_v45 = vmul.f32 0.015625, %v1766_v37 }
 0xfdc   :  { %v1772_v49 = vsub.f32 %v5100_v15, %v1770_v45 }
 0xfde   :  { %v1774_v54 = vmul.f32 %v1772_v49, %v1772_v49 }
 0xfe0   :  { %v1776_v51 = vsel %vm218_vm2, %v1774_v54, 0.0 }
 0xfe1   :  { %1777 = vadd.xlane.f32.xlu1 %v1776_v51 }
0x1009   :  { %v367_v20 = vpop.xlane.xlu1 %366 }
0x100a   :  { %v384_v22 = vmul.f32 0.03125, %v367_v20 }
0x100c   :  { %v392_v59 = vsub.f32 %v5119_v43, %v384_v22 }
0x100e   :  { %v400_v2 = vmul.f32 %v392_v59, %v392_v59 }
0x1010   :  { %419 = vrot.lane.b32.xlu1 %v400_v2, %s4653_s2 }
0x1025   :  { %v1590_v3 = vpop.xlane.xlu1 %1589 }
0x1026   :  { %v1591_v0 = vmul.f32 0.03125, %v1590_v3  ;;  %v5170_v3 = vld [vmem:[%s5676_s6 + $0x1] ss:$0 sm:$0xff] }
0x1028   :  { %v1592_v1 = vadd.f32 1e-05, %v1591_v0 }
0x1029   :  { %v1820_v4 = vpop.xlane.xlu1 %1819 }
0x102a   :  { %4453 = vrsqrt.f32 %v1592_v1  ;;  %v1824_v5 = vmul.f32 0.03125, %v1820_v4  ;;  %v1609_v56 = vpop.permute.xlu0 %1608 }
0x102c   :  { %v1826_v7 = vadd.f32 1e-05, %v1824_v5 }
0x102e   :  { %4455 = vrsqrt.f32 %v1826_v7 }
0x1034   :  { %v4454_v15 = vpop.eup %4453 }
0x1035   :  { %v1594_v12 = vmul.f32 %v4454_v15, %v5125_v40 }
0x1037   :  { %v1611_v10 = vadd.f32 %v1609_v56, %v1594_v12 }
0x1038   :  { %v4456_v23 = vpop.eup %4455 }
0x1039   :  { %4457 = vtanh.f32 %v1611_v10  ;;  %v1830_v43 = vmul.f32 %v4456_v23, %v5130_v61  ;;  %v5197_v23 = vld [vmem:[%s5674_s4 + $0x1] ss:$0 sm:$0xff] }
0x103b   :  { %1840 = vrot.lane.b32.xlu0 %v1830_v43, %s4654_s5 }
0x1040   :  { %v279_v63 = vpop.xlane.xlu1 %278 }
0x1041   :  { %v295_v46 = vmul.f32 0.015625, %v279_v63 }
0x1043   :  { %v4458_v8 = vpop.eup %4457  ;;  %v303_v17 = vadd.f32 1e-05, %v295_v46 }
0x1044   :  { %1616 = vrot.lane.b32.xlu0 %v4458_v8, %s4653_s2 }
0x106e   :  { %v1778_v60 = vpop.xlane.xlu1 %1777 }
0x106f   :  { %v1782_v14 = vmul.f32 0.015625, %v1778_v60 }
0x1071   :  { %v1784_v16 = vadd.f32 1e-05, %v1782_v14 }
0x1073   :  { %4459 = vrsqrt.f32 %v1784_v16 }
0x1074   :  { %4461 = vrsqrt.f32 %v303_v17 }
0x107d   :  { %v4460_v25 = vpop.eup %4459 }
0x107e   :  { %v4462_v26 = vpop.eup %4461  ;;  %v1788_v61 = vmul.f32 %v4460_v25, %v1772_v49 }
0x107f   :  { %v319_v30 = vmul.f32 %v4462_v26, %v255_v58 }
0x1081   :  { %v1832_v44 = vadd.f32 %v1788_v61, %v319_v30 }
0x1082   :  { %v420_v40 = vpop.permute.xlu1 %419 }
0x1083   :  { %v446_v6 = vsel %vm88_vm0, %v420_v40, 0.0  ;;  %v3713_v31 = vmul.f32 -1.442695, %v1832_v44 }
0x1084   :  { %447 = vadd.xlane.f32.xlu0 %v446_v6 }
0x1085   :  { %4463 = vpow2.f32 %v3713_v31 }
0x108f   :  { %v4464_v50 = vpop.eup %4463 }
0x1090   :  { %v1836_v32 = vadd.f32 1.0, %v4464_v50 }
0x1092   :  { %4465 = vrcp.f32 %v1836_v32 }
0x109c   :  { %v4466_v33 = vpop.eup %4465 }
0x109d   :  { %v1850_v4 = vsub.f32 1.0, %v4466_v33 }
0x10ad   :  { %v1841_v34 = vpop.permute.xlu0 %1840 }
0x10ae   :  { %v1843_v62 = vmul.f32 %v4466_v33, %v1841_v34 }
0x10b0   :  { %1845 = vrot.lane.b32.xlu1 %v1843_v62, %s4655_s17 }
0x10b6   :  { %v1617_v29 = vpop.permute.xlu0 %1616 }
0x10b7   :  { %v1619_v39 = vmul.f32 %v4452_v36, %v1617_v29 }
0x10b9   :  { %v5156_v37 = vadd.f32 %v1619_v39, %v1614_v38 }
0x10bb   :  { %4037 = vmatmul.mubr.msk.f32.vlgmr.msra.gmra.mrb[12].mxu0 %vm88_vm0, %v5156_v37 }
0x10bc   :  { %4284 = vmatpush3.bf16.msra.mxu0 %v4747_v11  ;;  %4058 = vmatprep.mubr.msk.f32.mxu0 %vm4651_vm1, %v4652_v19 }
0x10bd   :  { %4285 = vmatprep.subr.bf16.mxu0 %v4650_v13 }
0x10c0   :  { %4287 = vmatpush3.bf16.msra.mxu0 %v4770_v18 }
0x10c1   :  { %4294 = vmatprep.subr.bf16.mxu0 %v4650_v13 }
0x1111   :  { %v448_v58 = vpop.xlane.xlu0 %447 }
0x1112   :  { %v464_v45 = vmul.f32 0.03125, %v448_v58 }
0x1114   :  { %v472_v49 = vadd.f32 1e-05, %v464_v45  ;;  %v5216_v45 = vadd.f32 %v5115_v47, %v4796_v24 }
0x1116   :  { %4467 = vrsqrt.f32 %v472_v49  ;;  %v231_v24 = vsel %vm218_vm2, %v5216_v45, 0.0 }
0x1120   :  { %v4468_v36 = vpop.eup %4467 }
0x1121   :  { %v488_v54 = vmul.f32 %v4468_v36, %v392_v59  ;;  %v1851_v59 = vmul.f32 %v1850_v4, %v5073_v9 }
0x1122   :  { %v1846_v51 = vpop.permute.xlu1 %1845 }
0x1123   :  { %v1848_v20 = vadd.f32 %v1846_v51, %v488_v54 }
0x1125   :  { %4469 = vtanh.f32 %v1848_v20 }
0x112f   :  { %v4470_v22 = vpop.eup %4469 }
0x1130   :  { %1853 = vrot.lane.b32.xlu1 %v4470_v22, %s4653_s2 }
0x118e   :  { %v1760_v2 = vpop.f32.mrb[12].mxu0 }
0x118f   :  { %v1761_v0 = vadd.f32 %v5170_v3, %v1760_v2  ;;  %v4038_v1 = vpop.f32.mrb[13].mxu0 }
0x1191   :  { %1794 = vrot.lane.b32.xlu1 %v1761_v0, %s4653_s2  ;;  %v1767_v40 = vsel %vm218_vm2, %v1761_v0, 0.0 }
0x11a2   :  { %v1854_v5 = vpop.permute.xlu1 %1853 }
0x11a3   :  { %v1856_v7 = vmul.f32 %v4466_v33, %v1854_v5 }
0x11a5   :  { %v5175_v15 = vadd.f32 %v1856_v7, %v1851_v59 }
0x11a7   :  { %4048 = vmatmul.mubr.msk.f32.vlgmr.msra.gmra.mrb[16].mxu1 %vm88_vm0, %v5175_v15  ;;  %4059 = vmatmul.mubr.msk.f32.vlgmr.msra.gmra.mrb[14].mxu0 %vm88_vm0, %v5175_v15 }
0x11a8   :  { %4290 = vmatpush3.bf16.msra.mxu1 %v4827_v53  ;;  %4069 = vmatprep.mubr.msk.f32.mxu1 %vm4651_vm1, %v4652_v19 }
0x11a9   :  { %4291 = vmatprep.subr.bf16.mxu1 %v4650_v13  ;;  %4296 = vmatpush3.bf16.msra.mxu0 %v4860_v42 }
0x11aa   :  { %4297 = vmatprep.subr.bf16.mxu0 %v4650_v13  ;;  %4080 = vmatprep.mubr.msk.f32.mxu0 %vm4651_vm1, %v4652_v19 }
0x11ac   :  { %4293 = vmatpush3.bf16.msra.mxu1 %v4833_v55 }
0x11ad   :  { %4300 = vmatprep.subr.bf16.mxu1 %v4650_v13  ;;  %4299 = vmatpush3.bf16.msra.mxu0 %v4875_v52 }
0x11ae   :  { %4306 = vmatprep.subr.bf16.mxu0 %v4650_v13 }
0x1203   :  { %v1795_v9 = vpop.permute.xlu1 %1794 }
0x1204   :  { %v1801_v12 = vsel %vm88_vm0, %v1795_v9, 0.0 }
0x1205   :  { %1802 = vadd.xlane.f32.xlu1 %v1801_v12 }
0x127a   :  { %v1927_v56 = vpop.f32.mrb[16].mxu1  ;;  %v2057_v10 = vpop.f32.mrb[14].mxu0 }
0x127b   :  { %v1928_v43 = vadd.f32 %v5197_v23, %v1927_v56  ;;  %v4049_v8 = vpop.f32.mrb[17].mxu1  ;;  %v4060_v63 = vpop.f32.mrb[15].mxu0  ;;  %v5202_v60 = vadd.f32 %v5097_v41, %v2057_v10 }
0x127d   :  { %1945 = vrot.lane.b32.xlu0 %v1928_v43, %s4653_s2  ;;  %v1931_v25 = vsel %vm218_vm2, %v1928_v43, 0.0  ;;  %v2134_v9 = vsel %vm218_vm2, %v5202_v60, 0.0 }
0x1281   :  { %2162 = vrot.lane.b32.xlu0 %v5202_v60, %s4653_s2 }
0x1292   :  { %v1803_v14 = vpop.xlane.xlu1 %1802 }
0x1293   :  { %v1805_v46 = vmul.f32 0.03125, %v1803_v14 }
0x1295   :  { %v1807_v16 = vsub.f32 %v1761_v0, %v1805_v46 }
0x1297   :  { %v1809_v17 = vmul.f32 %v1807_v16, %v1807_v16 }
0x1299   :  { %1814 = vrot.lane.b32.xlu1 %v1809_v17, %s4653_s2 }
0x12a0   :  { %1768 = vadd.xlane.f32.xlu0 %v1767_v40 }
0x12bd   :  { %1932 = vadd.xlane.f32.xlu1 %v1931_v25 }
0x12ef   :  { %v1946_v6 = vpop.permute.xlu0 %1945 }
0x12f0   :  { %v1948_v26 = vsel %vm88_vm0, %v1946_v6, 0.0 }
0x12f1   :  { %1949 = vadd.xlane.f32.xlu0 %v1948_v26 }
0x12f3   :  { %v2163_v61 = vpop.permute.xlu0 %2162 }
0x12f4   :  { %v2168_v30 = vsel %vm88_vm0, %v2163_v61, 0.0 }
0x12f5   :  { %2169 = vadd.xlane.f32.xlu0 %v2168_v30 }
0x130b   :  { %v1815_v44 = vpop.permute.xlu1 %1814 }
0x130c   :  { %v1821_v31 = vsel %vm88_vm0, %v1815_v44, 0.0 }
0x130d   :  { %1822 = vadd.xlane.f32.xlu0 %v1821_v31 }
0x132d   :  { %v1769_v50 = vpop.xlane.xlu0 %1768 }
0x132e   :  { %v1771_v32 = vmul.f32 0.015625, %v1769_v50 }
0x1330   :  { %v1773_v33 = vsub.f32 %v1761_v0, %v1771_v32 }
0x1332   :  { %v1775_v34 = vmul.f32 %v1773_v33, %v1773_v33 }
0x1334   :  { %v1779_v62 = vsel %vm218_vm2, %v1775_v34, 0.0 }
0x1335   :  { %1780 = vadd.xlane.f32.xlu0 %v1779_v62 }
0x134a   :  { %v1933_v35 = vpop.xlane.xlu1 %1932 }
0x134b   :  { %v1934_v29 = vmul.f32 0.015625, %v1933_v35 }
0x134d   :  { %v1935_v38 = vsub.f32 %v1928_v43, %v1934_v29 }
0x134f   :  { %v1936_v39 = vmul.f32 %v1935_v38, %v1935_v38 }
0x1351   :  { %v1937_v58 = vsel %vm218_vm2, %v1936_v39, 0.0 }
0x1352   :  { %1938 = vadd.xlane.f32.xlu0 %v1937_v58 }
0x1368   :  { %340 = vrot.lane.b32.xlu0 %v5216_v45, %s4653_s2 }
0x137e   :  { %v1950_v49 = vpop.xlane.xlu0 %1949 }
0x137f   :  { %v1951_v36 = vmul.f32 0.03125, %v1950_v49 }
0x1381   :  { %v5220_v54 = vsub.f32 %v1928_v43, %v1951_v36 }
0x1382   :  { %v2170_v51 = vpop.xlane.xlu0 %2169 }
0x1383   :  { %v1953_v20 = vmul.f32 %v5220_v54, %v5220_v54  ;;  %v2174_v22 = vmul.f32 0.03125, %v2170_v51 }
0x1385   :  { %v5225_v2 = vsub.f32 %v5202_v60, %v2174_v22  ;;  %1955 = vrot.lane.b32.xlu1 %v1953_v20, %s4653_s2 }
0x1387   :  { %v2178_v0 = vmul.f32 %v5225_v2, %v5225_v2  ;;  %232 = vadd.xlane.f32.xlu0 %v231_v24 }
0x1389   :  { %2182 = vrot.lane.b32.xlu1 %v2178_v0, %s4653_s2 }
0x139a   :  { %v1823_v1 = vpop.xlane.xlu0 %1822 }
0x139b   :  { %v1825_v4 = vmul.f32 0.03125, %v1823_v1 }
0x139d   :  { %v1827_v5 = vadd.f32 1e-05, %v1825_v4 }
0x139f   :  { %4471 = vrsqrt.f32 %v1827_v5 }
0x13a9   :  { %v4472_v59 = vpop.eup %4471 }
0x13aa   :  { %v1831_v7 = vmul.f32 %v4472_v59, %v1807_v16 }
0x13ac   :  { %1973 = vrot.lane.b32.xlu0 %v1831_v7, %s4654_s5 }
0x13ad   :  { %2135 = vadd.xlane.f32.xlu1 %v2134_v9 }
0x13c2   :  { %v1781_v12 = vpop.xlane.xlu0 %1780 }
0x13c3   :  { %v1783_v8 = vmul.f32 0.015625, %v1781_v12 }
0x13c5   :  { %v1785_v46 = vadd.f32 1e-05, %v1783_v8 }
0x13df   :  { %v1939_v56 = vpop.xlane.xlu0 %1938 }
0x13e0   :  { %v1940_v10 = vmul.f32 0.015625, %v1939_v56 }
0x13e2   :  { %v1941_v14 = vadd.f32 1e-05, %v1940_v10 }
0x13e3   :  { %v341_v43 = vpop.permute.xlu0 %340 }
0x13e4   :  { %v368_v63 = vsel %vm88_vm0, %v341_v43, 0.0  ;;  %4473 = vrsqrt.f32 %v1941_v14 }
0x13e5   :  { %369 = vadd.xlane.f32.xlu1 %v368_v63  ;;  %4475 = vrsqrt.f32 %v1785_v46 }
0x13ee   :  { %v4474_v17 = vpop.eup %4473 }
0x13ef   :  { %v4476_v16 = vpop.eup %4475  ;;  %v1943_v40 = vmul.f32 %v4474_v17, %v1935_v38 }
0x13f0   :  { %v1789_v26 = vmul.f32 %v4476_v16, %v1773_v33 }
0x13f2   :  { %v1965_v61 = vadd.f32 %v1943_v40, %v1789_v26 }
0x13f4   :  { %v3715_v31 = vmul.f32 -1.442695, %v1965_v61 }
0x13f6   :  { %4477 = vpow2.f32 %v3715_v31 }
0x13f7   :  { %v1956_v25 = vpop.permute.xlu1 %1955 }
0x13f8   :  { %v1958_v6 = vsel %vm88_vm0, %v1956_v25, 0.0 }
0x13f9   :  { %1959 = vadd.xlane.f32.xlu1 %v1958_v6 }
0x13fb   :  { %v2183_v30 = vpop.permute.xlu1 %2182 }
0x13fc   :  { %v2188_v44 = vsel %vm88_vm0, %v2183_v30, 0.0 }
0x13fd   :  { %2189 = vadd.xlane.f32.xlu1 %v2188_v44 }
0x1400   :  { %v4478_v50 = vpop.eup %4477 }
0x1401   :  { %v1969_v32 = vadd.f32 1.0, %v4478_v50 }
0x1403   :  { %4479 = vrcp.f32 %v1969_v32 }
0x140d   :  { %v4480_v33 = vpop.eup %4479 }
0x1414   :  { %v233_v34 = vpop.xlane.xlu0 %232 }
0x1415   :  { %v248_v62 = vmul.f32 0.015625, %v233_v34 }
0x1417   :  { %v256_v35 = vsub.f32 %v5216_v45, %v248_v62 }
0x1419   :  { %v264_v29 = vmul.f32 %v256_v35, %v256_v35 }
0x141b   :  { %v280_v38 = vsel %vm218_vm2, %v264_v29, 0.0 }
0x141c   :  { %281 = vadd.xlane.f32.xlu1 %v280_v38 }
0x141e   :  { %v1974_v39 = vpop.permute.xlu0 %1973 }
0x141f   :  { %v1976_v58 = vmul.f32 %v4480_v33, %v1974_v39  ;;  %v1983_v39 = vsub.f32 1.0, %v4480_v33 }
0x1421   :  { %1978 = vrot.lane.b32.xlu0 %v1976_v58, %s4655_s17 }
0x143a   :  { %v2136_v49 = vpop.xlane.xlu1 %2135 }
0x143b   :  { %v2140_v36 = vmul.f32 0.015625, %v2136_v49  ;;  %v1984_v49 = vmul.f32 %v1983_v39, %v5156_v37 }
0x143d   :  { %v2142_v51 = vsub.f32 %v5202_v60, %v2140_v36 }
0x143f   :  { %v2144_v20 = vmul.f32 %v2142_v51, %v2142_v51 }
0x1441   :  { %v2146_v22 = vsel %vm218_vm2, %v2144_v20, 0.0 }
0x1442   :  { %2147 = vadd.xlane.f32.xlu1 %v2146_v22 }
0x1472   :  { %v370_v24 = vpop.xlane.xlu1 %369 }
0x1473   :  { %v385_v0 = vmul.f32 0.03125, %v370_v24 }
0x1475   :  { %v393_v1 = vsub.f32 %v5216_v45, %v385_v0 }
0x1477   :  { %v401_v4 = vmul.f32 %v393_v1, %v393_v1 }
0x1479   :  { %421 = vrot.lane.b32.xlu1 %v401_v4, %s4653_s2 }
0x1486   :  { %v1960_v5 = vpop.xlane.xlu1 %1959 }
0x1487   :  { %v1961_v59 = vmul.f32 0.03125, %v1960_v5 }
0x1489   :  { %v1962_v7 = vadd.f32 1e-05, %v1961_v59 }
0x148a   :  { %v2190_v9 = vpop.xlane.xlu1 %2189 }
0x148b   :  { %4481 = vrsqrt.f32 %v1962_v7  ;;  %v2194_v12 = vmul.f32 0.03125, %v2190_v9 }
0x148d   :  { %v2196_v56 = vadd.f32 1e-05, %v2194_v12 }
0x148f   :  { %4483 = vrsqrt.f32 %v2196_v56 }
0x1493   :  { %v1979_v43 = vpop.permute.xlu0 %1978 }
0x1495   :  { %v4482_v60 = vpop.eup %4481 }
0x1496   :  { %v1964_v10 = vmul.f32 %v4482_v60, %v5220_v54 }
0x1498   :  { %v1981_v8 = vadd.f32 %v1979_v43, %v1964_v10 }
0x1499   :  { %v4484_v63 = vpop.eup %4483 }
0x149a   :  { %4485 = vtanh.f32 %v1981_v8  ;;  %v2200_v45 = vmul.f32 %v4484_v63, %v5225_v2 }
0x149c   :  { %2210 = vrot.lane.b32.xlu0 %v2200_v45, %s4654_s5 }
0x14a4   :  { %v4486_v14 = vpop.eup %4485 }
0x14a5   :  { %1986 = vrot.lane.b32.xlu0 %v4486_v14, %s4653_s2 }
0x14a9   :  { %v282_v46 = vpop.xlane.xlu1 %281 }
0x14aa   :  { %v296_v40 = vmul.f32 0.015625, %v282_v46 }
0x14ac   :  { %v304_v6 = vadd.f32 1e-05, %v296_v40 }
0x14cf   :  { %v2148_v17 = vpop.xlane.xlu1 %2147 }
0x14d0   :  { %v2152_v16 = vmul.f32 0.015625, %v2148_v17 }
0x14d2   :  { %v2154_v25 = vadd.f32 1e-05, %v2152_v16 }
0x14d4   :  { %4487 = vrsqrt.f32 %v2154_v25 }
0x14d5   :  { %4489 = vrsqrt.f32 %v304_v6 }
0x14de   :  { %v4488_v54 = vpop.eup %4487 }
0x14df   :  { %v4490_v26 = vpop.eup %4489  ;;  %v2158_v61 = vmul.f32 %v4488_v54, %v2142_v51 }
0x14e0   :  { %v320_v30 = vmul.f32 %v4490_v26, %v256_v35 }
0x14e2   :  { %v2202_v44 = vadd.f32 %v2158_v61, %v320_v30 }
0x14e4   :  { %v3718_v50 = vmul.f32 -1.442695, %v2202_v44 }
0x14e6   :  { %4491 = vpow2.f32 %v3718_v50 }
0x14eb   :  { %v422_v31 = vpop.permute.xlu1 %421 }
0x14ec   :  { %v449_v2 = vsel %vm88_vm0, %v422_v31, 0.0 }
0x14ed   :  { %450 = vadd.xlane.f32.xlu0 %v449_v2 }
0x14f0   :  { %v4492_v32 = vpop.eup %4491 }
0x14f1   :  { %v2206_v34 = vadd.f32 1.0, %v4492_v32 }
0x14f3   :  { %4493 = vrcp.f32 %v2206_v34 }
0x14fd   :  { %v4494_v62 = vpop.eup %4493 }
0x14fe   :  { %v2220_v12 = vsub.f32 1.0, %v4494_v62 }
0x1500   :  { %v2221_v60 = vmul.f32 %v2220_v12, %v5175_v15 }
0x150e   :  { %v2211_v29 = vpop.permute.xlu0 %2210 }
0x150f   :  { %v2213_v38 = vmul.f32 %v4494_v62, %v2211_v29 }
0x1511   :  { %2215 = vrot.lane.b32.xlu1 %v2213_v38, %s4655_s17 }
0x1517   :  { %v1987_v58 = vpop.permute.xlu0 %1986 }
0x1518   :  { %v1989_v35 = vmul.f32 %v4480_v33, %v1987_v58 }
0x151a   :  { %v5253_v36 = vadd.f32 %v1989_v35, %v1984_v49 }
0x151c   :  { %4070 = vmatmul.mubr.msk.f32.vlgmr.msra.gmra.mrb[18].mxu1 %vm88_vm0, %v5253_v36 }
0x151d   :  { %4302 = vmatpush3.bf16.msra.mxu1 %v4747_v11  ;;  %4091 = vmatprep.mubr.msk.f32.mxu1 %vm4651_vm1, %v4652_v19 }
0x151e   :  { %4303 = vmatprep.subr.bf16.mxu1 %v4650_v13 }
0x1521   :  { %4305 = vmatpush3.bf16.msra.mxu1 %v4770_v18 }
0x1522   :  { %4312 = vmatprep.subr.bf16.mxu1 %v4650_v13 }
0x157a   :  { %v451_v51 = vpop.xlane.xlu0 %450 }
0x157b   :  { %v465_v20 = vmul.f32 0.03125, %v451_v51  ;;  %v5303_v51 = vadd.f32 %v5115_v47, %v4787_v21 }
0x157d   :  { %v473_v22 = vadd.f32 1e-05, %v465_v20 }
0x157f   :  { %4495 = vrsqrt.f32 %v473_v22  ;;  %v234_v22 = vsel %vm218_vm2, %v5303_v51, 0.0 }
0x1583   :  { %v2216_v0 = vpop.permute.xlu1 %2215 }
0x1589   :  { %v4496_v33 = vpop.eup %4495 }
0x158a   :  { %v489_v24 = vmul.f32 %v4496_v33, %v393_v1 }
0x158c   :  { %v2218_v4 = vadd.f32 %v2216_v0, %v489_v24 }
0x158e   :  { %4497 = vtanh.f32 %v2218_v4 }
0x1598   :  { %v4498_v5 = vpop.eup %4497 }
0x1599   :  { %2223 = vrot.lane.b32.xlu1 %v4498_v5, %s4653_s2 }
0x15ef   :  { %v2130_v59 = vpop.f32.mrb[18].mxu1 }
0x15f0   :  { %v2131_v7 = vadd.f32 %v5170_v3, %v2130_v59  ;;  %v4071_v9 = vpop.f32.mrb[19].mxu1 }
0x15f2   :  { %2164 = vrot.lane.b32.xlu1 %v2131_v7, %s4653_s2  ;;  %v2137_v54 = vsel %vm218_vm2, %v2131_v7, 0.0 }
0x160b   :  { %v2224_v56 = vpop.permute.xlu1 %2223 }
0x160c   :  { %v2226_v10 = vmul.f32 %v4494_v62, %v2224_v56 }
0x160e   :  { %v5267_v43 = vadd.f32 %v2226_v10, %v2221_v60 }
0x1610   :  { %4081 = vmatmul.mubr.msk.f32.vlgmr.msra.gmra.mrb[16].mxu0 %vm88_vm0, %v5267_v43  ;;  %4092 = vmatmul.mubr.msk.f32.vlgmr.msra.gmra.mrb[20].mxu1 %vm88_vm0, %v5267_v43 }
0x1611   :  { %4308 = vmatpush3.bf16.msra.mxu0 %v4827_v53  ;;  %4102 = vmatprep.mubr.msk.f32.mxu0 %vm4651_vm1, %v4652_v19 }
0x1612   :  { %4309 = vmatprep.subr.bf16.mxu0 %v4650_v13  ;;  %4314 = vmatpush3.bf16.msra.mxu1 %v4860_v42 }
0x1613   :  { %4315 = vmatprep.subr.bf16.mxu1 %v4650_v13  ;;  %4113 = vmatprep.mubr.msk.f32.mxu1 %vm4651_vm1, %v4652_v19 }
0x1615   :  { %4311 = vmatpush3.bf16.msra.mxu0 %v4833_v55 }
0x1616   :  { %4318 = vmatprep.subr.bf16.mxu0 %v4650_v13  ;;  %4317 = vmatpush3.bf16.msra.mxu1 %v4875_v52 }
0x1617   :  { %4324 = vmatprep.subr.bf16.mxu1 %v4650_v13 }
0x1664   :  { %v2165_v15 = vpop.permute.xlu1 %2164 }
0x1665   :  { %v2171_v1 = vsel %vm88_vm0, %v2165_v15, 0.0 }
0x1666   :  { %2172 = vadd.xlane.f32.xlu1 %v2171_v1 }
0x16e3   :  { %v2297_v8 = vpop.f32.mrb[16].mxu0  ;;  %v2427_v63 = vpop.f32.mrb[20].mxu1 }
0x16e4   :  { %v2298_v45 = vadd.f32 %v5197_v23, %v2297_v8  ;;  %v4082_v14 = vpop.f32.mrb[17].mxu0  ;;  %v4093_v46 = vpop.f32.mrb[21].mxu1  ;;  %v5289_v17 = vadd.f32 %v5097_v41, %v2427_v63 }
0x16e6   :  { %2315 = vrot.lane.b32.xlu0 %v2298_v45, %s4653_s2  ;;  %v2301_v26 = vsel %vm218_vm2, %v2298_v45, 0.0  ;;  %v2504_v60 = vsel %vm218_vm2, %v5289_v17, 0.0 }
0x16ea   :  { %2532 = vrot.lane.b32.xlu0 %v5289_v17, %s4653_s2 }
0x16f3   :  { %v2173_v16 = vpop.xlane.xlu1 %2172 }
0x16f4   :  { %v2175_v40 = vmul.f32 0.03125, %v2173_v16 }
0x16f6   :  { %v2177_v25 = vsub.f32 %v2131_v7, %v2175_v40 }
0x16f8   :  { %v2179_v6 = vmul.f32 %v2177_v25, %v2177_v25 }
0x16fa   :  { %2184 = vrot.lane.b32.xlu1 %v2179_v6, %s4653_s2 }
0x1709   :  { %2138 = vadd.xlane.f32.xlu0 %v2137_v54 }
0x171e   :  { %2302 = vadd.xlane.f32.xlu1 %v2301_v26 }
0x1758   :  { %v2316_v61 = vpop.permute.xlu0 %2315 }
0x1759   :  { %v2318_v30 = vsel %vm88_vm0, %v2316_v61, 0.0 }
0x175a   :  { %2319 = vadd.xlane.f32.xlu0 %v2318_v30 }
0x175c   :  { %v2533_v41 = vpop.permute.xlu0 %2532 }
0x175d   :  { %v2538_v44 = vsel %vm88_vm0, %v2533_v41, 0.0 }
0x175e   :  { %2539 = vadd.xlane.f32.xlu0 %v2538_v44 }
0x176c   :  { %v2185_v31 = vpop.permute.xlu1 %2184 }
0x176d   :  { %v2191_v2 = vsel %vm88_vm0, %v2185_v31, 0.0 }
0x176e   :  { %2192 = vadd.xlane.f32.xlu0 %v2191_v2 }
0x1796   :  { %v2139_v50 = vpop.xlane.xlu0 %2138 }
0x1797   :  { %v2141_v32 = vmul.f32 0.015625, %v2139_v50 }
0x1799   :  { %v2143_v34 = vsub.f32 %v2131_v7, %v2141_v32 }
0x179b   :  { %v2145_v62 = vmul.f32 %v2143_v34, %v2143_v34 }
0x179d   :  { %v2149_v29 = vsel %vm218_vm2, %v2145_v62, 0.0 }
0x179e   :  { %2150 = vadd.xlane.f32.xlu0 %v2149_v29 }
0x17ab   :  { %v2303_v38 = vpop.xlane.xlu1 %2302 }
0x17ac   :  { %v2304_v39 = vmul.f32 0.015625, %v2303_v38 }
0x17ae   :  { %v2305_v58 = vsub.f32 %v2298_v45, %v2304_v39 }
0x17b0   :  { %v2306_v49 = vmul.f32 %v2305_v58, %v2305_v58 }
0x17b2   :  { %v2307_v35 = vsel %vm218_vm2, %v2306_v49, 0.0 }
0x17b3   :  { %2308 = vadd.xlane.f32.xlu0 %v2307_v35 }
0x17c9   :  { %342 = vrot.lane.b32.xlu0 %v5303_v51, %s4653_s2 }
0x17e7   :  { %v2320_v20 = vpop.xlane.xlu0 %2319 }
0x17e8   :  { %v2321_v33 = vmul.f32 0.03125, %v2320_v20  ;;  %235 = vadd.xlane.f32.xlu0 %v234_v22 }
0x17ea   :  { %v5309_v24 = vsub.f32 %v2298_v45, %v2321_v33 }
0x17eb   :  { %v2540_v0 = vpop.xlane.xlu0 %2539 }
0x17ec   :  { %v2323_v4 = vmul.f32 %v5309_v24, %v5309_v24  ;;  %v2544_v5 = vmul.f32 0.03125, %v2540_v0 }
0x17ee   :  { %v5314_v59 = vsub.f32 %v5289_v17, %v2544_v5  ;;  %2325 = vrot.lane.b32.xlu1 %v2323_v4, %s4653_s2 }
0x17f0   :  { %v2548_v21 = vmul.f32 %v5314_v59, %v5314_v59 }
0x17f2   :  { %2552 = vrot.lane.b32.xlu1 %v2548_v21, %s4653_s2 }
0x17fb   :  { %v2193_v47 = vpop.xlane.xlu0 %2192 }
0x17fc   :  { %v2195_v7 = vmul.f32 0.03125, %v2193_v47 }
0x17fe   :  { %v2197_v9 = vadd.f32 1e-05, %v2195_v7 }
0x1800   :  { %4499 = vrsqrt.f32 %v2197_v9 }
0x180a   :  { %v4500_v12 = vpop.eup %4499 }
0x180b   :  { %v2201_v56 = vmul.f32 %v4500_v12, %v2177_v25 }
0x180d   :  { %2343 = vrot.lane.b32.xlu0 %v2201_v56, %s4654_s5 }
0x1816   :  { %2505 = vadd.xlane.f32.xlu1 %v2504_v60 }
0x182b   :  { %v2151_v10 = vpop.xlane.xlu0 %2150 }
0x182c   :  { %v2153_v63 = vmul.f32 0.015625, %v2151_v10 }
0x182e   :  { %v2155_v46 = vadd.f32 1e-05, %v2153_v63 }
0x1840   :  { %v2309_v15 = vpop.xlane.xlu0 %2308 }
0x1841   :  { %v2310_v1 = vmul.f32 0.015625, %v2309_v15 }
0x1843   :  { %v2311_v14 = vadd.f32 1e-05, %v2310_v1 }
0x1844   :  { %v343_v8 = vpop.permute.xlu0 %342 }
0x1845   :  { %v371_v45 = vsel %vm88_vm0, %v343_v8, 0.0  ;;  %4501 = vrsqrt.f32 %v2311_v14 }
0x1846   :  { %372 = vadd.xlane.f32.xlu1 %v371_v45  ;;  %4503 = vrsqrt.f32 %v2155_v46 }
0x184f   :  { %v4502_v16 = vpop.eup %4501 }
0x1850   :  { %v4504_v40 = vpop.eup %4503  ;;  %v2313_v25 = vmul.f32 %v4502_v16, %v2305_v58 }
0x1851   :  { %v2159_v6 = vmul.f32 %v4504_v40, %v2143_v34 }
0x1853   :  { %v2335_v54 = vadd.f32 %v2313_v25, %v2159_v6 }
0x1855   :  { %v3720_v26 = vmul.f32 -1.442695, %v2335_v54 }
0x1857   :  { %4505 = vpow2.f32 %v3720_v26 }
0x1860   :  { %v2326_v61 = vpop.permute.xlu1 %2325 }
0x1861   :  { %v2328_v30 = vsel %vm88_vm0, %v2326_v61, 0.0  ;;  %v4506_v31 = vpop.eup %4505 }
0x1862   :  { %2329 = vadd.xlane.f32.xlu1 %v2328_v30  ;;  %v2339_v2 = vadd.f32 1.0, %v4506_v31 }
0x1864   :  { %v2553_v41 = vpop.permute.xlu1 %2552  ;;  %4507 = vrcp.f32 %v2339_v2 }
0x1865   :  { %v2558_v44 = vsel %vm88_vm0, %v2553_v41, 0.0 }
0x1866   :  { %2559 = vadd.xlane.f32.xlu1 %v2558_v44 }
0x186e   :  { %v4508_v38 = vpop.eup %4507 }
0x1875   :  { %v236_v50 = vpop.xlane.xlu0 %235 }
0x1876   :  { %v249_v32 = vmul.f32 0.015625, %v236_v50 }
0x1878   :  { %v257_v62 = vsub.f32 %v5303_v51, %v249_v32 }
0x187a   :  { %v265_v29 = vmul.f32 %v257_v62, %v257_v62 }
0x187c   :  { %v283_v34 = vsel %vm218_vm2, %v265_v29, 0.0  ;;  %v2353_v29 = vsub.f32 1.0, %v4508_v38 }
0x187d   :  { %284 = vadd.xlane.f32.xlu1 %v283_v34 }
0x187f   :  { %v2344_v39 = vpop.permute.xlu0 %2343 }
0x1880   :  { %v2346_v58 = vmul.f32 %v4508_v38, %v2344_v39  ;;  %v2354_v39 = vmul.f32 %v2353_v29, %v5253_v36 }
0x1882   :  { %2348 = vrot.lane.b32.xlu0 %v2346_v58, %s4655_s17 }
0x18a3   :  { %v2506_v49 = vpop.xlane.xlu1 %2505 }
0x18a4   :  { %v2510_v35 = vmul.f32 0.015625, %v2506_v49 }
0x18a6   :  { %v2512_v20 = vsub.f32 %v5289_v17, %v2510_v35 }
0x18a8   :  { %v2514_v22 = vmul.f32 %v2512_v20, %v2512_v20 }
0x18aa   :  { %v2516_v33 = vsel %vm218_vm2, %v2514_v22, 0.0 }
0x18ab   :  { %2517 = vadd.xlane.f32.xlu1 %v2516_v33 }
0x18d3   :  { %v373_v0 = vpop.xlane.xlu1 %372 }
0x18d4   :  { %v386_v4 = vmul.f32 0.03125, %v373_v0 }
0x18d6   :  { %v394_v5 = vsub.f32 %v5303_v51, %v386_v4 }
0x18d8   :  { %v402_v21 = vmul.f32 %v394_v5, %v394_v5 }
0x18da   :  { %423 = vrot.lane.b32.xlu1 %v402_v21, %s4653_s2 }
0x18ef   :  { %v2330_v47 = vpop.xlane.xlu1 %2329 }
0x18f0   :  { %v2331_v7 = vmul.f32 0.03125, %v2330_v47 }
0x18f2   :  { %v2332_v9 = vadd.f32 1e-05, %v2331_v7 }
0x18f3   :  { %v2560_v12 = vpop.xlane.xlu1 %2559 }
0x18f4   :  { %4509 = vrsqrt.f32 %v2332_v9  ;;  %v2564_v56 = vmul.f32 0.03125, %v2560_v12  ;;  %v2349_v15 = vpop.permute.xlu0 %2348 }
0x18f6   :  { %v2566_v60 = vadd.f32 1e-05, %v2564_v56 }
0x18f8   :  { %4511 = vrsqrt.f32 %v2566_v60 }
0x18fe   :  { %v4510_v17 = vpop.eup %4509 }
0x18ff   :  { %v2334_v10 = vmul.f32 %v4510_v17, %v5309_v24 }
0x1901   :  { %v2351_v1 = vadd.f32 %v2349_v15, %v2334_v10 }
0x1902   :  { %v4512_v8 = vpop.eup %4511 }
0x1903   :  { %4513 = vtanh.f32 %v2351_v1  ;;  %v2570_v51 = vmul.f32 %v4512_v8, %v5314_v59 }
0x1905   :  { %2580 = vrot.lane.b32.xlu0 %v2570_v51, %s4654_s5  ;;  %v5378_v51 = vld [vmem:[%s5676_s6] ss:$0 sm:$0xff] }
0x190a   :  { %v285_v45 = vpop.xlane.xlu1 %284 }
0x190b   :  { %v297_v16 = vmul.f32 0.015625, %v285_v45 }
0x190d   :  { %v4514_v63 = vpop.eup %4513  ;;  %v305_v25 = vadd.f32 1e-05, %v297_v16 }
0x190e   :  { %2356 = vrot.lane.b32.xlu0 %v4514_v63, %s4653_s2 }
0x1938   :  { %v2518_v14 = vpop.xlane.xlu1 %2517 }
0x1939   :  { %v2522_v46 = vmul.f32 0.015625, %v2518_v14 }
0x193b   :  { %v2524_v40 = vadd.f32 1e-05, %v2522_v46 }
0x193d   :  { %4515 = vrsqrt.f32 %v2524_v40 }
0x193e   :  { %4517 = vrsqrt.f32 %v305_v25 }
0x1947   :  { %v4516_v6 = vpop.eup %4515 }
0x1948   :  { %v4518_v26 = vpop.eup %4517  ;;  %v2528_v59 = vmul.f32 %v4516_v6, %v2512_v20 }
0x1949   :  { %v321_v61 = vmul.f32 %v4518_v26, %v257_v62 }
0x194b   :  { %v2572_v30 = vadd.f32 %v2528_v59, %v321_v61 }
0x194c   :  { %v424_v24 = vpop.permute.xlu1 %423 }
0x194d   :  { %v452_v54 = vsel %vm88_vm0, %v424_v24, 0.0  ;;  %v3723_v41 = vmul.f32 -1.442695, %v2572_v30 }
0x194e   :  { %453 = vadd.xlane.f32.xlu0 %v452_v54 }
0x194f   :  { %4519 = vpow2.f32 %v3723_v41 }
0x1959   :  { %v4520_v44 = vpop.eup %4519 }
0x195a   :  { %v2576_v31 = vadd.f32 1.0, %v4520_v44 }
0x195c   :  { %4521 = vrcp.f32 %v2576_v31 }
0x1966   :  { %v4522_v2 = vpop.eup %4521 }
0x1967   :  { %v2590_v9 = vsub.f32 1.0, %v4522_v2 }
0x1969   :  { %v2591_v56 = vmul.f32 %v2590_v9, %v5267_v43 }
0x1977   :  { %v2581_v50 = vpop.permute.xlu0 %2580 }
0x1978   :  { %v2583_v32 = vmul.f32 %v4522_v2, %v2581_v50 }
0x197a   :  { %2585 = vrot.lane.b32.xlu1 %v2583_v32, %s4655_s17 }
0x1980   :  { %v2357_v34 = vpop.permute.xlu0 %2356 }
0x1981   :  { %v2359_v58 = vmul.f32 %v4508_v38, %v2357_v34 }
0x1983   :  { %v5340_v49 = vadd.f32 %v2359_v58, %v2354_v39  ;;  %v5396_v39 = vld [vmem:[%s5674_s4] ss:$0 sm:$0xff] }
0x1984   :  { %v5400_v58 = vadd.f32 %v5396_v39, %v4802_v28 }
0x1985   :  { %4103 = vmatmul.mubr.msk.f32.vlgmr.msra.gmra.mrb[18].mxu0 %vm88_vm0, %v5340_v49 }
0x1986   :  { %4320 = vmatpush3.bf16.msra.mxu0 %v4747_v11  ;;  %4124 = vmatprep.mubr.msk.f32.mxu0 %vm4651_vm1, %v4652_v19  ;;  %v237_v28 = vsel %vm218_vm2, %v5400_v58, 0.0 }
0x1987   :  { %4321 = vmatprep.subr.bf16.mxu0 %v4650_v13 }
0x198a   :  { %4323 = vmatpush3.bf16.msra.mxu0 %v4770_v18 }
0x198b   :  { %4330 = vmatprep.subr.bf16.mxu0 %v4650_v13 }
0x19db   :  { %v454_v62 = vpop.xlane.xlu0 %453 }
0x19dc   :  { %v466_v35 = vmul.f32 0.03125, %v454_v62 }
0x19de   :  { %v474_v20 = vadd.f32 1e-05, %v466_v35 }
0x19e0   :  { %4523 = vrsqrt.f32 %v474_v20 }
0x19ea   :  { %v4524_v38 = vpop.eup %4523 }
0x19eb   :  { %v490_v22 = vmul.f32 %v4524_v38, %v394_v5 }
0x19ec   :  { %v2586_v33 = vpop.permute.xlu1 %2585 }
0x19ed   :  { %v2588_v0 = vadd.f32 %v2586_v33, %v490_v22 }
0x19ef   :  { %4525 = vtanh.f32 %v2588_v0 }
0x19f9   :  { %v4526_v4 = vpop.eup %4525 }
0x19fa   :  { %2593 = vrot.lane.b32.xlu1 %v4526_v4, %s4653_s2 }
0x1a58   :  { %v2500_v21 = vpop.f32.mrb[18].mxu0 }
0x1a59   :  { %v2501_v47 = vadd.f32 %v5170_v3, %v2500_v21  ;;  %v4104_v7 = vpop.f32.mrb[19].mxu0 }
0x1a5b   :  { %2534 = vrot.lane.b32.xlu1 %v2501_v47, %s4653_s2 }
0x1a6c   :  { %v2594_v12 = vpop.permute.xlu1 %2593 }
0x1a6d   :  { %v2596_v60 = vmul.f32 %v4522_v2, %v2594_v12 }
0x1a6f   :  { %v5354_v17 = vadd.f32 %v2596_v60, %v2591_v56 }
0x1a71   :  { %4114 = vmatmul.mubr.msk.f32.vlgmr.msra.gmra.mrb[22].mxu1 %vm88_vm0, %v5354_v17  ;;  %4125 = vmatmul.mubr.msk.f32.vlgmr.msra.gmra.mrb[20].mxu0 %vm88_vm0, %v5354_v17 }
0x1a72   :  { %4326 = vmatpush3.bf16.msra.mxu1 %v4827_v53  ;;  %4135 = vmatprep.mubr.msk.f32.mxu1 %vm4651_vm1, %v4652_v19 }
0x1a73   :  { %4327 = vmatprep.subr.bf16.mxu1 %v4650_v13  ;;  %4332 = vmatpush3.bf16.msra.mxu0 %v4860_v42 }
0x1a74   :  { %4333 = vmatprep.subr.bf16.mxu0 %v4650_v13  ;;  %4146 = vmatprep.mubr.msk.f32.mxu0 %vm4651_vm1, %v4652_v19 }
0x1a76   :  { %4329 = vmatpush3.bf16.msra.mxu1 %v4833_v55 }
0x1a77   :  { %4336 = vmatprep.subr.bf16.mxu1 %v4650_v13  ;;  %4335 = vmatpush3.bf16.msra.mxu0 %v4875_v52 }
0x1a78   :  { %4342 = vmatprep.subr.bf16.mxu0 %v4650_v13 }
0x1acd   :  { %v2535_v3 = vpop.permute.xlu1 %2534 }
0x1ace   :  { %v2541_v43 = vsel %vm88_vm0, %v2535_v3, 0.0 }
0x1acf   :  { %2542 = vadd.xlane.f32.xlu1 %v2541_v43 }
0x1b44   :  { %v2667_v5 = vpop.f32.mrb[22].mxu1  ;;  %v2797_v10 = vpop.f32.mrb[20].mxu0 }
0x1b45   :  { %v2668_v15 = vadd.f32 %v5197_v23, %v2667_v5  ;;  %v4115_v1 = vpop.f32.mrb[23].mxu1  ;;  %v4126_v8 = vpop.f32.mrb[21].mxu0  ;;  %v5381_v63 = vadd.f32 %v5378_v51, %v2797_v10  ;;  %v2507_v23 = vsel %vm218_vm2, %v2501_v47, 0.0 }
0x1b47   :  { %2685 = vrot.lane.b32.xlu0 %v2668_v15, %s4653_s2  ;;  %v2671_v40 = vsel %vm218_vm2, %v2668_v15, 0.0  ;;  %v2874_v56 = vsel %vm218_vm2, %v5381_v63, 0.0 }
0x1b4b   :  { %2902 = vrot.lane.b32.xlu0 %v5381_v63, %s4653_s2 }
0x1b5c   :  { %v2543_v45 = vpop.xlane.xlu1 %2542 }
0x1b5d   :  { %v2545_v14 = vmul.f32 0.03125, %v2543_v45 }
0x1b5f   :  { %v2547_v46 = vsub.f32 %v2501_v47, %v2545_v14 }
0x1b61   :  { %v2549_v16 = vmul.f32 %v2547_v46, %v2547_v46 }
0x1b63   :  { %2554 = vrot.lane.b32.xlu1 %v2549_v16, %s4653_s2 }
0x1b6a   :  { %2508 = vadd.xlane.f32.xlu0 %v2507_v23 }
0x1b87   :  { %2672 = vadd.xlane.f32.xlu1 %v2671_v40 }
0x1bb9   :  { %v2686_v25 = vpop.permute.xlu0 %2685 }
0x1bba   :  { %v2688_v24 = vsel %vm88_vm0, %v2686_v25, 0.0 }
0x1bbb   :  { %2689 = vadd.xlane.f32.xlu0 %v2688_v24 }
0x1bbd   :  { %v2903_v6 = vpop.permute.xlu0 %2902 }
0x1bbe   :  { %v2908_v54 = vsel %vm88_vm0, %v2903_v6, 0.0 }
0x1bbf   :  { %2909 = vadd.xlane.f32.xlu0 %v2908_v54 }
0x1bd5   :  { %v2555_v26 = vpop.permute.xlu1 %2554 }
0x1bd6   :  { %v2561_v59 = vsel %vm88_vm0, %v2555_v26, 0.0 }
0x1bd7   :  { %2562 = vadd.xlane.f32.xlu0 %v2561_v59 }
0x1bf7   :  { %v2509_v61 = vpop.xlane.xlu0 %2508 }
0x1bf8   :  { %v2511_v30 = vmul.f32 0.015625, %v2509_v61 }
0x1bfa   :  { %v2513_v41 = vsub.f32 %v2501_v47, %v2511_v30 }
0x1bfc   :  { %v2515_v44 = vmul.f32 %v2513_v41, %v2513_v41 }
0x1bfe   :  { %v2519_v31 = vsel %vm218_vm2, %v2515_v44, 0.0 }
0x1bff   :  { %2520 = vadd.xlane.f32.xlu0 %v2519_v31 }
0x1c14   :  { %v2673_v2 = vpop.xlane.xlu1 %2672 }
0x1c15   :  { %v2674_v50 = vmul.f32 0.015625, %v2673_v2 }
0x1c17   :  { %v2675_v32 = vsub.f32 %v2668_v15, %v2674_v50 }
0x1c19   :  { %v2676_v29 = vmul.f32 %v2675_v32, %v2675_v32 }
0x1c1b   :  { %v2677_v34 = vsel %vm218_vm2, %v2676_v29, 0.0 }
0x1c1c   :  { %2678 = vadd.xlane.f32.xlu0 %v2677_v34 }
0x1c32   :  { %344 = vrot.lane.b32.xlu0 %v5400_v58, %s4653_s2 }
0x1c48   :  { %v2690_v62 = vpop.xlane.xlu0 %2689 }
0x1c49   :  { %v2691_v35 = vmul.f32 0.03125, %v2690_v62 }
0x1c4b   :  { %v5404_v20 = vsub.f32 %v2668_v15, %v2691_v35 }
0x1c4c   :  { %v2910_v38 = vpop.xlane.xlu0 %2909 }
0x1c4d   :  { %v2693_v22 = vmul.f32 %v5404_v20, %v5404_v20  ;;  %v2914_v33 = vmul.f32 0.03125, %v2910_v38 }
0x1c4f   :  { %v5409_v0 = vsub.f32 %v5381_v63, %v2914_v33  ;;  %2695 = vrot.lane.b32.xlu1 %v2693_v22, %s4653_s2 }
0x1c51   :  { %v2918_v4 = vmul.f32 %v5409_v0, %v5409_v0  ;;  %238 = vadd.xlane.f32.xlu0 %v237_v28 }
0x1c53   :  { %2922 = vrot.lane.b32.xlu1 %v2918_v4, %s4653_s2 }
0x1c64   :  { %v2563_v21 = vpop.xlane.xlu0 %2562 }
0x1c65   :  { %v2565_v47 = vmul.f32 0.03125, %v2563_v21 }
0x1c67   :  { %v2567_v7 = vadd.f32 1e-05, %v2565_v47 }
0x1c69   :  { %4527 = vrsqrt.f32 %v2567_v7 }
0x1c73   :  { %v4528_v9 = vpop.eup %4527 }
0x1c74   :  { %v2571_v12 = vmul.f32 %v4528_v9, %v2547_v46 }
0x1c76   :  { %2713 = vrot.lane.b32.xlu0 %v2571_v12, %s4654_s5 }
0x1c77   :  { %2875 = vadd.xlane.f32.xlu1 %v2874_v56 }
0x1c8c   :  { %v2521_v60 = vpop.xlane.xlu0 %2520 }
0x1c8d   :  { %v2523_v10 = vmul.f32 0.015625, %v2521_v60 }
0x1c8f   :  { %v2525_v8 = vadd.f32 1e-05, %v2523_v10 }
0x1ca9   :  { %v2679_v3 = vpop.xlane.xlu0 %2678 }
0x1caa   :  { %v2680_v43 = vmul.f32 0.015625, %v2679_v3 }
0x1cac   :  { %v2681_v1 = vadd.f32 1e-05, %v2680_v43 }
0x1cad   :  { %v345_v5 = vpop.permute.xlu0 %344 }
0x1cae   :  { %v374_v15 = vsel %vm88_vm0, %v345_v5, 0.0  ;;  %4529 = vrsqrt.f32 %v2681_v1 }
0x1caf   :  { %375 = vadd.xlane.f32.xlu1 %v374_v15  ;;  %4531 = vrsqrt.f32 %v2525_v8 }
0x1cb8   :  { %v4530_v45 = vpop.eup %4529 }
0x1cb9   :  { %v4532_v14 = vpop.eup %4531  ;;  %v2683_v46 = vmul.f32 %v4530_v45, %v2675_v32 }
0x1cba   :  { %v2529_v40 = vmul.f32 %v4532_v14, %v2513_v41 }
0x1cbc   :  { %v2705_v25 = vadd.f32 %v2683_v46, %v2529_v40 }
0x1cbe   :  { %v3725_v54 = vmul.f32 -1.442695, %v2705_v25 }
0x1cc0   :  { %4533 = vpow2.f32 %v3725_v54 }
0x1cc1   :  { %v2696_v16 = vpop.permute.xlu1 %2695 }
0x1cc2   :  { %v2698_v23 = vsel %vm88_vm0, %v2696_v16, 0.0 }
0x1cc3   :  { %2699 = vadd.xlane.f32.xlu1 %v2698_v23 }
0x1cc5   :  { %v2923_v24 = vpop.permute.xlu1 %2922 }
0x1cc6   :  { %v2928_v6 = vsel %vm88_vm0, %v2923_v24, 0.0 }
0x1cc7   :  { %2929 = vadd.xlane.f32.xlu1 %v2928_v6 }
0x1cca   :  { %v4534_v26 = vpop.eup %4533 }
0x1ccb   :  { %v2709_v59 = vadd.f32 1.0, %v4534_v26 }
0x1ccd   :  { %4535 = vrcp.f32 %v2709_v59 }
0x1cd7   :  { %v4536_v41 = vpop.eup %4535 }
0x1cde   :  { %v239_v61 = vpop.xlane.xlu0 %238 }
0x1cdf   :  { %v250_v30 = vmul.f32 0.015625, %v239_v61 }
0x1ce1   :  { %v258_v44 = vsub.f32 %v5400_v58, %v250_v30 }
0x1ce3   :  { %v266_v31 = vmul.f32 %v258_v44, %v258_v44 }
0x1ce5   :  { %v286_v2 = vsel %vm218_vm2, %v266_v31, 0.0  ;;  %v2723_v31 = vsub.f32 1.0, %v4536_v41 }
0x1ce6   :  { %287 = vadd.xlane.f32.xlu1 %v286_v2 }
0x1ce8   :  { %v2714_v50 = vpop.permute.xlu0 %2713 }
0x1ce9   :  { %v2716_v32 = vmul.f32 %v4536_v41, %v2714_v50  ;;  %v2724_v50 = vmul.f32 %v2723_v31, %v5340_v49 }
0x1ceb   :  { %2718 = vrot.lane.b32.xlu0 %v2716_v32, %s4655_s17 }
0x1d04   :  { %v2876_v29 = vpop.xlane.xlu1 %2875 }
0x1d05   :  { %v2880_v34 = vmul.f32 0.015625, %v2876_v29 }
0x1d07   :  { %v2882_v62 = vsub.f32 %v5381_v63, %v2880_v34 }
0x1d09   :  { %v2884_v35 = vmul.f32 %v2882_v62, %v2882_v62 }
0x1d0b   :  { %v2886_v38 = vsel %vm218_vm2, %v2884_v35, 0.0 }
0x1d0c   :  { %2887 = vadd.xlane.f32.xlu1 %v2886_v38 }
0x1d3c   :  { %v376_v22 = vpop.xlane.xlu1 %375 }
0x1d3d   :  { %v387_v33 = vmul.f32 0.03125, %v376_v22 }
0x1d3f   :  { %v395_v28 = vsub.f32 %v5400_v58, %v387_v33 }
0x1d41   :  { %v403_v4 = vmul.f32 %v395_v28, %v395_v28 }
0x1d43   :  { %425 = vrot.lane.b32.xlu1 %v403_v4, %s4653_s2  ;;  %v5451_v4 = vld [vmem:[%s5676_s6 + $0x1] ss:$0 sm:$0xff] }
0x1d50   :  { %v2700_v21 = vpop.xlane.xlu1 %2699 }
0x1d51   :  { %v2701_v47 = vmul.f32 0.03125, %v2700_v21 }
0x1d53   :  { %v2702_v7 = vadd.f32 1e-05, %v2701_v47 }
0x1d54   :  { %v2930_v9 = vpop.xlane.xlu1 %2929 }
0x1d55   :  { %4537 = vrsqrt.f32 %v2702_v7  ;;  %v2934_v12 = vmul.f32 0.03125, %v2930_v9 }
0x1d57   :  { %v2936_v56 = vadd.f32 1e-05, %v2934_v12 }
0x1d59   :  { %4539 = vrsqrt.f32 %v2936_v56 }
0x1d5d   :  { %v2719_v3 = vpop.permute.xlu0 %2718 }
0x1d5f   :  { %v4538_v63 = vpop.eup %4537 }
0x1d60   :  { %v2704_v60 = vmul.f32 %v4538_v63, %v5404_v20 }
0x1d62   :  { %v2721_v43 = vadd.f32 %v2719_v3, %v2704_v60  ;;  %v5476_v60 = vld [vmem:[%s5674_s4 + $0x1] ss:$0 sm:$0xff] }
0x1d63   :  { %v4540_v5 = vpop.eup %4539 }
0x1d64   :  { %4541 = vtanh.f32 %v2721_v43  ;;  %v2940_v58 = vmul.f32 %v4540_v5, %v5409_v0 }
0x1d66   :  { %2950 = vrot.lane.b32.xlu0 %v2940_v58, %s4654_s5 }
0x1d6e   :  { %v4542_v10 = vpop.eup %4541 }
0x1d6f   :  { %2726 = vrot.lane.b32.xlu0 %v4542_v10, %s4653_s2 }
0x1d73   :  { %v288_v15 = vpop.xlane.xlu1 %287 }
0x1d74   :  { %v298_v45 = vmul.f32 0.015625, %v288_v15 }
0x1d76   :  { %v306_v46 = vadd.f32 1e-05, %v298_v45 }
0x1d99   :  { %v2888_v1 = vpop.xlane.xlu1 %2887 }
0x1d9a   :  { %v2892_v8 = vmul.f32 0.015625, %v2888_v1 }
0x1d9c   :  { %v2894_v14 = vadd.f32 1e-05, %v2892_v8 }
0x1d9e   :  { %4543 = vrsqrt.f32 %v2894_v14 }
0x1d9f   :  { %4545 = vrsqrt.f32 %v306_v46 }
0x1da8   :  { %v4544_v20 = vpop.eup %4543 }
0x1da9   :  { %v4546_v16 = vpop.eup %4545  ;;  %v2898_v23 = vmul.f32 %v4544_v20, %v2882_v62 }
0x1daa   :  { %v322_v40 = vmul.f32 %v4546_v16, %v258_v44 }
0x1dac   :  { %v2942_v25 = vadd.f32 %v2898_v23, %v322_v40 }
0x1dae   :  { %v3728_v6 = vmul.f32 -1.442695, %v2942_v25 }
0x1db0   :  { %4547 = vpow2.f32 %v3728_v6 }
0x1db5   :  { %v426_v24 = vpop.permute.xlu1 %425 }
0x1db6   :  { %v455_v0 = vsel %vm88_vm0, %v426_v24, 0.0 }
0x1db7   :  { %456 = vadd.xlane.f32.xlu0 %v455_v0 }
0x1dba   :  { %v4548_v54 = vpop.eup %4547 }
0x1dbb   :  { %v2946_v26 = vadd.f32 1.0, %v4548_v54 }
0x1dbd   :  { %4549 = vrcp.f32 %v2946_v26  ;;  %v5495_v26 = vadd.f32 %v5396_v39, %v4799_v27 }
0x1dc7   :  { %v4550_v59 = vpop.eup %4549 }
0x1dc8   :  { %v2960_v47 = vsub.f32 1.0, %v4550_v59 }
0x1dd8   :  { %v2951_v61 = vpop.permute.xlu0 %2950 }
0x1dd9   :  { %v2953_v30 = vmul.f32 %v4550_v59, %v2951_v61  ;;  %v240_v61 = vsel %vm218_vm2, %v5495_v26, 0.0 }
0x1ddb   :  { %2955 = vrot.lane.b32.xlu1 %v2953_v30, %s4655_s17 }
0x1de1   :  { %v2727_v2 = vpop.permute.xlu0 %2726 }
0x1de2   :  { %v2729_v44 = vmul.f32 %v4536_v41, %v2727_v2 }
0x1de4   :  { %v5437_v32 = vadd.f32 %v2729_v44, %v2724_v50 }
0x1de6   :  { %4136 = vmatmul.mubr.msk.f32.vlgmr.msra.gmra.mrb[24].mxu1 %vm88_vm0, %v5437_v32 }
0x1de7   :  { %4338 = vmatpush3.bf16.msra.mxu1 %v4747_v11  ;;  %4157 = vmatprep.mubr.msk.f32.mxu1 %vm4651_vm1, %v4652_v19 }
0x1de8   :  { %4339 = vmatprep.subr.bf16.mxu1 %v4650_v13 }
0x1deb   :  { %4341 = vmatpush3.bf16.msra.mxu1 %v4770_v18 }
0x1dec   :  { %4348 = vmatprep.subr.bf16.mxu1 %v4650_v13 }
0x1e44   :  { %v457_v29 = vpop.xlane.xlu0 %456 }
0x1e45   :  { %v467_v34 = vmul.f32 0.03125, %v457_v29 }
0x1e47   :  { %v475_v62 = vadd.f32 1e-05, %v467_v34 }
0x1e49   :  { %4551 = vrsqrt.f32 %v475_v62 }
0x1e4d   :  { %v2956_v38 = vpop.permute.xlu1 %2955 }
0x1e53   :  { %v4552_v41 = vpop.eup %4551 }
0x1e54   :  { %v491_v35 = vmul.f32 %v4552_v41, %v395_v28  ;;  %v2961_v28 = vmul.f32 %v2960_v47, %v5354_v17 }
0x1e56   :  { %v2958_v22 = vadd.f32 %v2956_v38, %v491_v35 }
0x1e58   :  { %4553 = vtanh.f32 %v2958_v22 }
0x1e62   :  { %v4554_v33 = vpop.eup %4553 }
0x1e63   :  { %2963 = vrot.lane.b32.xlu1 %v4554_v33, %s4653_s2 }
0x1eb9   :  { %v2870_v11 = vpop.f32.mrb[24].mxu1 }
0x1eba   :  { %v2871_v18 = vadd.f32 %v5451_v4, %v2870_v11  ;;  %v4137_v21 = vpop.f32.mrb[25].mxu1 }
0x1ebc   :  { %2904 = vrot.lane.b32.xlu1 %v2871_v18, %s4653_s2  ;;  %v2877_v58 = vsel %vm218_vm2, %v2871_v18, 0.0 }
0x1ed5   :  { %v2964_v7 = vpop.permute.xlu1 %2963 }
0x1ed6   :  { %v2966_v9 = vmul.f32 %v4550_v59, %v2964_v7 }
0x1ed8   :  { %v5456_v12 = vadd.f32 %v2966_v9, %v2961_v28 }
0x1eda   :  { %4147 = vmatmul.mubr.msk.f32.vlgmr.msra.gmra.mrb[22].mxu0 %vm88_vm0, %v5456_v12  ;;  %4158 = vmatmul.mubr.msk.f32.vlgmr.msra.gmra.mrb[26].mxu1 %vm88_vm0, %v5456_v12 }
0x1edb   :  { %4344 = vmatpush3.bf16.msra.mxu0 %v4827_v53  ;;  %4168 = vmatprep.mubr.msk.f32.mxu0 %vm4651_vm1, %v4652_v19 }
0x1edc   :  { %4345 = vmatprep.subr.bf16.mxu0 %v4650_v13  ;;  %4350 = vmatpush3.bf16.msra.mxu1 %v4860_v42 }
0x1edd   :  { %4351 = vmatprep.subr.bf16.mxu1 %v4650_v13  ;;  %4179 = vmatprep.mubr.msk.f32.mxu1 %vm4651_vm1, %v4652_v19 }
0x1edf   :  { %4347 = vmatpush3.bf16.msra.mxu0 %v4833_v55 }
0x1ee0   :  { %4353 = vmatpush3.bf16.msra.mxu1 %v4875_v52 }
0x1f2e   :  { %v2905_v17 = vpop.permute.xlu1 %2904 }
0x1f2f   :  { %v2911_v56 = vsel %vm88_vm0, %v2905_v17, 0.0 }
0x1f30   :  { %2912 = vadd.xlane.f32.xlu1 %v2911_v56 }
0x1fad   :  { %v3037_v53 = vpop.f32.mrb[22].mxu0  ;;  %v3167_v63 = vpop.f32.mrb[26].mxu1 }
0x1fae   :  { %v3038_v13 = vadd.f32 %v5476_v60, %v3037_v53  ;;  %v4148_v42 = vpop.f32.mrb[23].mxu0  ;;  %v4159_v3 = vpop.f32.mrb[27].mxu1  ;;  %v5481_v19 = vadd.f32 %v5378_v51, %v3167_v63 }
0x1fb0   :  { %3055 = vrot.lane.b32.xlu0 %v3038_v13, %s4653_s2  ;;  %v3041_v10 = vsel %vm218_vm2, %v3038_v13, 0.0  ;;  %v3244_v38 = vsel %vm218_vm2, %v5481_v19, 0.0 }
0x1fb4   :  { %3272 = vrot.lane.b32.xlu0 %v5481_v19, %s4653_s2 }
0x1fbd   :  { %v2913_v55 = vpop.xlane.xlu1 %2912 }
0x1fbe   :  { %v2915_v52 = vmul.f32 0.03125, %v2913_v55 }
0x1fc0   :  { %v2917_v43 = vsub.f32 %v2871_v18, %v2915_v52 }
0x1fc2   :  { %v2919_v5 = vmul.f32 %v2917_v43, %v2917_v43 }
0x1fc4   :  { %2924 = vrot.lane.b32.xlu1 %v2919_v5, %s4653_s2 }
0x1fd3   :  { %2878 = vadd.xlane.f32.xlu0 %v2877_v58 }
0x1fe8   :  { %3042 = vadd.xlane.f32.xlu1 %v3041_v10 }
0x2022   :  { %v3056_v15 = vpop.permute.xlu0 %3055 }
0x2023   :  { %v3058_v1 = vsel %vm88_vm0, %v3056_v15, 0.0 }
0x2024   :  { %3059 = vadd.xlane.f32.xlu0 %v3058_v1 }
0x2026   :  { %v3273_v51 = vpop.permute.xlu0 %3272 }
0x2027   :  { %v3278_v8 = vsel %vm88_vm0, %v3273_v51, 0.0 }
0x2028   :  { %3279 = vadd.xlane.f32.xlu0 %v3278_v8 }
0x2036   :  { %v2925_v45 = vpop.permute.xlu1 %2924 }
0x2037   :  { %v2931_v14 = vsel %vm88_vm0, %v2925_v45, 0.0 }
0x2038   :  { %2932 = vadd.xlane.f32.xlu0 %v2931_v14 }
0x2060   :  { %v2879_v46 = vpop.xlane.xlu0 %2878 }
0x2061   :  { %v2881_v20 = vmul.f32 0.015625, %v2879_v46 }
0x2063   :  { %v2883_v16 = vsub.f32 %v2871_v18, %v2881_v20 }
0x2065   :  { %v2885_v23 = vmul.f32 %v2883_v16, %v2883_v16 }
0x2067   :  { %v2889_v40 = vsel %vm218_vm2, %v2885_v23, 0.0 }
0x2068   :  { %2890 = vadd.xlane.f32.xlu0 %v2889_v40 }
0x2075   :  { %v3043_v25 = vpop.xlane.xlu1 %3042 }
0x2076   :  { %v3044_v24 = vmul.f32 0.015625, %v3043_v25 }
0x2078   :  { %v3045_v0 = vsub.f32 %v3038_v13, %v3044_v24 }
0x207a   :  { %v3046_v6 = vmul.f32 %v3045_v0, %v3045_v0 }
0x207c   :  { %v3047_v54 = vsel %vm218_vm2, %v3046_v6, 0.0 }
0x207d   :  { %3048 = vadd.xlane.f32.xlu0 %v3047_v54 }
0x2093   :  { %346 = vrot.lane.b32.xlu0 %v5495_v26, %s4653_s2 }
0x20b1   :  { %v3060_v59 = vpop.xlane.xlu0 %3059 }
0x20b2   :  { %v3061_v30 = vmul.f32 0.03125, %v3060_v59  ;;  %241 = vadd.xlane.f32.xlu0 %v240_v61 }
0x20b4   :  { %v5501_v31 = vsub.f32 %v3038_v13, %v3061_v30 }
0x20b5   :  { %v3280_v2 = vpop.xlane.xlu0 %3279 }
0x20b6   :  { %v3063_v50 = vmul.f32 %v5501_v31, %v5501_v31  ;;  %v3284_v44 = vmul.f32 0.03125, %v3280_v2 }
0x20b8   :  { %v5506_v29 = vsub.f32 %v5481_v19, %v3284_v44  ;;  %3065 = vrot.lane.b32.xlu1 %v3063_v50, %s4653_s2 }
0x20ba   :  { %v3288_v27 = vmul.f32 %v5506_v29, %v5506_v29 }
0x20bc   :  { %3292 = vrot.lane.b32.xlu1 %v3288_v27, %s4653_s2 }
0x20c5   :  { %v2933_v39 = vpop.xlane.xlu0 %2932 }
0x20c6   :  { %v2935_v34 = vmul.f32 0.03125, %v2933_v39 }
0x20c8   :  { %v2937_v62 = vadd.f32 1e-05, %v2935_v34  ;;  %v69_v34 = vld [vmem:[%s5677_s7 + $0x8] sm:$0xff] }
0x20ca   :  { %4555 = vrsqrt.f32 %v2937_v62 }
0x20d4   :  { %v4556_v41 = vpop.eup %4555 }
0x20d5   :  { %v2941_v35 = vmul.f32 %v4556_v41, %v2917_v43 }
0x20d7   :  { %3083 = vrot.lane.b32.xlu0 %v2941_v35, %s4654_s5 }
0x20e0   :  { %3245 = vadd.xlane.f32.xlu1 %v3244_v38 }
0x20f5   :  { %v2891_v22 = vpop.xlane.xlu0 %2890 }
0x20f6   :  { %v2893_v21 = vmul.f32 0.015625, %v2891_v22 }
0x20f8   :  { %v2895_v28 = vadd.f32 1e-05, %v2893_v21 }
0x210a   :  { %v3049_v33 = vpop.xlane.xlu0 %3048 }
0x210b   :  { %v3050_v11 = vmul.f32 0.015625, %v3049_v33 }
0x210d   :  { %v3051_v7 = vadd.f32 1e-05, %v3050_v11 }
0x210e   :  { %v347_v18 = vpop.permute.xlu0 %346 }
0x210f   :  { %v377_v47 = vsel %vm88_vm0, %v347_v18, 0.0  ;;  %4557 = vrsqrt.f32 %v3051_v7 }
0x2110   :  { %378 = vadd.xlane.f32.xlu1 %v377_v47  ;;  %4559 = vrsqrt.f32 %v2895_v28 }
0x2119   :  { %v4558_v9 = vpop.eup %4557 }
0x211a   :  { %v4560_v17 = vpop.eup %4559  ;;  %v3053_v56 = vmul.f32 %v4558_v9, %v3045_v0 }
0x211b   :  { %v2899_v53 = vmul.f32 %v4560_v17, %v2883_v16 }
0x211d   :  { %v3075_v63 = vadd.f32 %v3053_v56, %v2899_v53 }
0x211f   :  { %v3730_v13 = vmul.f32 -1.442695, %v3075_v63 }
0x2121   :  { %4561 = vpow2.f32 %v3730_v13 }
0x212a   :  { %v3066_v42 = vpop.permute.xlu1 %3065 }
0x212b   :  { %v3068_v3 = vsel %vm88_vm0, %v3066_v42, 0.0  ;;  %v4562_v43 = vpop.eup %4561 }
0x212c   :  { %3069 = vadd.xlane.f32.xlu1 %v3068_v3  ;;  %v3079_v5 = vadd.f32 1.0, %v4562_v43 }
0x212e   :  { %v3293_v55 = vpop.permute.xlu1 %3292  ;;  %4563 = vrcp.f32 %v3079_v5  ;;  %v70_v5 = vld [vmem:[%s5677_s7 + $0x10] sm:$0xff] }
0x212f   :  { %v3298_v52 = vsel %vm88_vm0, %v3293_v55, 0.0 }
0x2130   :  { %3299 = vadd.xlane.f32.xlu1 %v3298_v52 }
0x2138   :  { %v5520_v8 = vpop.eup %4563 }
0x2139   :  { %v3093_v52 = vsub.f32 1.0, %v5520_v8 }
0x213f   :  { %v242_v58 = vpop.xlane.xlu0 %241 }
0x2140   :  { %v251_v10 = vmul.f32 0.015625, %v242_v58  ;;  %v71_v58 = vld [vmem:[%s5677_s7 + $0x18] sm:$0xff] }
0x2142   :  { %v259_v15 = vsub.f32 %v5495_v26, %v251_v10  ;;  %v3094_v10 = vmul.f32 %v3093_v52, %v5437_v32 }
0x2144   :  { %v267_v1 = vmul.f32 %v259_v15, %v259_v15 }
0x2146   :  { %v289_v51 = vsel %vm218_vm2, %v267_v1, 0.0 }
0x2147   :  { %290 = vadd.xlane.f32.xlu1 %v289_v51  ;;  %v4358_v51 = vpack.c.bf16 %v71_v58, %v70_v5 }
0x2149   :  { %v3084_v45 = vpop.permute.xlu0 %3083 }
0x214a   :  { %v3086_v14 = vmul.f32 %v5520_v8, %v3084_v45 }
0x214c   :  { %3088 = vrot.lane.b32.xlu0 %v3086_v14, %s4655_s17 }
0x216d   :  { %v3246_v46 = vpop.xlane.xlu1 %3245 }
0x216e   :  { %v3250_v20 = vmul.f32 0.015625, %v3246_v46 }
0x2170   :  { %v3252_v16 = vsub.f32 %v5481_v19, %v3250_v20 }
0x2172   :  { %v3254_v23 = vmul.f32 %v3252_v16, %v3252_v16 }
0x2174   :  { %v3256_v40 = vsel %vm218_vm2, %v3254_v23, 0.0 }
0x2175   :  { %3257 = vadd.xlane.f32.xlu1 %v3256_v40 }
0x219d   :  { %v379_v25 = vpop.xlane.xlu1 %378 }
0x219e   :  { %v388_v24 = vmul.f32 0.03125, %v379_v25 }
0x21a0   :  { %v5527_v0 = vsub.f32 %v5495_v26, %v388_v24  ;;  %v68_v26 = vld [vmem:[%s5677_s7] sm:$0xff] }
0x21a1   :  { %v4354_v41 = vpack.c.bf16 %v69_v34, %v68_v26 }
0x21a2   :  { %v404_v6 = vmul.f32 %v5527_v0, %v5527_v0 }
0x21a3   :  { %4355 = vmatprep.subr.bf16.mxu0 %v4354_v41 }
0x21a4   :  { %427 = vrot.lane.b32.xlu1 %v404_v6, %s4653_s2 }
0x21b9   :  { %v3070_v54 = vpop.xlane.xlu1 %3069 }
0x21ba   :  { %v3071_v59 = vmul.f32 0.03125, %v3070_v54 }
0x21bc   :  { %v3072_v61 = vadd.f32 1e-05, %v3071_v59 }
0x21bd   :  { %v3300_v30 = vpop.xlane.xlu1 %3299 }
0x21be   :  { %4565 = vrsqrt.f32 %v3072_v61  ;;  %v3304_v19 = vmul.f32 0.03125, %v3300_v30  ;;  %v3089_v27 = vpop.permute.xlu0 %3088 }
0x21c0   :  { %v3306_v2 = vadd.f32 1e-05, %v3304_v19 }
0x21c2   :  { %4567 = vrsqrt.f32 %v3306_v2 }
0x21c8   :  { %v4566_v50 = vpop.eup %4565 }
0x21c9   :  { %v3074_v44 = vmul.f32 %v4566_v50, %v5501_v31 }
0x21cb   :  { %v3091_v39 = vadd.f32 %v3089_v27, %v3074_v44 }
0x21cc   :  { %v4568_v62 = vpop.eup %4567 }
0x21cd   :  { %4569 = vtanh.f32 %v3091_v39  ;;  %v3310_v35 = vmul.f32 %v4568_v62, %v5506_v29 }
0x21cf   :  { %3320 = vrot.lane.b32.xlu0 %v3310_v35, %s4654_s5 }
0x21d4   :  { %v291_v31 = vpop.xlane.xlu1 %290 }
0x21d5   :  { %v299_v11 = vmul.f32 0.015625, %v291_v31 }
0x21d7   :  { %v4570_v38 = vpop.eup %4569  ;;  %v307_v21 = vadd.f32 1e-05, %v299_v11 }
0x21d8   :  { %3096 = vrot.lane.b32.xlu0 %v4570_v38, %s4653_s2  ;;  %v3633_v38 = vlaneseq }
0x2202   :  { %v3258_v22 = vpop.xlane.xlu1 %3257 }
0x2203   :  { %v3262_v33 = vmul.f32 0.015625, %v3258_v22 }
0x2205   :  { %v3264_v18 = vadd.f32 1e-05, %v3262_v33 }
0x2207   :  { %4571 = vrsqrt.f32 %v3264_v18 }
0x2208   :  { %4573 = vrsqrt.f32 %v307_v21  ;;  %v5596_v21 = vshrl.u32 %v3633_v38, 7 }
0x220a   :  { %v3639_v5 = vadd.s32 40, %v5596_v21  ;;  %v3638_v58 = vadd.s32 32, %v5596_v21 }
0x2211   :  { %v4572_v7 = vpop.eup %4571 }
0x2212   :  { %v4574_v29 = vpop.eup %4573  ;;  %v3268_v9 = vmul.f32 %v4572_v7, %v3252_v16  ;;  %v5584_v16 = vld [vmem:[%s5678_s8] ss:$0 sm:$0xff]  ;;  %s43_s8 = sld [smem:[#allocation2]] }
0x2213   :  { %v323_v17 = vmul.f32 %v4574_v29, %v259_v15  ;;  %v3635_v29 = vadd.s32 8, %v5596_v21 }
0x2215   :  { %v3312_v56 = vadd.f32 %v3268_v9, %v323_v17 }
0x2216   :  { %v428_v47 = vpop.permute.xlu1 %427 }
0x2217   :  { %v458_v28 = vsel %vm88_vm0, %v428_v47, 0.0  ;;  %v3733_v53 = vmul.f32 -1.442695, %v3312_v56 }
0x2218   :  { %459 = vadd.xlane.f32.xlu0 %v458_v28  ;;  %s3753_s10 = sshll.u32 %s43_s8, 3 }
0x2219   :  { %4575 = vpow2.f32 %v3733_v53  ;;  %v5599_v17 = vstv %s3753_s10 }
0x221a   :  { %vm3645_vm3 = vcmp.lt.s32.totalorder %v3635_v29, %v5599_v17  ;;  %vm3644_vm5 = vcmp.lt.s32.totalorder %v5596_v21, %v5599_v17  ;;  %vm3649_vm8 = vcmp.lt.s32.totalorder %v3639_v5, %v5599_v17  ;;  %vm3648_vm9 = vcmp.lt.s32.totalorder %v3638_v58, %v5599_v17 }
0x2223   :  { %v4576_v63 = vpop.eup %4575 }
0x2224   :  { %v3316_v13 = vadd.f32 1.0, %v4576_v63 }
0x2226   :  { %4577 = vrcp.f32 %v3316_v13  ;;  %v3637_v13 = vadd.s32 24, %v5596_v21 }
0x2228   :  { %vm3647_vm6 = vcmp.lt.s32.totalorder %v3637_v13, %v5599_v17 }
0x2230   :  { %v5543_v42 = vpop.eup %4577 }
0x2231   :  { %v3330_v27 = vsub.f32 1.0, %v5543_v42 }
0x2241   :  { %v3321_v3 = vpop.permute.xlu0 %3320 }
0x2242   :  { %v3323_v55 = vmul.f32 %v5543_v42, %v3321_v3 }
0x2244   :  { %3325 = vrot.lane.b32.xlu1 %v3323_v55, %s4655_s17 }
0x224a   :  { %v3097_v43 = vpop.permute.xlu0 %3096 }
0x224b   :  { %v3099_v15 = vmul.f32 %v5520_v8, %v3097_v43 }
0x224d   :  { %v5556_v1 = vadd.f32 %v3099_v15, %v3094_v10 }
0x224f   :  { %4169 = vmatmul.mubr.msk.f32.vlgmr.msra.gmra.mrb[24].mxu0 %vm88_vm0, %v5556_v1 }
0x2250   :  { %4357 = vmatpush3.bf16.msra.mxu0 %v4354_v41  ;;  %4190 = vmatprep.mubr.msk.f32.mxu0 %vm88_vm0, %v4972_v57  ;;  %v3331_v41 = vmul.f32 %v3330_v27, %v5456_v12 }
0x2251   :  { %4359 = vmatprep.subr.bf16.mxu0 %v4358_v51 }
0x2254   :  { %4361 = vmatpush3.bf16.msra.mxu0 %v4358_v51 }
0x2257   :  { %4191 = vmatmul.mubr.msk.f32.vlgmr.msra.gmra.mrb[26].mxu0 %vm88_vm0, %v5059_v48 }
0x2258   :  { %4193 = vmatprep.mubr.msk.f32.mxu0 %vm88_vm0, %v5156_v37 }
0x225b   :  { %4194 = vmatmul.mubr.msk.f32.gmra.mrb[28].mxu0 %vm88_vm0, %v5253_v36 }
0x225c   :  { %4196 = vmatprep.mubr.msk.f32.mxu0 %vm88_vm0, %v5340_v49 }
0x225f   :  { %4197 = vmatmul.mubr.msk.f32.gmra.mrb[30].mxu0 %vm88_vm0, %v5437_v32 }
0x2260   :  { %4199 = vmatprep.mubr.msk.f32.mxu0 %vm88_vm0, %v5556_v1 }
0x22a5   :  { %v460_v57 = vpop.xlane.xlu0 %459 }
0x22a6   :  { %v468_v8 = vmul.f32 0.03125, %v460_v57 }
0x22a8   :  { %v476_v45 = vadd.f32 1e-05, %v468_v8 }
0x22aa   :  { %4579 = vrsqrt.f32 %v476_v45 }
0x22b4   :  { %v4580_v48 = vpop.eup %4579 }
0x22b5   :  { %v492_v14 = vmul.f32 %v4580_v48, %v5527_v0 }
0x22b6   :  { %v3326_v37 = vpop.permute.xlu1 %3325 }
0x22b7   :  { %v3328_v46 = vadd.f32 %v3326_v37, %v492_v14 }
0x22b9   :  { %4581 = vtanh.f32 %v3328_v46 }
0x22c3   :  { %v4582_v36 = vpop.eup %4581 }
0x22c4   :  { %3333 = vrot.lane.b32.xlu1 %v4582_v36, %s4653_s2 }
0x2322   :  { %v3240_v49 = vpop.f32.mrb[24].mxu0 }
0x2323   :  { %v5577_v20 = vadd.f32 %v5451_v4, %v3240_v49  ;;  %v4170_v32 = vpop.f32.mrb[25].mxu0 }
0x2325   :  { %3274 = vrot.lane.b32.xlu1 %v5577_v20, %s4653_s2  ;;  %v3247_v36 = vsel %vm218_vm2, %v5577_v20, 0.0 }
0x232a   :  { %v4192_v23 = vpop.f32.mrb[26].mxu0 }
0x232b   :  { %v3552_v40 = vadd.f32 %v4192_v23, %v5584_v16  ;;  %v3546_v25 = vpop.f32.mrb[27].mxu0 }
0x232c   :  { %v3547_v24 = vadd.f32 %v5584_v16, %v3546_v25 }
0x232d   :  { %v3746_v0 = vmul.f32 -1.442695, %v3552_v40 }
0x232e   :  { %v3745_v6 = vmul.f32 -1.442695, %v3547_v24  ;;  %v4195_v54 = vpop.f32.mrb[28].mxu0 }
0x232f   :  { %4583 = vpow2.f32 %v3746_v0  ;;  %v3562_v4 = vadd.f32 %v4195_v54, %v5584_v16  ;;  %v3556_v59 = vpop.f32.mrb[29].mxu0 }
0x2330   :  { %4585 = vpow2.f32 %v3745_v6  ;;  %v3557_v61 = vadd.f32 %v5584_v16, %v3556_v59 }
0x2331   :  { %v3748_v30 = vmul.f32 -1.442695, %v3562_v4 }
0x2332   :  { %v3747_v19 = vmul.f32 -1.442695, %v3557_v61  ;;  %v4198_v2 = vpop.f32.mrb[30].mxu0 }
0x2333   :  { %4587 = vpow2.f32 %v3748_v30  ;;  %v3572_v50 = vadd.f32 %v4198_v2, %v5584_v16  ;;  %v3566_v44 = vpop.f32.mrb[31].mxu0 }
0x2334   :  { %4589 = vpow2.f32 %v3747_v19  ;;  %v3567_v39 = vadd.f32 %v5584_v16, %v3566_v44 }
0x2335   :  { %v3750_v26 = vmul.f32 -1.442695, %v3572_v50 }
0x2336   :  { %v3749_v34 = vmul.f32 -1.442695, %v3567_v39  ;;  %v3334_v62 = vpop.permute.xlu1 %3333 }
0x2337   :  { %4591 = vpow2.f32 %v3750_v26  ;;  %v3336_v35 = vmul.f32 %v5543_v42, %v3334_v62  ;;  %v3636_v42 = vadd.s32 16, %v5596_v21 }
0x2338   :  { %4593 = vpow2.f32 %v3749_v34 }
0x2339   :  { %v4584_v31 = vpop.eup %4583  ;;  %v3337_v22 = vadd.f32 %v3336_v35, %v3331_v41  ;;  %vm3646_vm7 = vcmp.lt.s32.totalorder %v3636_v42, %v5599_v17 }
0x233a   :  { %v4586_v33 = vpop.eup %4585  ;;  %v3610_v11 = vadd.f32 1.0, %v4584_v31 }
0x233b   :  { %v3609_v18 = vadd.f32 1.0, %v4586_v33  ;;  %4180 = vmatmul.mubr.msk.f32.vlgmr.msra.gmra.mrb[28].mxu1 %vm88_vm0, %v3337_v22 }
0x233c   :  { %4595 = vrcp.f32 %v3610_v11 }
0x233d   :  { %v4588_v47 = vpop.eup %4587  ;;  %4597 = vrcp.f32 %v3609_v18 }
0x233e   :  { %v4590_v7 = vpop.eup %4589  ;;  %v3612_v28 = vadd.f32 1.0, %v4588_v47 }
0x233f   :  { %v3611_v12 = vadd.f32 1.0, %v4590_v7 }
0x2340   :  { %4599 = vrcp.f32 %v3612_v28 }
0x2341   :  { %v4592_v9 = vpop.eup %4591  ;;  %4601 = vrcp.f32 %v3611_v12 }
0x2342   :  { %v4594_v56 = vpop.eup %4593  ;;  %v3614_v53 = vadd.f32 1.0, %v4592_v9 }
0x2343   :  { %v3613_v63 = vadd.f32 1.0, %v4594_v56 }
0x2344   :  { %4603 = vrcp.f32 %v3614_v53 }
0x2345   :  { %4605 = vrcp.f32 %v3613_v63 }
0x2346   :  { %v4596_v3 = vpop.eup %4595 }
0x2347   :  { %v4598_v55 = vpop.eup %4597  ;;  %v3653_v52 = vsel %vm3645_vm3, %v4596_v3, 0.0 }
0x2348   :  { %3662 = vst.msk [vmem:[%s5679_s9 + $0x8] sm:$0xff] %vm3660_vm4, %v3653_v52  ;;  %v3652_v43 = vsel %vm3644_vm5, %v4598_v55, 0.0 }
0x2349   :  { %3661 = vst.msk [vmem:[%s5679_s9] sm:$0xff] %vm3660_vm4, %v3652_v43 }
0x234a   :  { %v4600_v10 = vpop.eup %4599 }
0x234b   :  { %v4602_v15 = vpop.eup %4601  ;;  %v3655_v51 = vsel %vm3647_vm6, %v4600_v10, 0.0 }
0x234c   :  { %3664 = vst.msk [vmem:[%s5679_s9 + $0x18] sm:$0xff] %vm3660_vm4, %v3655_v51  ;;  %v3654_v57 = vsel %vm3646_vm7, %v4602_v15, 0.0 }
0x234d   :  { %3663 = vst.msk [vmem:[%s5679_s9 + $0x10] sm:$0xff] %vm3660_vm4, %v3654_v57 }
0x234e   :  { %v4604_v8 = vpop.eup %4603 }
0x234f   :  { %v4606_v45 = vpop.eup %4605  ;;  %v3657_v48 = vsel %vm3649_vm8, %v4604_v8, 0.0 }
0x2350   :  { %3666 = vst.msk [vmem:[%s5679_s9 + $0x28] sm:$0xff] %vm3660_vm4, %v3657_v48  ;;  %v3656_v14 = vsel %vm3648_vm9, %v4606_v45, 0.0 }
0x2351   :  { %3665 = vst.msk [vmem:[%s5679_s9 + $0x20] sm:$0xff] %vm3660_vm4, %v3656_v14 }
0x2397   :  { %v3275_v37 = vpop.permute.xlu1 %3274 }
0x2398   :  { %v3281_v46 = vsel %vm88_vm0, %v3275_v37, 0.0 }
0x2399   :  { %3282 = vadd.xlane.f32.xlu1 %v3281_v46 }
0x239d   :  { %3248 = vadd.xlane.f32.xlu1 %v3247_v36 }
0x240e   :  { %v3407_v49 = vpop.f32.mrb[28].mxu1 }
0x240f   :  { %v3408_v32 = vadd.f32 %v5476_v60, %v3407_v49  ;;  %v4181_v23 = vpop.f32.mrb[29].mxu1 }
0x2411   :  { %3425 = vrot.lane.b32.xlu0 %v3408_v32, %s4653_s2  ;;  %v3411_v6 = vsel %vm218_vm2, %v3408_v32, 0.0 }
0x2426   :  { %v3283_v40 = vpop.xlane.xlu1 %3282 }
0x2427   :  { %v3285_v25 = vmul.f32 0.03125, %v3283_v40 }
0x2429   :  { %v3287_v24 = vsub.f32 %v5577_v20, %v3285_v25 }
0x242a   :  { %v3249_v59 = vpop.xlane.xlu1 %3248 }
0x242b   :  { %v3289_v0 = vmul.f32 %v3287_v24, %v3287_v24  ;;  %v3251_v61 = vmul.f32 0.015625, %v3249_v59 }
0x242d   :  { %3294 = vrot.lane.b32.xlu0 %v3289_v0, %s4653_s2  ;;  %v3253_v60 = vsub.f32 %v5577_v20, %v3251_v61 }
0x242f   :  { %v3255_v2 = vmul.f32 %v3253_v60, %v3253_v60 }
0x2431   :  { %v3259_v50 = vsel %vm218_vm2, %v3255_v2, 0.0 }
0x244c   :  { %3412 = vadd.xlane.f32.xlu0 %v3411_v6 }
0x2483   :  { %v3426_v54 = vpop.permute.xlu0 %3425 }
0x2484   :  { %v3428_v4 = vsel %vm88_vm0, %v3426_v54, 0.0 }
0x2485   :  { %3429 = vadd.xlane.f32.xlu1 %v3428_v4 }
0x249f   :  { %v3295_v30 = vpop.permute.xlu0 %3294 }
0x24a0   :  { %v3301_v19 = vsel %vm88_vm0, %v3295_v30, 0.0  ;;  %v3640_v30 = vadd.s32 48, %v5596_v21 }
0x24a1   :  { %3302 = vadd.xlane.f32.xlu1 %v3301_v19 }
0x24a2   :  { %vm3650_vm11 = vcmp.lt.s32.totalorder %v3640_v30, %v5599_v17 }
0x24a5   :  { %3260 = vadd.xlane.f32.xlu1 %v3259_v50 }
0x24d9   :  { %v3413_v44 = vpop.xlane.xlu0 %3412 }
0x24da   :  { %v3414_v27 = vmul.f32 0.015625, %v3413_v44 }
0x24dc   :  { %v3415_v39 = vsub.f32 %v3408_v32, %v3414_v27 }
0x24de   :  { %v3416_v26 = vmul.f32 %v3415_v39, %v3415_v39 }
0x24e0   :  { %v3417_v34 = vsel %vm218_vm2, %v3416_v26, 0.0 }
0x24e1   :  { %3418 = vadd.xlane.f32.xlu1 %v3417_v34 }
0x2512   :  { %v3430_v62 = vpop.xlane.xlu1 %3429 }
0x2513   :  { %v3431_v41 = vmul.f32 0.03125, %v3430_v62 }
0x2515   :  { %v3432_v35 = vsub.f32 %v3408_v32, %v3431_v41 }
0x2517   :  { %v3433_v38 = vmul.f32 %v3432_v35, %v3432_v35 }
0x2519   :  { %3435 = vrot.lane.b32.xlu1 %v3433_v38, %s4653_s2 }
0x252e   :  { %v3303_v20 = vpop.xlane.xlu1 %3302 }
0x252f   :  { %v3305_v31 = vmul.f32 0.03125, %v3303_v20 }
0x2531   :  { %v3307_v22 = vadd.f32 1e-05, %v3305_v31 }
0x2532   :  { %v3261_v18 = vpop.xlane.xlu1 %3260 }
0x2533   :  { %4607 = vrsqrt.f32 %v3307_v22  ;;  %v3263_v28 = vmul.f32 0.015625, %v3261_v18 }
0x2535   :  { %v3265_v29 = vadd.f32 1e-05, %v3263_v28 }
0x253d   :  { %v4608_v33 = vpop.eup %4607 }
0x253e   :  { %v3311_v11 = vmul.f32 %v4608_v33, %v3287_v24 }
0x2540   :  { %3453 = vrot.lane.b32.xlu0 %v3311_v11, %s4654_s5 }
0x256e   :  { %v3419_v47 = vpop.xlane.xlu1 %3418 }
0x256f   :  { %v3420_v7 = vmul.f32 0.015625, %v3419_v47 }
0x2571   :  { %v3421_v12 = vadd.f32 1e-05, %v3420_v7 }
0x2573   :  { %4609 = vrsqrt.f32 %v3421_v12 }
0x2574   :  { %4611 = vrsqrt.f32 %v3265_v29 }
0x257d   :  { %v4610_v9 = vpop.eup %4609 }
0x257e   :  { %v4612_v56 = vpop.eup %4611  ;;  %v3423_v53 = vmul.f32 %v4610_v9, %v3415_v39 }
0x257f   :  { %v3269_v42 = vmul.f32 %v4612_v56, %v3253_v60 }
0x2581   :  { %v3445_v3 = vadd.f32 %v3423_v53, %v3269_v42 }
0x2583   :  { %v3735_v55 = vmul.f32 -1.442695, %v3445_v3 }
0x2585   :  { %4613 = vpow2.f32 %v3735_v55 }
0x258b   :  { %v3436_v63 = vpop.permute.xlu1 %3435 }
0x258c   :  { %v3438_v13 = vsel %vm88_vm0, %v3436_v63, 0.0 }
0x258d   :  { %3439 = vadd.xlane.f32.xlu1 %v3438_v13 }
0x258f   :  { %v4614_v52 = vpop.eup %4613 }
0x2590   :  { %v3449_v43 = vadd.f32 1.0, %v4614_v52 }
0x2592   :  { %4615 = vrcp.f32 %v3449_v43 }
0x259c   :  { %v4616_v5 = vpop.eup %4615 }
0x259d   :  { %v3463_v46 = vsub.f32 1.0, %v4616_v5 }
0x259f   :  { %v3464_v49 = vmul.f32 %v3463_v46, %v5556_v1  ;;  %v3641_v1 = vadd.s32 56, %v5596_v21 }
0x25a1   :  { %vm3651_vm10 = vcmp.lt.s32.totalorder %v3641_v1, %v5599_v17 }
0x25b2   :  { %v3454_v58 = vpop.permute.xlu0 %3453 }
0x25b3   :  { %v3456_v10 = vmul.f32 %v4616_v5, %v3454_v58 }
0x25b5   :  { %3458 = vrot.lane.b32.xlu0 %v3456_v10, %s4655_s17 }
0x261a   :  { %v3440_v15 = vpop.xlane.xlu1 %3439 }
0x261b   :  { %v3441_v51 = vmul.f32 0.03125, %v3440_v15 }
0x261d   :  { %v3442_v57 = vadd.f32 1e-05, %v3441_v51 }
0x261f   :  { %4617 = vrsqrt.f32 %v3442_v57 }
0x2627   :  { %v3459_v48 = vpop.permute.xlu0 %3458 }
0x2629   :  { %v4618_v8 = vpop.eup %4617 }
0x262a   :  { %v3444_v45 = vmul.f32 %v4618_v8, %v3432_v35 }
0x262c   :  { %v3461_v14 = vadd.f32 %v3459_v48, %v3444_v45 }
0x262e   :  { %4619 = vtanh.f32 %v3461_v14 }
0x2638   :  { %v4620_v37 = vpop.eup %4619 }
0x2639   :  { %3466 = vrot.lane.b32.xlu0 %v4620_v37, %s4653_s2 }
0x26ab   :  { %v3467_v36 = vpop.permute.xlu0 %3466 }
0x26ac   :  { %v3469_v32 = vmul.f32 %v4616_v5, %v3467_v36 }
0x26ae   :  { %v3470_v23 = vadd.f32 %v3469_v32, %v3464_v49 }
0x26b0   :  { %4200 = vmatmul.mubr.msk.f32.gmra.mrb[32].mxu0 %vm88_vm0, %v3470_v23 }
0x2783   :  { %v4201_v40 = vpop.f32.mrb[32].mxu0 }
0x2784   :  { %v3582_v25 = vadd.f32 %v4201_v40, %v5584_v16  ;;  %v3576_v24 = vpop.f32.mrb[33].mxu0 }
0x2785   :  { %v3577_v0 = vadd.f32 %v5584_v16, %v3576_v24 }
0x2786   :  { %v3752_v6 = vmul.f32 -1.442695, %v3582_v25 }
0x2787   :  { %v3751_v54 = vmul.f32 -1.442695, %v3577_v0 }
0x2788   :  { %4621 = vpow2.f32 %v3752_v6 }
0x2789   :  { %4623 = vpow2.f32 %v3751_v54 }
0x2792   :  { %v4622_v4 = vpop.eup %4621 }
0x2793   :  { %v4624_v59 = vpop.eup %4623  ;;  %v3616_v61 = vadd.f32 1.0, %v4622_v4 }
0x2794   :  { %v3615_v60 = vadd.f32 1.0, %v4624_v59 }
0x2795   :  { %4625 = vrcp.f32 %v3616_v61 }
0x2796   :  { %4627 = vrcp.f32 %v3615_v60 }
0x279f   :  { %v4626_v19 = vpop.eup %4625 }
0x27a0   :  { %v4628_v16 = vpop.eup %4627  ;;  %v3659_v2 = vsel %vm3651_vm10, %v4626_v19, 0.0 }
0x27a1   :  { %3668 = vst.msk [vmem:[%s5679_s9 + $0x38] sm:$0xff] %vm3660_vm4, %v3659_v2  ;;  %v3658_v50 = vsel %vm3650_vm11, %v4628_v16, 0.0 }
0x27a2   :  { %3667 = vst.msk [vmem:[%s5679_s9 + $0x30] sm:$0xff] %vm3660_vm4, %v3658_v50 }
0x27a3   :  { %3673 = vsyncpa [#allocation3], 1 }

</bundles_post_ra>
